<compile_context>
chip_gen: v6e
topology: v6e:2x2x1
jax: 0.10.0
libtpu: 0.0.40
codegen_flags: <defaults>
</compile_context>

<pallas_src>
import functools

import jax
import jax.numpy as jnp
from jax.experimental import pallas as pl
from jax.experimental.pallas import tpu as pltpu

F_H = 700 // 4              # 175
F_W = 700 // 4              # 175
N_FLAT = F_H * F_W          # 30625 -- lane-dense last dim
WIDTH = 2.0
LENGTH = 4.0
HEIGHT = 1.5
Z_VAL = -4.5
ORI_90 = 3.1415926 / 2.0    # matches the PyTorch module's literal constant


def _make_anchor_kernel(sets_per_block):
    """Kernel writing `sets_per_block` anchor sets, each (7, N_FLAT)."""
    S = sets_per_block

    def kernel(xy_ref, o_ref):
        # xy_ref: (2, 1, N_FLAT) f32 -- row 0 = anc_x (flat), row 1 = anc_y (flat),
        #         precomputed with exact linspace endpoints; no divides/converts here.
        # o_ref : (S, 7, N_FLAT) f32 -- built as one value, stored once (dense vst).
        anc_x = xy_ref[0:1]                 # (1, 1, N)  static slice
        anc_y = xy_ref[1:2]                 # (1, 1, N)

        # Per-channel constant default at (1, 7, 1): a single vreg, so this
        # where chain is ~free (and foldable: `c` is a compile-time iota).
        c = jax.lax.broadcasted_iota(jnp.int32, (1, 7, 1), 1)
        base = jnp.where(c == 2, jnp.float32(Z_VAL),
               jnp.where(c == 3, jnp.float32(LENGTH),
               jnp.where(c == 4, jnp.float32(WIDTH),
               jnp.where(c == 5, jnp.float32(HEIGHT), jnp.float32(0.0)))))

        # Spatially varying channels 0 (x) and 1 (y): 2 selects at (1, 7, N).
        common = jnp.where(c == 0, anc_x, jnp.where(c == 1, anc_y, base))

        # Channel 6 of anchor set 1 is pi/2 instead of 0: 1 select at (S, 7, N).
        if S == 2:
            set_id = jax.lax.broadcasted_iota(jnp.int32, (S, 7, 1), 0)
        else:
            set_id = pl.program_id(0)       # one anchor set per grid step (v7x)
        ori_mask = (c == 6) & (set_id == 1)

        o_ref[...] = jnp.where(ori_mask, jnp.float32(ORI_90),
                               common).astype(o_ref.dtype)

    return kernel


def _num_parallel_blocks():
    """2 on two-TensorCore chips (v7x), else 1.  Perf-only; never correctness."""
    try:
        info = pltpu.get_tpu_info()
        # Explicit per-chip core count if the TpuInfo exposes one.
        for attr in ("num_tensorcores", "tensorcores_per_chip",
                     "num_cores_per_chip"):
            n = getattr(info, attr, None)
            if isinstance(n, int) and n >= 1:
                return 2 if n >= 2 else 1
        # v7x is the only generation with a 64 MiB per-core VMEM budget.
        vmem = getattr(info, "vmem_capacity_bytes", None)
        if isinstance(vmem, int) and vmem > 0:
            return 2 if vmem <= 64 * 1024 * 1024 else 1
    except Exception:
        pass
    try:
        kind = jax.devices()[0].device_kind.lower()
        return 2 if ("v7" in kind or "7x" in kind) else 1
    except Exception:
        return 1


def _build_anchor_feature():
    n_blocks = _num_parallel_blocks()
    sets_per_block = 2 // n_blocks                  # 1 on v7x, 2 otherwise
    kernel = _make_anchor_kernel(sets_per_block)

    # Exact linspace rows (endpoint parity with torch.linspace), flattened to the
    # lane axis: anc_x[i*W + j] = lin_x[i], anc_y[i*W + j] = lin_y[j].
    lin_x = jnp.linspace(0.0, 70.0, F_H, dtype=jnp.float32)
    lin_y = jnp.linspace(-35.0, 35.0, F_W, dtype=jnp.float32)
    xy = jnp.stack([jnp.repeat(lin_x, F_W), jnp.tile(lin_y, F_H)],
                   axis=0).reshape(2, 1, N_FLAT)

    flat = pl.pallas_call(
        kernel,
        out_shape=jax.ShapeDtypeStruct((2, 7, N_FLAT), jnp.float32),
        grid=(n_blocks,),
        in_specs=[pl.BlockSpec((2, 1, N_FLAT), lambda i: (0, 0, 0))],
        out_specs=pl.BlockSpec((sets_per_block, 7, N_FLAT), lambda i: (i, 0, 0)),
        compiler_params=pltpu.CompilerParams(
            dimension_semantics=("parallel",)),
    )(xy)
    # Free metadata reshape on a contiguous array: (2, 7, H*W) -> (1, 14, H, W).
    return flat.reshape(1, 2 * 7, F_H, F_W)


@functools.lru_cache(maxsize=1)
def anchor_bonding_box_feature():
    """Returns (1, 14, 175, 175) float32, matching the PyTorch forward().

    The output is a compile-time constant, so it is computed once and cached;
    subsequent forward passes reuse the resident array (zero per-step cost).
    """
    return jax.block_until_ready(_build_anchor_feature())


def _reference():
    """Pure-JAX mirror of the PyTorch code.  The torch matmuls are rank-1 outer
    products with a ones vector, i.e. pure broadcasts (written as such here to
    avoid any TPU matmul-precision ambiguity in the *reference*)."""
    lin_x = jnp.linspace(0.0, 70.0, F_H, dtype=jnp.float32)
    lin_y = jnp.linspace(-35.0, 35.0, F_W, dtype=jnp.float32)
    anc_x = jnp.broadcast_to(lin_x[:, None], (F_H, F_W))[None]
    anc_y = jnp.broadcast_to(lin_y[None, :], (F_H, F_W))[None]
    ones = jnp.ones((1, F_H, F_W), jnp.float32)
    anc_z = ones * Z_VAL
    anc_w = ones * WIDTH
    anc_l = ones * LENGTH
    anc_h = ones * HEIGHT
    anc_ori = ones * 0.0
    anc_ori_90 = ones * ORI_90
    s1 = jnp.concatenate((anc_x, anc_y, anc_z, anc_l, anc_w, anc_h, anc_ori), 0)
    s2 = jnp.concatenate((anc_x, anc_y, anc_z, anc_l, anc_w, anc_h, anc_ori_90), 0)
    return jnp.concatenate((s1, s2), axis=0)[None]


if __name__ == "__main__":
    # The module's forward() takes no tensor inputs; key created for form only.
    _ = jax.random.PRNGKey(0)

    out = anchor_bonding_box_feature()          # blocks internally
    out2 = anchor_bonding_box_feature()         # cached constant, no relaunch
    ref = _reference()

    assert out.shape == (1, 14, F_H, F_W), out.shape
    assert out.dtype == jnp.float32
    assert out2 is out, "constant should be cached, not regenerated"
    assert jnp.allclose(out, ref, atol=1e-6, rtol=1e-6), "mismatch vs reference"

    print("KERNEL_OK")
</pallas_src>

<mosaic_0001>
module attributes {stable_mosaic.version = 11 : i64} {
  func.func @kernel(%arg0: i32, %arg1: memref<2x1x30625xf32, #tpu.memory_space<vmem>>, %arg2: memref<2x7x30625xf32, #tpu.memory_space<vmem>>) attributes {dimension_semantics = [#tpu.dimension_semantics<parallel>], iteration_bounds = array<i64: 1>, scalar_prefetch = 0 : i64, scratch_operands = 0 : i64, tpu.core_type = #tpu.core_type<tc>, window_params = [{pipeline_mode = #tpu.pipeline_mode<synchronous>, transform_indices = @transform_0, window_bounds = array<i64: 2, 1, 30625>}, {transform_indices = @transform_1, window_bounds = array<i64: 2, 7, 30625>}]} {
    %c0 = arith.constant 0 : index
    %c0_0 = arith.constant 0 : index
    %c0_1 = arith.constant 0 : index
    %0 = vector.load %arg1[%c0, %c0_0, %c0_1] : memref<2x1x30625xf32, #tpu.memory_space<vmem>>, vector<1x1x30625xf32>
    %c1 = arith.constant 1 : index
    %c0_2 = arith.constant 0 : index
    %c0_3 = arith.constant 0 : index
    %1 = vector.load %arg1[%c1, %c0_2, %c0_3] : memref<2x1x30625xf32, #tpu.memory_space<vmem>>, vector<1x1x30625xf32>
    %2 = tpu.iota {dimensions = array<i32: 1>} : vector<1x7x1xi32>
    %c2_i32 = arith.constant 2 : i32
    %3 = vector.broadcast %c2_i32 : i32 to vector<1x7x1xi32>
    %4 = arith.cmpi eq, %2, %3 : vector<1x7x1xi32>
    %c3_i32 = arith.constant 3 : i32
    %5 = vector.broadcast %c3_i32 : i32 to vector<1x7x1xi32>
    %6 = arith.cmpi eq, %2, %5 : vector<1x7x1xi32>
    %c4_i32 = arith.constant 4 : i32
    %7 = vector.broadcast %c4_i32 : i32 to vector<1x7x1xi32>
    %8 = arith.cmpi eq, %2, %7 : vector<1x7x1xi32>
    %c5_i32 = arith.constant 5 : i32
    %9 = vector.broadcast %c5_i32 : i32 to vector<1x7x1xi32>
    %10 = arith.cmpi eq, %2, %9 : vector<1x7x1xi32>
    %cst = arith.constant 1.500000e+00 : f32
    %cst_4 = arith.constant 0.000000e+00 : f32
    %11 = vector.broadcast %cst : f32 to vector<1x7x1xf32>
    %12 = vector.broadcast %cst_4 : f32 to vector<1x7x1xf32>
    %13 = arith.select %10, %11, %12 : vector<1x7x1xi1>, vector<1x7x1xf32>
    %cst_5 = arith.constant 2.000000e+00 : f32
    %14 = vector.broadcast %cst_5 : f32 to vector<1x7x1xf32>
    %15 = arith.select %8, %14, %13 : vector<1x7x1xi1>, vector<1x7x1xf32>
    %cst_6 = arith.constant 4.000000e+00 : f32
    %16 = vector.broadcast %cst_6 : f32 to vector<1x7x1xf32>
    %17 = arith.select %6, %16, %15 : vector<1x7x1xi1>, vector<1x7x1xf32>
    %cst_7 = arith.constant -4.500000e+00 : f32
    %18 = vector.broadcast %cst_7 : f32 to vector<1x7x1xf32>
    %19 = arith.select %4, %18, %17 : vector<1x7x1xi1>, vector<1x7x1xf32>
    %c0_i32 = arith.constant 0 : i32
    %20 = vector.broadcast %c0_i32 : i32 to vector<1x7x1xi32>
    %21 = arith.cmpi eq, %2, %20 : vector<1x7x1xi32>
    %c1_i32 = arith.constant 1 : i32
    %22 = vector.broadcast %c1_i32 : i32 to vector<1x7x1xi32>
    %23 = arith.cmpi eq, %2, %22 : vector<1x7x1xi32>
    %24 = vector.shape_cast %23 : vector<1x7x1xi1> to vector<1x7x1xi1>
    %25 = vector.broadcast %24 : vector<1x7x1xi1> to vector<1x7x30625xi1>
    %26 = vector.shape_cast %1 : vector<1x1x30625xf32> to vector<1x1x30625xf32>
    %27 = vector.broadcast %26 : vector<1x1x30625xf32> to vector<1x7x30625xf32>
    %28 = vector.shape_cast %19 : vector<1x7x1xf32> to vector<1x7x1xf32>
    %29 = vector.broadcast %28 : vector<1x7x1xf32> to vector<1x7x30625xf32>
    %30 = arith.select %25, %27, %29 : vector<1x7x30625xi1>, vector<1x7x30625xf32>
    %31 = vector.shape_cast %21 : vector<1x7x1xi1> to vector<1x7x1xi1>
    %32 = vector.broadcast %31 : vector<1x7x1xi1> to vector<1x7x30625xi1>
    %33 = vector.shape_cast %0 : vector<1x1x30625xf32> to vector<1x1x30625xf32>
    %34 = vector.broadcast %33 : vector<1x1x30625xf32> to vector<1x7x30625xf32>
    %35 = arith.select %32, %34, %30 : vector<1x7x30625xi1>, vector<1x7x30625xf32>
    %36 = tpu.iota {dimensions = array<i32: 0>} : vector<2x7x1xi32>
    %c6_i32 = arith.constant 6 : i32
    %37 = vector.broadcast %c6_i32 : i32 to vector<1x7x1xi32>
    %38 = arith.cmpi eq, %2, %37 : vector<1x7x1xi32>
    %c1_i32_8 = arith.constant 1 : i32
    %39 = vector.broadcast %c1_i32_8 : i32 to vector<2x7x1xi32>
    %40 = arith.cmpi eq, %36, %39 : vector<2x7x1xi32>
    %41 = vector.broadcast %38 : vector<1x7x1xi1> to vector<2x7x1xi1>
    %42 = arith.andi %41, %40 : vector<2x7x1xi1>
    %cst_9 = arith.constant 1.57079625 : f32
    %43 = vector.shape_cast %42 : vector<2x7x1xi1> to vector<2x7x1xi1>
    %44 = vector.broadcast %43 : vector<2x7x1xi1> to vector<2x7x30625xi1>
    %45 = vector.broadcast %cst_9 : f32 to vector<2x7x30625xf32>
    %46 = vector.shape_cast %35 : vector<1x7x30625xf32> to vector<1x7x30625xf32>
    %47 = vector.broadcast %46 : vector<1x7x30625xf32> to vector<2x7x30625xf32>
    %48 = arith.select %44, %45, %47 : vector<2x7x30625xi1>, vector<2x7x30625xf32>
    %c0_10 = arith.constant 0 : index
    %c0_11 = arith.constant 0 : index
    %c0_12 = arith.constant 0 : index
    %49 = vector.load %arg2[%c0_10, %c0_11, %c0_12] : memref<2x7x30625xf32, #tpu.memory_space<vmem>>, vector<2x7x30625xf32>
    tpu.vector_store %arg2[%c0_10, %c0_11, %c0_12], %48 {strides = array<i32>} : memref<2x7x30625xf32, #tpu.memory_space<vmem>>, vector<2x7x30625xf32>,
    return
  }
  func.func @transform_0(%arg0: i32) -> (i32, i32, i32) {
    %c0_i32 = arith.constant 0 : i32
    %c0_i32_0 = arith.constant 0 : i32
    %c0_i32_1 = arith.constant 0 : i32
    %c0_i32_2 = arith.constant 0 : i32
    return %c0_i32, %c0_i32_0, %c0_i32_1 : i32, i32, i32
  }
  func.func @transform_1(%arg0: i32) -> (i32, i32, i32) {
    %c0_i32 = arith.constant 0 : i32
    %c0_i32_0 = arith.constant 0 : i32
    %c0_i32_1 = arith.constant 0 : i32
    return %arg0, %c0_i32, %c0_i32_0 : i32, i32, i32
  }
}

</mosaic_0001>

<bundles_post_ra>
// kernel: tpu_custom_call.1
= control target key start
LH: loop header
LB: loop body
LE: loop exit
PB: predicated region body
PF: predicated region fallthrough
CT: control target
= control target key end

     0   :  { %6 = vsyncpa [#allocation3], 0  ;;  %s4040_s6 = smov [#allocation2]   ;;  %s9014_s0 = inlined_call_operand.hbm [shape: f32[2,1,30625], index: 0, kind: input, shape index: {}]   ;;  %s9015_s1 = inlined_call_operand.vmem [shape: f32[2,7,30625], index: 1, kind: output, shape index: {}]  }
   0x1   :  { %s12_s7 = sshll.u32 %s4040_s6, 4  ;;  %s13_s7 = int_to_ptr.vmem [resolvable:$true] %s12_s7 }
   0x2   :  { %s4026_s8 = scalar_lea.vmem %s13_s7, 7680  ;;  %p4031_p1 = scmp.lt.s32.totalorder %s13_s7, %s13_s7 }
   0x3   :  { %p4027_p0 = scmp.ne.s32.totalorder %s13_s7, %s4026_s8  ;;  %p4032_p2 = scmp.lt.s32.totalorder %s4026_s8, %s4026_s8 }
   0x5   :  { %p4033_p3 = por %p4032_p2, %p4031_p1 }
   0x7   :  { %p4034_p4 = pnand %p4033_p3, %p4027_p0 }
   0x9   :  { %4037 = shalt.err (!%p4034_p4)
}
   0xa   :  { %s4041_s9 = smov 3840   ;;  %s4042_s10 = smov 240  }
   0xb   :  { %18 = dma.hbm_to_vmem [thread:$0]  %s9014_s0, 7680, %s13_s7, [#allocation3], %s4041_s9, %s4041_s9, %s4042_s10  }
   0xc   :  { %4038 = dma.done.wait [#allocation3], 7680  }
   0xd   :  { %4039 = vsyncadd [#allocation3], 4294959616  ;;  %v83_v0 = vlaneseq  ;;  %v4043_v2 = vmov 0.0   ;;  %v22_v8 = vld [vmem:[#allocation2] sm:$0xff]  ;;  %v53_v9 = vld [vmem:[#allocation2 + $0xf0] sm:$0xff]  ;;  %vm3767_vm7 = vcmask 268288  }
   0xe   :  { %v4114_v30 = vld [vmem:[#allocation2 + $0x8] sm:$0xff]  ;;  %v4116_v31 = vld [vmem:[#allocation2 + $0xf8] sm:$0xff] }
   0xf   :  { %v4057_v1 = vshrl.u32 %v83_v0, 7 }
  0x11   :  { %vm86_vm0 = vcmp.eq.s32.totalorder %v4057_v1, 3  ;;  %vm87_vm1 = vcmp.eq.s32.totalorder %v4057_v1, 4  ;;  %vm88_vm2 = vcmp.eq.s32.totalorder %v4057_v1, 5  ;;  %vm85_vm3 = vcmp.eq.s32.totalorder %v4057_v1, 2 }
  0x12   :  { %v89_v3 = vsel %vm88_vm2, 1.5, %v4043_v2  ;;  %vm93_vm4 = vcmp.eq.s32.totalorder %v4057_v1, 0  ;;  %v4065_v4 = vsub.s32 0, %v4057_v1  ;;  %vm94_vm5 = vcmp.eq.s32.totalorder %v4057_v1, 1 }
  0x13   :  { %v90_v5 = vsel %vm87_vm1, 2.0, %v89_v3  ;;  %v4069_v6 = vsub.s32 1, %v4057_v1  ;;  %v4072_v7 = vsub.s32 2, %v4057_v1  ;;  %v4075_v11 = vsub.s32 3, %v4057_v1 }
  0x14   :  { %v91_v10 = vsel %vm86_vm0, 4.0, %v90_v5  ;;  %v4078_v12 = vsub.s32 4, %v4057_v1  ;;  %v4081_v13 = vsub.s32 5, %v4057_v1  ;;  %v130_v15 = vrot.slane %v53_v9, %v4065_v4 }
  0x15   :  { %v4083_v14 = vsel %vm85_vm3, -4.5, %v91_v10  ;;  %v1602_v16 = vrot.slane %v22_v8, %v4065_v4  ;;  %v134_v17 = vrot.slane %v53_v9, %v4069_v6  ;;  %v1606_v18 = vrot.slane %v22_v8, %v4069_v6 }
  0x16   :  { %v138_v19 = vrot.slane %v53_v9, %v4072_v7  ;;  %v1610_v20 = vrot.slane %v22_v8, %v4072_v7  ;;  %v142_v21 = vrot.slane %v53_v9, %v4075_v11  ;;  %v1327_v22 = vsel %vm94_vm5, %v130_v15, %v4083_v14 }
  0x17   :  { %v1328_v23 = vsel %vm94_vm5, %v134_v17, %v4083_v14  ;;  %v1614_v24 = vrot.slane %v22_v8, %v4075_v11  ;;  %v146_v25 = vrot.slane %v53_v9, %v4078_v12  ;;  %v4102_v26 = vsel %vm93_vm4, %v1602_v16, %v1327_v22  ;;  %v4260_v16 = vld [vmem:[#allocation2 + $0x10] sm:$0xff]  ;;  %v55_v17 = vld [vmem:[#allocation2 + $0x100] sm:$0xff] }
  0x18   :  { %v4106_v27 = vsel %vm93_vm4, %v1606_v18, %v1328_v23  ;;  %v1329_v28 = vsel %vm94_vm5, %v138_v19, %v4083_v14  ;;  %v1330_v29 = vsel %vm94_vm5, %v142_v21, %v4083_v14  ;;  %3528 = vst [vmem:[%s9015_s1] sm:$0x7f] %v4102_v26  ;;  %v1618_v35 = vrot.slane %v22_v8, %v4078_v12 }
  0x19   :  { %3529 = vst [vmem:[%s9015_s1 + $0x8] sm:$0x7f] %v4106_v27  ;;  %v4128_v32 = vsel %vm93_vm4, %v1610_v20, %v1329_v28  ;;  %v4132_v33 = vsel %vm93_vm4, %v1614_v24, %v1330_v29  ;;  %v1331_v34 = vsel %vm94_vm5, %v146_v25, %v4083_v14  ;;  %v150_v36 = vrot.slane %v53_v9, %v4081_v13 }
  0x1a   :  { %3530 = vst [vmem:[%s9015_s1 + $0x10] sm:$0x7f] %v4128_v32  ;;  %3531 = vst [vmem:[%s9015_s1 + $0x18] sm:$0x7f] %v4132_v33  ;;  %v1622_v37 = vrot.slane %v22_v8, %v4081_v13  ;;  %v4149_v38 = vsub.s32 6, %v4057_v1  ;;  %v4152_v39 = vsub.s32 7, %v4057_v1  ;;  %v4156_v40 = vsel %vm93_vm4, %v1618_v35, %v1331_v34 }
  0x1b   :  { %v162_v41 = vrot.slane %v4116_v31, %v4065_v4  ;;  %v1634_v42 = vrot.slane %v4114_v30, %v4065_v4  ;;  %v166_v43 = vrot.slane %v4116_v31, %v4069_v6  ;;  %3532 = vst [vmem:[%s9015_s1 + $0x20] sm:$0x7f] %v4156_v40  ;;  %v1332_v44 = vsel %vm94_vm5, %v150_v36, %v4083_v14 }
  0x1c   :  { %v154_v45 = vrot.slane %v53_v9, %v4149_v38  ;;  %v1626_v46 = vrot.slane %v22_v8, %v4149_v38  ;;  %v158_v47 = vrot.slane %v53_v9, %v4152_v39  ;;  %v4176_v48 = vsel %vm93_vm4, %v1622_v37, %v1332_v44 }
  0x1d   :  { %v1630_v49 = vrot.slane %v22_v8, %v4152_v39  ;;  %v1335_v50 = vsel %vm94_vm5, %v162_v41, %v4083_v14  ;;  %v1336_v51 = vsel %vm94_vm5, %v166_v43, %v4083_v14  ;;  %3533 = vst [vmem:[%s9015_s1 + $0x28] sm:$0x7f] %v4176_v48  ;;  %v1638_v55 = vrot.slane %v4114_v30, %v4069_v6 }
  0x1e   :  { %v1333_v52 = vsel %vm94_vm5, %v154_v45, %v4083_v14  ;;  %v1334_v53 = vsel %vm94_vm5, %v158_v47, %v4083_v14  ;;  %v4197_v54 = vsel %vm93_vm4, %v1634_v42, %v1335_v50  ;;  %v170_v58 = vrot.slane %v4116_v31, %v4072_v7 }
  0x1f   :  { %v4203_v56 = vsel %vm93_vm4, %v1626_v46, %v1333_v52  ;;  %v4207_v57 = vsel %vm93_vm4, %v1630_v49, %v1334_v53  ;;  %3536 = vst [vmem:[%s9015_s1 + $0x40] sm:$0x7f] %v4197_v54  ;;  %v1642_v59 = vrot.slane %v4114_v30, %v4072_v7  ;;  %v4227_v60 = vsel %vm93_vm4, %v1638_v55, %v1336_v51  ;;  %v4368_v55 = vld [vmem:[#allocation2 + $0x108] sm:$0xff] }
  0x20   :  { %3534 = vst [vmem:[%s9015_s1 + $0x30] sm:$0x7f] %v4203_v56  ;;  %3535 = vst [vmem:[%s9015_s1 + $0x38] sm:$0x7f] %v4207_v57  ;;  %v174_v61 = vrot.slane %v4116_v31, %v4075_v11  ;;  %v1646_v62 = vrot.slane %v4114_v30, %v4075_v11  ;;  %v178_v63 = vrot.slane %v4116_v31, %v4078_v12  ;;  %vm3039_vm6 = vcmp.eq.s32.totalorder %v4057_v1, 6 }
  0x21   :  { %3537 = vst [vmem:[%s9015_s1 + $0x48] sm:$0x7f] %v4227_v60  ;;  %v1337_v0 = vsel %vm94_vm5, %v170_v58, %v4083_v14  ;;  %v1650_v2 = vrot.slane %v4114_v30, %v4078_v12  ;;  %v182_v3 = vrot.slane %v4116_v31, %v4081_v13  ;;  %v1654_v5 = vrot.slane %v4114_v30, %v4081_v13 }
  0x22   :  { %v4250_v8 = vsel %vm93_vm4, %v1642_v59, %v1337_v0  ;;  %v1338_v9 = vsel %vm94_vm5, %v174_v61, %v4083_v14  ;;  %v1339_v10 = vsel %vm94_vm5, %v178_v63, %v4083_v14  ;;  %v186_v15 = vrot.slane %v4116_v31, %v4149_v38  ;;  %v4382_v63 = vld [vmem:[#allocation2 + $0x18] sm:$0xff] }
  0x23   :  { %3538 = vst [vmem:[%s9015_s1 + $0x50] sm:$0x7f] %v4250_v8  ;;  %v4268_v18 = vsel %vm93_vm4, %v1646_v62, %v1338_v9  ;;  %v4272_v19 = vsel %vm93_vm4, %v1650_v2, %v1339_v10  ;;  %v1340_v20 = vsel %vm94_vm5, %v182_v3, %v4083_v14  ;;  %v1658_v21 = vrot.slane %v4114_v30, %v4149_v38 }
  0x24   :  { %3539 = vst [vmem:[%s9015_s1 + $0x58] sm:$0x7f] %v4268_v18  ;;  %3540 = vst [vmem:[%s9015_s1 + $0x60] sm:$0x7f] %v4272_v19  ;;  %v4289_v22 = vsel %vm93_vm4, %v1654_v5, %v1340_v20  ;;  %v1341_v23 = vsel %vm94_vm5, %v186_v15, %v4083_v14  ;;  %v190_v24 = vrot.slane %v4116_v31, %v4152_v39 }
  0x25   :  { %v1662_v25 = vrot.slane %v4114_v30, %v4152_v39  ;;  %3541 = vst [vmem:[%s9015_s1 + $0x68] sm:$0x7f] %v4289_v22  ;;  %v4304_v28 = vsel %vm93_vm4, %v1658_v21, %v1341_v23  ;;  %v194_v29 = vrot.slane %v55_v17, %v4065_v4  ;;  %v1666_v34 = vrot.slane %v4260_v16, %v4065_v4 }
  0x26   :  { %v198_v35 = vrot.slane %v55_v17, %v4069_v6  ;;  %3542 = vst [vmem:[%s9015_s1 + $0x70] sm:$0x7f] %v4304_v28  ;;  %v1342_v30 = vsel %vm94_vm5, %v190_v24, %v4083_v14  ;;  %v1670_v31 = vrot.slane %v4260_v16, %v4069_v6  ;;  %v202_v36 = vrot.slane %v55_v17, %v4072_v7 }
  0x27   :  { %v1674_v37 = vrot.slane %v4260_v16, %v4072_v7  ;;  %v4324_v41 = vsel %vm93_vm4, %v1662_v25, %v1342_v30  ;;  %v1343_v42 = vsel %vm94_vm5, %v194_v29, %v4083_v14  ;;  %v206_v44 = vrot.slane %v55_v17, %v4075_v11 }
  0x28   :  { %v1344_v43 = vsel %vm94_vm5, %v198_v35, %v4083_v14  ;;  %3543 = vst [vmem:[%s9015_s1 + $0x78] sm:$0x7f] %v4324_v41  ;;  %v4339_v45 = vsel %vm93_vm4, %v1666_v34, %v1343_v42  ;;  %v1345_v47 = vsel %vm94_vm5, %v202_v36, %v4083_v14  ;;  %v1678_v49 = vrot.slane %v4260_v16, %v4075_v11 }
  0x29   :  { %v4343_v46 = vsel %vm93_vm4, %v1670_v31, %v1344_v43  ;;  %3544 = vst [vmem:[%s9015_s1 + $0x80] sm:$0x7f] %v4339_v45  ;;  %v4360_v50 = vsel %vm93_vm4, %v1674_v37, %v1345_v47  ;;  %v1346_v51 = vsel %vm94_vm5, %v206_v44, %v4083_v14  ;;  %v210_v52 = vrot.slane %v55_v17, %v4078_v12 }
  0x2a   :  { %3545 = vst [vmem:[%s9015_s1 + $0x88] sm:$0x7f] %v4343_v46  ;;  %v1682_v53 = vrot.slane %v4260_v16, %v4078_v12  ;;  %3546 = vst [vmem:[%s9015_s1 + $0x90] sm:$0x7f] %v4360_v50  ;;  %v4376_v58 = vsel %vm93_vm4, %v1678_v49, %v1346_v51  ;;  %v214_v59 = vrot.slane %v55_v17, %v4081_v13 }
  0x2b   :  { %v1686_v61 = vrot.slane %v4260_v16, %v4081_v13  ;;  %v218_v62 = vrot.slane %v55_v17, %v4149_v38  ;;  %3547 = vst [vmem:[%s9015_s1 + $0x98] sm:$0x7f] %v4376_v58  ;;  %v1347_v0 = vsel %vm94_vm5, %v210_v52, %v4083_v14  ;;  %v1690_v2 = vrot.slane %v4260_v16, %v4149_v38 }
  0x2c   :  { %v222_v3 = vrot.slane %v55_v17, %v4152_v39  ;;  %v1694_v5 = vrot.slane %v4260_v16, %v4152_v39  ;;  %v4398_v9 = vsel %vm93_vm4, %v1682_v53, %v1347_v0  ;;  %v1348_v10 = vsel %vm94_vm5, %v214_v59, %v4083_v14  ;;  %v4483_v53 = vld [vmem:[#allocation2 + $0x110] sm:$0xff] }
  0x2d   :  { %v1349_v15 = vsel %vm94_vm5, %v218_v62, %v4083_v14  ;;  %v226_v20 = vrot.slane %v4368_v55, %v4065_v4  ;;  %3548 = vst [vmem:[%s9015_s1 + $0xa0] sm:$0x7f] %v4398_v9  ;;  %v4414_v16 = vsel %vm93_vm4, %v1686_v61, %v1348_v10  ;;  %v1698_v23 = vrot.slane %v4382_v63, %v4065_v4 }
  0x2e   :  { %v4418_v17 = vsel %vm93_vm4, %v1690_v2, %v1349_v15  ;;  %v1350_v21 = vsel %vm94_vm5, %v222_v3, %v4083_v14  ;;  %3549 = vst [vmem:[%s9015_s1 + $0xa8] sm:$0x7f] %v4414_v16  ;;  %v230_v29 = vrot.slane %v4368_v55, %v4069_v6  ;;  %v1702_v34 = vrot.slane %v4382_v63, %v4069_v6  ;;  %v26_v2 = vld [vmem:[#allocation2 + $0x20] sm:$0xff] }
  0x2f   :  { %3550 = vst [vmem:[%s9015_s1 + $0xb0] sm:$0x7f] %v4418_v17  ;;  %v4435_v24 = vsel %vm93_vm4, %v1694_v5, %v1350_v21  ;;  %v1351_v25 = vsel %vm94_vm5, %v226_v20, %v4083_v14  ;;  %v234_v30 = vrot.slane %v4368_v55, %v4072_v7  ;;  %v1706_v31 = vrot.slane %v4382_v63, %v4072_v7 }
  0x30   :  { %3551 = vst [vmem:[%s9015_s1 + $0xb8] sm:$0x7f] %v4435_v24  ;;  %v4450_v35 = vsel %vm93_vm4, %v1698_v23, %v1351_v25  ;;  %v238_v36 = vrot.slane %v4368_v55, %v4075_v11  ;;  %v1352_v37 = vsel %vm94_vm5, %v230_v29, %v4083_v14  ;;  %v1710_v42 = vrot.slane %v4382_v63, %v4075_v11 }
  0x31   :  { %3552 = vst [vmem:[%s9015_s1 + $0xc0] sm:$0x7f] %v4450_v35  ;;  %v242_v43 = vrot.slane %v4368_v55, %v4078_v12  ;;  %v1714_v44 = vrot.slane %v4382_v63, %v4078_v12  ;;  %v4473_v47 = vsel %vm93_vm4, %v1702_v34, %v1352_v37  ;;  %v1353_v49 = vsel %vm94_vm5, %v234_v30, %v4083_v14 }
  0x32   :  { %v1354_v51 = vsel %vm94_vm5, %v238_v36, %v4083_v14  ;;  %v246_v52 = vrot.slane %v4368_v55, %v4081_v13  ;;  %3553 = vst [vmem:[%s9015_s1 + $0xc8] sm:$0x7f] %v4473_v47  ;;  %v4491_v59 = vsel %vm93_vm4, %v1706_v31, %v1353_v49  ;;  %v1718_v0 = vrot.slane %v4382_v63, %v4081_v13 }
  0x33   :  { %v4495_v61 = vsel %vm93_vm4, %v1710_v42, %v1354_v51  ;;  %v1355_v62 = vsel %vm94_vm5, %v242_v43, %v4083_v14  ;;  %3554 = vst [vmem:[%s9015_s1 + $0xd0] sm:$0x7f] %v4491_v59  ;;  %v250_v10 = vrot.slane %v4368_v55, %v4149_v38  ;;  %v1722_v15 = vrot.slane %v4382_v63, %v4149_v38 }
  0x34   :  { %3555 = vst [vmem:[%s9015_s1 + $0xd8] sm:$0x7f] %v4495_v61  ;;  %v4512_v3 = vsel %vm93_vm4, %v1714_v44, %v1355_v62  ;;  %v1356_v5 = vsel %vm94_vm5, %v246_v52, %v4083_v14  ;;  %v254_v21 = vrot.slane %v4368_v55, %v4152_v39  ;;  %v1726_v23 = vrot.slane %v4382_v63, %v4152_v39 }
  0x35   :  { %3556 = vst [vmem:[%s9015_s1 + $0xe0] sm:$0x7f] %v4512_v3  ;;  %v4527_v20 = vsel %vm93_vm4, %v1718_v0, %v1356_v5  ;;  %v258_v25 = vrot.slane %v4483_v53, %v4065_v4  ;;  %v1357_v29 = vsel %vm94_vm5, %v250_v10, %v4083_v14  ;;  %v1730_v34 = vrot.slane %v26_v2, %v4065_v4 }
  0x36   :  { %3557 = vst [vmem:[%s9015_s1 + $0xe8] sm:$0x7f] %v4527_v20  ;;  %v262_v55 = vrot.slane %v4483_v53, %v4069_v6  ;;  %v1734_v30 = vrot.slane %v26_v2, %v4069_v6  ;;  %v4548_v63 = vsel %vm93_vm4, %v1722_v15, %v1357_v29  ;;  %v1358_v31 = vsel %vm94_vm5, %v254_v21, %v4083_v14 }
  0x37   :  { %v1359_v36 = vsel %vm94_vm5, %v258_v25, %v4083_v14  ;;  %v266_v37 = vrot.slane %v4483_v53, %v4072_v7  ;;  %3558 = vst [vmem:[%s9015_s1 + $0xf0] sm:$0x7f] %v4548_v63  ;;  %v4564_v42 = vsel %vm93_vm4, %v1726_v23, %v1358_v31  ;;  %v1738_v49 = vrot.slane %v26_v2, %v4072_v7 }
  0x38   :  { %v4568_v43 = vsel %vm93_vm4, %v1730_v34, %v1359_v36  ;;  %v1360_v44 = vsel %vm94_vm5, %v262_v55, %v4083_v14  ;;  %3559 = vst [vmem:[%s9015_s1 + $0xf8] sm:$0x7f] %v4564_v42  ;;  %v270_v62 = vrot.slane %v4483_v53, %v4075_v11  ;;  %v1742_v0 = vrot.slane %v26_v2, %v4075_v11  ;;  %v27_v55 = vld [vmem:[#allocation2 + $0x28] sm:$0xff] }
  0x39   :  { %3560 = vst [vmem:[%s9015_s1 + $0x100] sm:$0x7f] %v4568_v43  ;;  %v4584_v51 = vsel %vm93_vm4, %v1734_v30, %v1360_v44  ;;  %v1361_v52 = vsel %vm94_vm5, %v266_v37, %v4083_v14  ;;  %v274_v10 = vrot.slane %v4483_v53, %v4078_v12  ;;  %v1746_v15 = vrot.slane %v26_v2, %v4078_v12  ;;  %v58_v30 = vld [vmem:[#allocation2 + $0x118] sm:$0xff] }
  0x3a   :  { %3561 = vst [vmem:[%s9015_s1 + $0x108] sm:$0x7f] %v4584_v51  ;;  %v4598_v5 = vsel %vm93_vm4, %v1738_v49, %v1361_v52  ;;  %v278_v21 = vrot.slane %v4483_v53, %v4081_v13  ;;  %v1362_v23 = vsel %vm94_vm5, %v270_v62, %v4083_v14  ;;  %v1750_v25 = vrot.slane %v26_v2, %v4081_v13 }
  0x3b   :  { %3562 = vst [vmem:[%s9015_s1 + $0x110] sm:$0x7f] %v4598_v5  ;;  %v282_v29 = vrot.slane %v4483_v53, %v4149_v38  ;;  %v1754_v34 = vrot.slane %v26_v2, %v4149_v38  ;;  %v4618_v31 = vsel %vm93_vm4, %v1742_v0, %v1362_v23  ;;  %v1363_v36 = vsel %vm94_vm5, %v274_v10, %v4083_v14 }
  0x3c   :  { %v1364_v37 = vsel %vm94_vm5, %v278_v21, %v4083_v14  ;;  %v286_v44 = vrot.slane %v4483_v53, %v4152_v39  ;;  %3563 = vst [vmem:[%s9015_s1 + $0x118] sm:$0x7f] %v4618_v31  ;;  %v4634_v49 = vsel %vm93_vm4, %v1746_v15, %v1363_v36  ;;  %v1758_v0 = vrot.slane %v26_v2, %v4152_v39 }
  0x3d   :  { %v4638_v52 = vsel %vm93_vm4, %v1750_v25, %v1364_v37  ;;  %v1365_v62 = vsel %vm94_vm5, %v282_v29, %v4083_v14  ;;  %3564 = vst [vmem:[%s9015_s1 + $0x120] sm:$0x7f] %v4634_v49  ;;  %v290_v2 = vrot.slane %v58_v30, %v4065_v4  ;;  %v1762_v15 = vrot.slane %v27_v55, %v4065_v4 }
  0x3e   :  { %3565 = vst [vmem:[%s9015_s1 + $0x128] sm:$0x7f] %v4638_v52  ;;  %v4654_v53 = vsel %vm93_vm4, %v1754_v34, %v1365_v62  ;;  %v1366_v10 = vsel %vm94_vm5, %v286_v44, %v4083_v14  ;;  %v294_v23 = vrot.slane %v58_v30, %v4069_v6  ;;  %v1766_v25 = vrot.slane %v27_v55, %v4069_v6 }
  0x3f   :  { %9206 = vst [vmem:[#allocation5_spill] sm:$0xff] %v4654_v53  ;;  %3566 = vst [vmem:[%s9015_s1 + $0x130] sm:$0x7f] %v4654_v53  ;;  %v4667_v21 = vsel %vm93_vm4, %v1758_v0, %v1366_v10  ;;  %v298_v29 = vrot.slane %v58_v30, %v4072_v7  ;;  %v1367_v34 = vsel %vm94_vm5, %v290_v2, %v4083_v14  ;;  %v4711_v53 = vld [vmem:[#allocation2 + $0x120] sm:$0xff] }
  0x40   :  { %9207 = vst [vmem:[#allocation6_spill] sm:$0xff] %v4667_v21  ;;  %3567 = vst [vmem:[%s9015_s1 + $0x138] sm:$0x7f] %v4667_v21  ;;  %v1770_v36 = vrot.slane %v27_v55, %v4072_v7  ;;  %v302_v37 = vrot.slane %v58_v30, %v4075_v11  ;;  %v1774_v44 = vrot.slane %v27_v55, %v4075_v11 }
  0x41   :  { %v4684_v62 = vsel %vm93_vm4, %v1762_v15, %v1367_v34  ;;  %v1368_v0 = vsel %vm94_vm5, %v294_v23, %v4083_v14  ;;  %v1369_v10 = vsel %vm94_vm5, %v298_v29, %v4083_v14  ;;  %v306_v2 = vrot.slane %v58_v30, %v4078_v12  ;;  %v4709_v34 = vld [vmem:[#allocation2 + $0x30] sm:$0xff] }
  0x42   :  { %9208 = vst [vmem:[#allocation7_spill] sm:$0xff] %v4684_v62  ;;  %3568 = vst [vmem:[%s9015_s1 + $0x140] sm:$0x7f] %v4684_v62  ;;  %v4699_v21 = vsel %vm93_vm4, %v1766_v25, %v1368_v0  ;;  %v4703_v15 = vsel %vm93_vm4, %v1770_v36, %v1369_v10  ;;  %v1370_v23 = vsel %vm94_vm5, %v302_v37, %v4083_v14  ;;  %v60_v62 = vld [vmem:[#allocation2 + $0x128] sm:$0xff] }
  0x43   :  { %9209 = vst [vmem:[#allocation8_spill] sm:$0xff] %v4699_v21  ;;  %9210 = vst [vmem:[#allocation9_spill] sm:$0xff] %v4703_v15  ;;  %v1778_v29 = vrot.slane %v27_v55, %v4078_v12  ;;  %v4723_v25 = vsel %vm93_vm4, %v1774_v44, %v1370_v23  ;;  %v1371_v36 = vsel %vm94_vm5, %v306_v2, %v4083_v14 }
  0x44   :  { %3569 = vst [vmem:[%s9015_s1 + $0x148] sm:$0x7f] %v4699_v21  ;;  %3570 = vst [vmem:[%s9015_s1 + $0x150] sm:$0x7f] %v4703_v15  ;;  %v310_v37 = vrot.slane %v58_v30, %v4081_v13  ;;  %v1782_v0 = vrot.slane %v27_v55, %v4081_v13  ;;  %v314_v44 = vrot.slane %v58_v30, %v4149_v38  ;;  %v4840_v21 = vld [vmem:[#allocation2 + $0x38] sm:$0xff] }
  0x45   :  { %9211 = vst [vmem:[#allocation10_spill] sm:$0xff] %v4723_v25  ;;  %3571 = vst [vmem:[%s9015_s1 + $0x158] sm:$0x7f] %v4723_v25  ;;  %v4736_v10 = vsel %vm93_vm4, %v1778_v29, %v1371_v36  ;;  %v1786_v23 = vrot.slane %v27_v55, %v4149_v38  ;;  %v318_v15 = vrot.slane %v58_v30, %v4152_v39 }
  0x46   :  { %9212 = vst [vmem:[#allocation11_spill] sm:$0xff] %v4736_v10  ;;  %3572 = vst [vmem:[%s9015_s1 + $0x160] sm:$0x7f] %v4736_v10  ;;  %v1372_v2 = vsel %vm94_vm5, %v310_v37, %v4083_v14  ;;  %v1790_v25 = vrot.slane %v27_v55, %v4152_v39  ;;  %v322_v29 = vrot.slane %v4711_v53, %v4065_v4 }
  0x47   :  { %v1794_v36 = vrot.slane %v4709_v34, %v4065_v4  ;;  %v4755_v30 = vsel %vm93_vm4, %v1782_v0, %v1372_v2  ;;  %v1373_v10 = vsel %vm94_vm5, %v314_v44, %v4083_v14  ;;  %v1374_v37 = vsel %vm94_vm5, %v318_v15, %v4083_v14 }
  0x48   :  { %9213 = vst [vmem:[#allocation12_spill] sm:$0xff] %v4755_v30  ;;  %v326_v55 = vrot.slane %v4711_v53, %v4069_v6  ;;  %3573 = vst [vmem:[%s9015_s1 + $0x168] sm:$0x7f] %v4755_v30  ;;  %v4771_v0 = vsel %vm93_vm4, %v1786_v23, %v1373_v10  ;;  %v4775_v2 = vsel %vm93_vm4, %v1790_v25, %v1374_v37 }
  0x49   :  { %9214 = vst [vmem:[#allocation13_spill] sm:$0xff] %v4771_v0  ;;  %9215 = vst [vmem:[#allocation14_spill] sm:$0xff] %v4775_v2  ;;  %v1375_v15 = vsel %vm94_vm5, %v322_v29, %v4083_v14  ;;  %v1798_v44 = vrot.slane %v4709_v34, %v4069_v6  ;;  %v330_v23 = vrot.slane %v4711_v53, %v4072_v7 }
  0x4a   :  { %3574 = vst [vmem:[%s9015_s1 + $0x170] sm:$0x7f] %v4771_v0  ;;  %3575 = vst [vmem:[%s9015_s1 + $0x178] sm:$0x7f] %v4775_v2  ;;  %v4792_v25 = vsel %vm93_vm4, %v1794_v36, %v1375_v15  ;;  %v1376_v10 = vsel %vm94_vm5, %v326_v55, %v4083_v14  ;;  %v1802_v29 = vrot.slane %v4709_v34, %v4072_v7 }
  0x4b   :  { %9216 = vst [vmem:[#allocation15_spill] sm:$0xff] %v4792_v25  ;;  %3576 = vst [vmem:[%s9015_s1 + $0x180] sm:$0x7f] %v4792_v25  ;;  %v4807_v37 = vsel %vm93_vm4, %v1798_v44, %v1376_v10  ;;  %v334_v36 = vrot.slane %v4711_v53, %v4075_v11  ;;  %v1806_v55 = vrot.slane %v4709_v34, %v4075_v11 }
  0x4c   :  { %9217 = vst [vmem:[#allocation16_spill] sm:$0xff] %v4807_v37  ;;  %v338_v15 = vrot.slane %v4711_v53, %v4078_v12  ;;  %3577 = vst [vmem:[%s9015_s1 + $0x188] sm:$0x7f] %v4807_v37  ;;  %v1377_v25 = vsel %vm94_vm5, %v330_v23, %v4083_v14  ;;  %v1810_v44 = vrot.slane %v4709_v34, %v4078_v12 }
  0x4d   :  { %v342_v10 = vrot.slane %v4711_v53, %v4081_v13  ;;  %v1814_v2 = vrot.slane %v4709_v34, %v4081_v13  ;;  %v4830_v0 = vsel %vm93_vm4, %v1802_v29, %v1377_v25  ;;  %v1378_v37 = vsel %vm94_vm5, %v334_v36, %v4083_v14 }
  0x4e   :  { %9218 = vst [vmem:[#allocation17_spill] sm:$0xff] %v4830_v0  ;;  %v1379_v23 = vsel %vm94_vm5, %v338_v15, %v4083_v14  ;;  %v346_v30 = vrot.slane %v4711_v53, %v4149_v38  ;;  %3578 = vst [vmem:[%s9015_s1 + $0x190] sm:$0x7f] %v4830_v0  ;;  %v4848_v25 = vsel %vm93_vm4, %v1806_v55, %v1378_v37 }
  0x4f   :  { %9219 = vst [vmem:[#allocation18_spill] sm:$0xff] %v4848_v25  ;;  %v4852_v29 = vsel %vm93_vm4, %v1810_v44, %v1379_v23  ;;  %v1380_v36 = vsel %vm94_vm5, %v342_v10, %v4083_v14  ;;  %v1818_v15 = vrot.slane %v4709_v34, %v4149_v38  ;;  %3579 = vst [vmem:[%s9015_s1 + $0x198] sm:$0x7f] %v4848_v25 }
  0x50   :  { %9220 = vst [vmem:[#allocation19_spill] sm:$0xff] %v4852_v29  ;;  %3580 = vst [vmem:[%s9015_s1 + $0x1a0] sm:$0x7f] %v4852_v29  ;;  %v4869_v37 = vsel %vm93_vm4, %v1814_v2, %v1380_v36  ;;  %v1381_v55 = vsel %vm94_vm5, %v346_v30, %v4083_v14  ;;  %v350_v44 = vrot.slane %v4711_v53, %v4152_v39 }
  0x51   :  { %9221 = vst [vmem:[#allocation20_spill] sm:$0xff] %v4869_v37  ;;  %v1822_v10 = vrot.slane %v4709_v34, %v4152_v39  ;;  %3581 = vst [vmem:[%s9015_s1 + $0x1a8] sm:$0x7f] %v4869_v37  ;;  %v4884_v23 = vsel %vm93_vm4, %v1818_v15, %v1381_v55  ;;  %v354_v2 = vrot.slane %v60_v62, %v4065_v4 }
  0x52   :  { %9222 = vst [vmem:[#allocation21_spill] sm:$0xff] %v4884_v23  ;;  %v1826_v30 = vrot.slane %v4840_v21, %v4065_v4  ;;  %v358_v36 = vrot.slane %v60_v62, %v4069_v6  ;;  %3582 = vst [vmem:[%s9015_s1 + $0x1b0] sm:$0x7f] %v4884_v23  ;;  %v1382_v53 = vsel %vm94_vm5, %v350_v44, %v4083_v14 }
  0x53   :  { %v1830_v34 = vrot.slane %v4840_v21, %v4069_v6  ;;  %v362_v15 = vrot.slane %v60_v62, %v4072_v7  ;;  %v1834_v55 = vrot.slane %v4840_v21, %v4072_v7  ;;  %v4904_v37 = vsel %vm93_vm4, %v1822_v10, %v1382_v53 }
  0x54   :  { %9223 = vst [vmem:[#allocation22_spill] sm:$0xff] %v4904_v37  ;;  %v1383_v23 = vsel %vm94_vm5, %v354_v2, %v4083_v14  ;;  %v1384_v44 = vsel %vm94_vm5, %v358_v36, %v4083_v14  ;;  %v366_v29 = vrot.slane %v60_v62, %v4075_v11  ;;  %3583 = vst [vmem:[%s9015_s1 + $0x1b8] sm:$0x7f] %v4904_v37 }
  0x55   :  { %v4919_v25 = vsel %vm93_vm4, %v1826_v30, %v1383_v23  ;;  %v4923_v10 = vsel %vm93_vm4, %v1830_v34, %v1384_v44  ;;  %v1385_v2 = vsel %vm94_vm5, %v362_v15, %v4083_v14  ;;  %v1838_v36 = vrot.slane %v4840_v21, %v4075_v11  ;;  %v4948_v15 = vld [vmem:[#allocation2 + $0x130] sm:$0xff] }
  0x56   :  { %9224 = vst [vmem:[#allocation23_spill] sm:$0xff] %v4919_v25  ;;  %9225 = vst [vmem:[#allocation24_spill] sm:$0xff] %v4923_v10  ;;  %v4940_v23 = vsel %vm93_vm4, %v1834_v55, %v1385_v2  ;;  %v1386_v30 = vsel %vm94_vm5, %v366_v29, %v4083_v14  ;;  %v370_v53 = vrot.slane %v60_v62, %v4078_v12 }
  0x57   :  { %3584 = vst [vmem:[%s9015_s1 + $0x1c0] sm:$0x7f] %v4919_v25  ;;  %3585 = vst [vmem:[%s9015_s1 + $0x1c8] sm:$0x7f] %v4923_v10  ;;  %v1842_v34 = vrot.slane %v4840_v21, %v4078_v12  ;;  %v4956_v55 = vsel %vm93_vm4, %v1838_v36, %v1386_v30  ;;  %v374_v44 = vrot.slane %v60_v62, %v4081_v13  ;;  %v4962_v10 = vld [vmem:[#allocation2 + $0x40] sm:$0xff] }
  0x58   :  { %9226 = vst [vmem:[#allocation25_spill] sm:$0xff] %v4940_v23  ;;  %3586 = vst [vmem:[%s9015_s1 + $0x1d0] sm:$0x7f] %v4940_v23  ;;  %v1846_v29 = vrot.slane %v4840_v21, %v4081_v13  ;;  %v378_v2 = vrot.slane %v60_v62, %v4149_v38  ;;  %v1387_v23 = vsel %vm94_vm5, %v370_v53, %v4083_v14 }
  0x59   :  { %9227 = vst [vmem:[#allocation26_spill] sm:$0xff] %v4956_v55  ;;  %3587 = vst [vmem:[%s9015_s1 + $0x1d8] sm:$0x7f] %v4956_v55  ;;  %v1850_v36 = vrot.slane %v4840_v21, %v4149_v38  ;;  %v382_v30 = vrot.slane %v60_v62, %v4152_v39  ;;  %v1854_v25 = vrot.slane %v4840_v21, %v4152_v39 }
  0x5a   :  { %v4978_v37 = vsel %vm93_vm4, %v1842_v34, %v1387_v23  ;;  %v1388_v55 = vsel %vm94_vm5, %v374_v44, %v4083_v14  ;;  %v1389_v53 = vsel %vm94_vm5, %v378_v2, %v4083_v14  ;;  %v386_v0 = vrot.slane %v4948_v15, %v4065_v4 }
  0x5b   :  { %9228 = vst [vmem:[#allocation27_spill] sm:$0xff] %v4978_v37  ;;  %3588 = vst [vmem:[%s9015_s1 + $0x1e0] sm:$0x7f] %v4978_v37  ;;  %v4994_v21 = vsel %vm93_vm4, %v1846_v29, %v1388_v55  ;;  %v4998_v62 = vsel %vm93_vm4, %v1850_v36, %v1389_v53  ;;  %v1390_v23 = vsel %vm94_vm5, %v382_v30, %v4083_v14  ;;  %v31_v37 = vld [vmem:[#allocation2 + $0x48] sm:$0xff] }
  0x5c   :  { %9229 = vst [vmem:[#allocation28_spill] sm:$0xff] %v4994_v21  ;;  %9230 = vst [vmem:[#allocation29_spill] sm:$0xff] %v4998_v62  ;;  %v1858_v34 = vrot.slane %v4962_v10, %v4065_v4  ;;  %v5015_v55 = vsel %vm93_vm4, %v1854_v25, %v1390_v23  ;;  %v1391_v44 = vsel %vm94_vm5, %v386_v0, %v4083_v14 }
  0x5d   :  { %3589 = vst [vmem:[%s9015_s1 + $0x1e8] sm:$0x7f] %v4994_v21  ;;  %3590 = vst [vmem:[%s9015_s1 + $0x1f0] sm:$0x7f] %v4998_v62  ;;  %v390_v29 = vrot.slane %v4948_v15, %v4069_v6  ;;  %v1862_v2 = vrot.slane %v4962_v10, %v4069_v6  ;;  %v394_v25 = vrot.slane %v4948_v15, %v4072_v7  ;;  %v5063_v21 = vld [vmem:[#allocation2 + $0x138] sm:$0xff] }
  0x5e   :  { %9231 = vst [vmem:[#allocation30_spill] sm:$0xff] %v5015_v55  ;;  %3591 = vst [vmem:[%s9015_s1 + $0x1f8] sm:$0x7f] %v5015_v55  ;;  %v5030_v36 = vsel %vm93_vm4, %v1858_v34, %v1391_v44  ;;  %v1866_v0 = vrot.slane %v4962_v10, %v4072_v7  ;;  %v398_v30 = vrot.slane %v4948_v15, %v4075_v11 }
  0x5f   :  { %9232 = vst [vmem:[#allocation31_spill] sm:$0xff] %v5030_v36  ;;  %3592 = vst [vmem:[%s9015_s1 + $0x200] sm:$0x7f] %v5030_v36  ;;  %v1392_v53 = vsel %vm94_vm5, %v390_v29, %v4083_v14  ;;  %v1870_v23 = vrot.slane %v4962_v10, %v4075_v11  ;;  %v402_v34 = vrot.slane %v4948_v15, %v4078_v12 }
  0x60   :  { %v1874_v44 = vrot.slane %v4962_v10, %v4078_v12  ;;  %v5053_v55 = vsel %vm93_vm4, %v1862_v2, %v1392_v53  ;;  %v1393_v36 = vsel %vm94_vm5, %v394_v25, %v4083_v14  ;;  %v1394_v29 = vsel %vm94_vm5, %v398_v30, %v4083_v14 }
  0x61   :  { %9233 = vst [vmem:[#allocation32_spill] sm:$0xff] %v5053_v55  ;;  %v406_v62 = vrot.slane %v4948_v15, %v4081_v13  ;;  %3593 = vst [vmem:[%s9015_s1 + $0x208] sm:$0x7f] %v5053_v55  ;;  %v5071_v2 = vsel %vm93_vm4, %v1866_v0, %v1393_v36  ;;  %v5075_v25 = vsel %vm93_vm4, %v1870_v23, %v1394_v29 }
  0x62   :  { %9234 = vst [vmem:[#allocation33_spill] sm:$0xff] %v5071_v2  ;;  %9235 = vst [vmem:[#allocation34_spill] sm:$0xff] %v5075_v25  ;;  %v1395_v30 = vsel %vm94_vm5, %v402_v34, %v4083_v14  ;;  %v1878_v53 = vrot.slane %v4962_v10, %v4081_v13  ;;  %v410_v23 = vrot.slane %v4948_v15, %v4149_v38 }
  0x63   :  { %3594 = vst [vmem:[%s9015_s1 + $0x210] sm:$0x7f] %v5071_v2  ;;  %3595 = vst [vmem:[%s9015_s1 + $0x218] sm:$0x7f] %v5075_v25  ;;  %v5092_v36 = vsel %vm93_vm4, %v1874_v44, %v1395_v30  ;;  %v1396_v0 = vsel %vm94_vm5, %v406_v62, %v4083_v14  ;;  %v1882_v34 = vrot.slane %v4962_v10, %v4149_v38 }
  0x64   :  { %9236 = vst [vmem:[#allocation35_spill] sm:$0xff] %v5092_v36  ;;  %3596 = vst [vmem:[%s9015_s1 + $0x220] sm:$0x7f] %v5092_v36  ;;  %v5107_v29 = vsel %vm93_vm4, %v1878_v53, %v1396_v0  ;;  %v414_v44 = vrot.slane %v4948_v15, %v4152_v39  ;;  %v1886_v62 = vrot.slane %v4962_v10, %v4152_v39 }
  0x65   :  { %9237 = vst [vmem:[#allocation36_spill] sm:$0xff] %v5107_v29  ;;  %v418_v30 = vrot.slane %v5063_v21, %v4065_v4  ;;  %3597 = vst [vmem:[%s9015_s1 + $0x228] sm:$0x7f] %v5107_v29  ;;  %v1397_v36 = vsel %vm94_vm5, %v410_v23, %v4083_v14  ;;  %v1890_v53 = vrot.slane %v31_v37, %v4065_v4 }
  0x66   :  { %v422_v15 = vrot.slane %v5063_v21, %v4069_v6  ;;  %v1894_v0 = vrot.slane %v31_v37, %v4069_v6  ;;  %v5128_v10 = vsel %vm93_vm4, %v1882_v34, %v1397_v36  ;;  %v1398_v25 = vsel %vm94_vm5, %v414_v44, %v4083_v14 }
  0x67   :  { %9238 = vst [vmem:[#allocation37_spill] sm:$0xff] %v5128_v10  ;;  %v1399_v29 = vsel %vm94_vm5, %v418_v30, %v4083_v14  ;;  %v426_v23 = vrot.slane %v5063_v21, %v4072_v7  ;;  %3598 = vst [vmem:[%s9015_s1 + $0x230] sm:$0x7f] %v5128_v10  ;;  %v5144_v36 = vsel %vm93_vm4, %v1886_v62, %v1398_v25  ;;  %v63_v10 = vld [vmem:[#allocation2 + $0x140] sm:$0xff] }
  0x68   :  { %9239 = vst [vmem:[#allocation38_spill] sm:$0xff] %v5144_v36  ;;  %v5148_v34 = vsel %vm93_vm4, %v1890_v53, %v1399_v29  ;;  %v1400_v44 = vsel %vm94_vm5, %v422_v15, %v4083_v14  ;;  %v1898_v30 = vrot.slane %v31_v37, %v4072_v7  ;;  %3599 = vst [vmem:[%s9015_s1 + $0x238] sm:$0x7f] %v5144_v36  ;;  %v32_v36 = vld [vmem:[#allocation2 + $0x50] sm:$0xff] }
  0x69   :  { %9240 = vst [vmem:[#allocation39_spill] sm:$0xff] %v5148_v34  ;;  %3600 = vst [vmem:[%s9015_s1 + $0x240] sm:$0x7f] %v5148_v34  ;;  %v5164_v25 = vsel %vm93_vm4, %v1894_v0, %v1400_v44  ;;  %v1401_v29 = vsel %vm94_vm5, %v426_v23, %v4083_v14  ;;  %v430_v62 = vrot.slane %v5063_v21, %v4075_v11 }
  0x6a   :  { %9241 = vst [vmem:[#allocation40_spill] sm:$0xff] %v5164_v25  ;;  %v1902_v53 = vrot.slane %v31_v37, %v4075_v11  ;;  %3601 = vst [vmem:[%s9015_s1 + $0x248] sm:$0x7f] %v5164_v25  ;;  %v5178_v15 = vsel %vm93_vm4, %v1898_v30, %v1401_v29  ;;  %v434_v0 = vrot.slane %v5063_v21, %v4078_v12 }
  0x6b   :  { %9242 = vst [vmem:[#allocation41_spill] sm:$0xff] %v5178_v15  ;;  %v1906_v44 = vrot.slane %v31_v37, %v4078_v12  ;;  %v438_v23 = vrot.slane %v5063_v21, %v4081_v13  ;;  %3602 = vst [vmem:[%s9015_s1 + $0x250] sm:$0x7f] %v5178_v15  ;;  %v1402_v25 = vsel %vm94_vm5, %v430_v62, %v4083_v14 }
  0x6c   :  { %v1910_v30 = vrot.slane %v31_v37, %v4081_v13  ;;  %v442_v29 = vrot.slane %v5063_v21, %v4149_v38  ;;  %v1914_v34 = vrot.slane %v31_v37, %v4149_v38  ;;  %v5198_v2 = vsel %vm93_vm4, %v1902_v53, %v1402_v25 }
  0x6d   :  { %9243 = vst [vmem:[#allocation42_spill] sm:$0xff] %v5198_v2  ;;  %v1403_v15 = vsel %vm94_vm5, %v434_v0, %v4083_v14  ;;  %v1404_v62 = vsel %vm94_vm5, %v438_v23, %v4083_v14  ;;  %v446_v55 = vrot.slane %v5063_v21, %v4152_v39  ;;  %3603 = vst [vmem:[%s9015_s1 + $0x258] sm:$0x7f] %v5198_v2  ;;  %v5291_v2 = vld [vmem:[#allocation2 + $0x148] sm:$0xff] }
  0x6e   :  { %v5214_v25 = vsel %vm93_vm4, %v1906_v44, %v1403_v15  ;;  %v5218_v53 = vsel %vm93_vm4, %v1910_v30, %v1404_v62  ;;  %v1405_v0 = vsel %vm94_vm5, %v442_v29, %v4083_v14  ;;  %v1918_v23 = vrot.slane %v31_v37, %v4152_v39 }
  0x6f   :  { %9244 = vst [vmem:[#allocation43_spill] sm:$0xff] %v5214_v25  ;;  %9245 = vst [vmem:[#allocation44_spill] sm:$0xff] %v5218_v53  ;;  %v5234_v21 = vsel %vm93_vm4, %v1914_v34, %v1405_v0  ;;  %v1406_v15 = vsel %vm94_vm5, %v446_v55, %v4083_v14  ;;  %v450_v37 = vrot.slane %v63_v10, %v4065_v4 }
  0x70   :  { %3604 = vst [vmem:[%s9015_s1 + $0x260] sm:$0x7f] %v5214_v25  ;;  %3605 = vst [vmem:[%s9015_s1 + $0x268] sm:$0x7f] %v5218_v53  ;;  %v1922_v44 = vrot.slane %v32_v36, %v4065_v4  ;;  %v5247_v30 = vsel %vm93_vm4, %v1918_v23, %v1406_v15  ;;  %v454_v34 = vrot.slane %v63_v10, %v4069_v6 }
  0x71   :  { %9246 = vst [vmem:[#allocation45_spill] sm:$0xff] %v5234_v21  ;;  %3606 = vst [vmem:[%s9015_s1 + $0x270] sm:$0x7f] %v5234_v21  ;;  %v1926_v29 = vrot.slane %v32_v36, %v4069_v6  ;;  %v458_v62 = vrot.slane %v63_v10, %v4072_v7  ;;  %v1407_v55 = vsel %vm94_vm5, %v450_v37, %v4083_v14 }
  0x72   :  { %9247 = vst [vmem:[#allocation46_spill] sm:$0xff] %v5247_v30  ;;  %3607 = vst [vmem:[%s9015_s1 + $0x278] sm:$0x7f] %v5247_v30  ;;  %v1930_v0 = vrot.slane %v32_v36, %v4072_v7  ;;  %v462_v23 = vrot.slane %v63_v10, %v4075_v11  ;;  %v1934_v15 = vrot.slane %v32_v36, %v4075_v11 }
  0x73   :  { %v5264_v21 = vsel %vm93_vm4, %v1922_v44, %v1407_v55  ;;  %v1408_v53 = vsel %vm94_vm5, %v454_v34, %v4083_v14  ;;  %v1409_v30 = vsel %vm94_vm5, %v458_v62, %v4083_v14  ;;  %v466_v37 = vrot.slane %v63_v10, %v4078_v12  ;;  %v5289_v55 = vld [vmem:[#allocation2 + $0x58] sm:$0xff] }
  0x74   :  { %9248 = vst [vmem:[#allocation47_spill] sm:$0xff] %v5264_v21  ;;  %3608 = vst [vmem:[%s9015_s1 + $0x280] sm:$0x7f] %v5264_v21  ;;  %v5279_v25 = vsel %vm93_vm4, %v1926_v29, %v1408_v53  ;;  %v5283_v44 = vsel %vm93_vm4, %v1930_v0, %v1409_v30  ;;  %v1410_v34 = vsel %vm94_vm5, %v462_v23, %v4083_v14  ;;  %v65_v21 = vld [vmem:[#allocation2 + $0x150] sm:$0xff] }
  0x75   :  { %9249 = vst [vmem:[#allocation48_spill] sm:$0xff] %v5279_v25  ;;  %9250 = vst [vmem:[#allocation49_spill] sm:$0xff] %v5283_v44  ;;  %v1938_v62 = vrot.slane %v32_v36, %v4078_v12  ;;  %v5303_v53 = vsel %vm93_vm4, %v1934_v15, %v1410_v34  ;;  %v1411_v30 = vsel %vm94_vm5, %v466_v37, %v4083_v14 }
  0x76   :  { %3609 = vst [vmem:[%s9015_s1 + $0x288] sm:$0x7f] %v5279_v25  ;;  %3610 = vst [vmem:[%s9015_s1 + $0x290] sm:$0x7f] %v5283_v44  ;;  %v470_v29 = vrot.slane %v63_v10, %v4081_v13  ;;  %v1942_v0 = vrot.slane %v32_v36, %v4081_v13  ;;  %v474_v15 = vrot.slane %v63_v10, %v4149_v38  ;;  %v5420_v25 = vld [vmem:[#allocation2 + $0x60] sm:$0xff] }
  0x77   :  { %9251 = vst [vmem:[#allocation50_spill] sm:$0xff] %v5303_v53  ;;  %3611 = vst [vmem:[%s9015_s1 + $0x298] sm:$0x7f] %v5303_v53  ;;  %v5316_v23 = vsel %vm93_vm4, %v1938_v62, %v1411_v30  ;;  %v1946_v34 = vrot.slane %v32_v36, %v4149_v38  ;;  %v478_v44 = vrot.slane %v63_v10, %v4152_v39 }
  0x78   :  { %9252 = vst [vmem:[#allocation51_spill] sm:$0xff] %v5316_v23  ;;  %3612 = vst [vmem:[%s9015_s1 + $0x2a0] sm:$0x7f] %v5316_v23  ;;  %v1412_v37 = vsel %vm94_vm5, %v470_v29, %v4083_v14  ;;  %v1950_v53 = vrot.slane %v32_v36, %v4152_v39  ;;  %v482_v62 = vrot.slane %v5291_v2, %v4065_v4 }
  0x79   :  { %v1954_v30 = vrot.slane %v5289_v55, %v4065_v4  ;;  %v5335_v10 = vsel %vm93_vm4, %v1942_v0, %v1412_v37  ;;  %v1413_v23 = vsel %vm94_vm5, %v474_v15, %v4083_v14  ;;  %v1414_v29 = vsel %vm94_vm5, %v478_v44, %v4083_v14 }
  0x7a   :  { %9253 = vst [vmem:[#allocation52_spill] sm:$0xff] %v5335_v10  ;;  %v486_v36 = vrot.slane %v5291_v2, %v4069_v6  ;;  %3613 = vst [vmem:[%s9015_s1 + $0x2a8] sm:$0x7f] %v5335_v10  ;;  %v5351_v0 = vsel %vm93_vm4, %v1946_v34, %v1413_v23  ;;  %v5355_v37 = vsel %vm93_vm4, %v1950_v53, %v1414_v29 }
  0x7b   :  { %9254 = vst [vmem:[#allocation53_spill] sm:$0xff] %v5351_v0  ;;  %9255 = vst [vmem:[#allocation54_spill] sm:$0xff] %v5355_v37  ;;  %v1415_v44 = vsel %vm94_vm5, %v482_v62, %v4083_v14  ;;  %v1958_v15 = vrot.slane %v5289_v55, %v4069_v6  ;;  %v490_v34 = vrot.slane %v5291_v2, %v4072_v7 }
  0x7c   :  { %3614 = vst [vmem:[%s9015_s1 + $0x2b0] sm:$0x7f] %v5351_v0  ;;  %3615 = vst [vmem:[%s9015_s1 + $0x2b8] sm:$0x7f] %v5355_v37  ;;  %v5372_v53 = vsel %vm93_vm4, %v1954_v30, %v1415_v44  ;;  %v1416_v23 = vsel %vm94_vm5, %v486_v36, %v4083_v14  ;;  %v1962_v62 = vrot.slane %v5289_v55, %v4072_v7 }
  0x7d   :  { %9256 = vst [vmem:[#allocation55_spill] sm:$0xff] %v5372_v53  ;;  %3616 = vst [vmem:[%s9015_s1 + $0x2c0] sm:$0x7f] %v5372_v53  ;;  %v5387_v29 = vsel %vm93_vm4, %v1958_v15, %v1416_v23  ;;  %v494_v30 = vrot.slane %v5291_v2, %v4075_v11  ;;  %v1966_v36 = vrot.slane %v5289_v55, %v4075_v11 }
  0x7e   :  { %9257 = vst [vmem:[#allocation56_spill] sm:$0xff] %v5387_v29  ;;  %v498_v44 = vrot.slane %v5291_v2, %v4078_v12  ;;  %3617 = vst [vmem:[%s9015_s1 + $0x2c8] sm:$0x7f] %v5387_v29  ;;  %v1417_v53 = vsel %vm94_vm5, %v490_v34, %v4083_v14  ;;  %v1970_v15 = vrot.slane %v5289_v55, %v4078_v12 }
  0x7f   :  { %v502_v23 = vrot.slane %v5291_v2, %v4081_v13  ;;  %v1974_v37 = vrot.slane %v5289_v55, %v4081_v13  ;;  %v5410_v0 = vsel %vm93_vm4, %v1962_v62, %v1417_v53  ;;  %v1418_v29 = vsel %vm94_vm5, %v494_v30, %v4083_v14 }
  0x80   :  { %9258 = vst [vmem:[#allocation57_spill] sm:$0xff] %v5410_v0  ;;  %v1419_v34 = vsel %vm94_vm5, %v498_v44, %v4083_v14  ;;  %v506_v10 = vrot.slane %v5291_v2, %v4149_v38  ;;  %3618 = vst [vmem:[%s9015_s1 + $0x2d0] sm:$0x7f] %v5410_v0  ;;  %v5428_v53 = vsel %vm93_vm4, %v1966_v36, %v1418_v29 }
  0x81   :  { %9259 = vst [vmem:[#allocation58_spill] sm:$0xff] %v5428_v53  ;;  %v5432_v62 = vsel %vm93_vm4, %v1970_v15, %v1419_v34  ;;  %v1420_v30 = vsel %vm94_vm5, %v502_v23, %v4083_v14  ;;  %v1978_v44 = vrot.slane %v5289_v55, %v4149_v38  ;;  %3619 = vst [vmem:[%s9015_s1 + $0x2d8] sm:$0x7f] %v5428_v53 }
  0x82   :  { %9260 = vst [vmem:[#allocation59_spill] sm:$0xff] %v5432_v62  ;;  %3620 = vst [vmem:[%s9015_s1 + $0x2e0] sm:$0x7f] %v5432_v62  ;;  %v5449_v29 = vsel %vm93_vm4, %v1974_v37, %v1420_v30  ;;  %v1421_v36 = vsel %vm94_vm5, %v506_v10, %v4083_v14  ;;  %v510_v15 = vrot.slane %v5291_v2, %v4152_v39 }
  0x83   :  { %9261 = vst [vmem:[#allocation60_spill] sm:$0xff] %v5449_v29  ;;  %v1982_v23 = vrot.slane %v5289_v55, %v4152_v39  ;;  %3621 = vst [vmem:[%s9015_s1 + $0x2e8] sm:$0x7f] %v5449_v29  ;;  %v5464_v34 = vsel %vm93_vm4, %v1978_v44, %v1421_v36  ;;  %v514_v37 = vrot.slane %v65_v21, %v4065_v4 }
  0x84   :  { %9262 = vst [vmem:[#allocation61_spill] sm:$0xff] %v5464_v34  ;;  %v1986_v10 = vrot.slane %v5420_v25, %v4065_v4  ;;  %v518_v30 = vrot.slane %v65_v21, %v4069_v6  ;;  %3622 = vst [vmem:[%s9015_s1 + $0x2f0] sm:$0x7f] %v5464_v34  ;;  %v1422_v2 = vsel %vm94_vm5, %v510_v15, %v4083_v14 }
  0x85   :  { %v1990_v55 = vrot.slane %v5420_v25, %v4069_v6  ;;  %v522_v44 = vrot.slane %v65_v21, %v4072_v7  ;;  %v1994_v36 = vrot.slane %v5420_v25, %v4072_v7  ;;  %v5484_v29 = vsel %vm93_vm4, %v1982_v23, %v1422_v2 }
  0x86   :  { %9263 = vst [vmem:[#allocation62_spill] sm:$0xff] %v5484_v29  ;;  %v1423_v34 = vsel %vm94_vm5, %v514_v37, %v4083_v14  ;;  %v1424_v15 = vsel %vm94_vm5, %v518_v30, %v4083_v14  ;;  %v526_v62 = vrot.slane %v65_v21, %v4075_v11  ;;  %3623 = vst [vmem:[%s9015_s1 + $0x2f8] sm:$0x7f] %v5484_v29 }
  0x87   :  { %v5499_v53 = vsel %vm93_vm4, %v1986_v10, %v1423_v34  ;;  %v5503_v23 = vsel %vm93_vm4, %v1990_v55, %v1424_v15  ;;  %v1425_v37 = vsel %vm94_vm5, %v522_v44, %v4083_v14  ;;  %v1998_v30 = vrot.slane %v5420_v25, %v4075_v11  ;;  %v5528_v44 = vld [vmem:[#allocation2 + $0x158] sm:$0xff] }
  0x88   :  { %9264 = vst [vmem:[#allocation63_spill] sm:$0xff] %v5499_v53  ;;  %9265 = vst [vmem:[#allocation64_spill] sm:$0xff] %v5503_v23  ;;  %v5520_v34 = vsel %vm93_vm4, %v1994_v36, %v1425_v37  ;;  %v1426_v10 = vsel %vm94_vm5, %v526_v62, %v4083_v14  ;;  %v530_v2 = vrot.slane %v65_v21, %v4078_v12 }
  0x89   :  { %3624 = vst [vmem:[%s9015_s1 + $0x300] sm:$0x7f] %v5499_v53  ;;  %3625 = vst [vmem:[%s9015_s1 + $0x308] sm:$0x7f] %v5503_v23  ;;  %v2002_v55 = vrot.slane %v5420_v25, %v4078_v12  ;;  %v5536_v36 = vsel %vm93_vm4, %v1998_v30, %v1426_v10  ;;  %v534_v15 = vrot.slane %v65_v21, %v4081_v13  ;;  %v5542_v23 = vld [vmem:[#allocation2 + $0x68] sm:$0xff] }
  0x8a   :  { %9266 = vst [vmem:[#allocation65_spill] sm:$0xff] %v5520_v34  ;;  %3626 = vst [vmem:[%s9015_s1 + $0x310] sm:$0x7f] %v5520_v34  ;;  %v2006_v62 = vrot.slane %v5420_v25, %v4081_v13  ;;  %v538_v37 = vrot.slane %v65_v21, %v4149_v38  ;;  %v1427_v34 = vsel %vm94_vm5, %v530_v2, %v4083_v14 }
  0x8b   :  { %9267 = vst [vmem:[#allocation66_spill] sm:$0xff] %v5536_v36  ;;  %3627 = vst [vmem:[%s9015_s1 + $0x318] sm:$0x7f] %v5536_v36  ;;  %v2010_v30 = vrot.slane %v5420_v25, %v4149_v38  ;;  %v542_v10 = vrot.slane %v65_v21, %v4152_v39  ;;  %v2014_v53 = vrot.slane %v5420_v25, %v4152_v39 }
  0x8c   :  { %v5558_v29 = vsel %vm93_vm4, %v2002_v55, %v1427_v34  ;;  %v1428_v36 = vsel %vm94_vm5, %v534_v15, %v4083_v14  ;;  %v1429_v2 = vsel %vm94_vm5, %v538_v37, %v4083_v14  ;;  %v546_v0 = vrot.slane %v5528_v44, %v4065_v4 }
  0x8d   :  { %9268 = vst [vmem:[#allocation67_spill] sm:$0xff] %v5558_v29  ;;  %3628 = vst [vmem:[%s9015_s1 + $0x320] sm:$0x7f] %v5558_v29  ;;  %v5574_v25 = vsel %vm93_vm4, %v2006_v62, %v1428_v36  ;;  %v5578_v21 = vsel %vm93_vm4, %v2010_v30, %v1429_v2  ;;  %v1430_v34 = vsel %vm94_vm5, %v542_v10, %v4083_v14  ;;  %v36_v29 = vld [vmem:[#allocation2 + $0x70] sm:$0xff] }
  0x8e   :  { %9269 = vst [vmem:[#allocation68_spill] sm:$0xff] %v5574_v25  ;;  %9270 = vst [vmem:[#allocation69_spill] sm:$0xff] %v5578_v21  ;;  %v2018_v55 = vrot.slane %v5542_v23, %v4065_v4  ;;  %v5595_v36 = vsel %vm93_vm4, %v2014_v53, %v1430_v34  ;;  %v1431_v15 = vsel %vm94_vm5, %v546_v0, %v4083_v14 }
  0x8f   :  { %3629 = vst [vmem:[%s9015_s1 + $0x328] sm:$0x7f] %v5574_v25  ;;  %3630 = vst [vmem:[%s9015_s1 + $0x330] sm:$0x7f] %v5578_v21  ;;  %v550_v62 = vrot.slane %v5528_v44, %v4069_v6  ;;  %v2022_v37 = vrot.slane %v5542_v23, %v4069_v6  ;;  %v554_v53 = vrot.slane %v5528_v44, %v4072_v7  ;;  %v5643_v25 = vld [vmem:[#allocation2 + $0x160] sm:$0xff] }
  0x90   :  { %9271 = vst [vmem:[#allocation70_spill] sm:$0xff] %v5595_v36  ;;  %3631 = vst [vmem:[%s9015_s1 + $0x338] sm:$0x7f] %v5595_v36  ;;  %v5610_v30 = vsel %vm93_vm4, %v2018_v55, %v1431_v15  ;;  %v2026_v0 = vrot.slane %v5542_v23, %v4072_v7  ;;  %v558_v10 = vrot.slane %v5528_v44, %v4075_v11 }
  0x91   :  { %9272 = vst [vmem:[#allocation71_spill] sm:$0xff] %v5610_v30  ;;  %3632 = vst [vmem:[%s9015_s1 + $0x340] sm:$0x7f] %v5610_v30  ;;  %v1432_v2 = vsel %vm94_vm5, %v550_v62, %v4083_v14  ;;  %v2030_v34 = vrot.slane %v5542_v23, %v4075_v11  ;;  %v562_v55 = vrot.slane %v5528_v44, %v4078_v12 }
  0x92   :  { %v2034_v15 = vrot.slane %v5542_v23, %v4078_v12  ;;  %v5633_v36 = vsel %vm93_vm4, %v2022_v37, %v1432_v2  ;;  %v1433_v30 = vsel %vm94_vm5, %v554_v53, %v4083_v14  ;;  %v1434_v62 = vsel %vm94_vm5, %v558_v10, %v4083_v14 }
  0x93   :  { %9273 = vst [vmem:[#allocation72_spill] sm:$0xff] %v5633_v36  ;;  %v566_v21 = vrot.slane %v5528_v44, %v4081_v13  ;;  %3633 = vst [vmem:[%s9015_s1 + $0x348] sm:$0x7f] %v5633_v36  ;;  %v5651_v37 = vsel %vm93_vm4, %v2026_v0, %v1433_v30  ;;  %v5655_v53 = vsel %vm93_vm4, %v2030_v34, %v1434_v62 }
  0x94   :  { %9274 = vst [vmem:[#allocation73_spill] sm:$0xff] %v5651_v37  ;;  %9275 = vst [vmem:[#allocation74_spill] sm:$0xff] %v5655_v53  ;;  %v1435_v10 = vsel %vm94_vm5, %v562_v55, %v4083_v14  ;;  %v2038_v2 = vrot.slane %v5542_v23, %v4081_v13  ;;  %v570_v34 = vrot.slane %v5528_v44, %v4149_v38 }
  0x95   :  { %3634 = vst [vmem:[%s9015_s1 + $0x350] sm:$0x7f] %v5651_v37  ;;  %3635 = vst [vmem:[%s9015_s1 + $0x358] sm:$0x7f] %v5655_v53  ;;  %v5672_v30 = vsel %vm93_vm4, %v2034_v15, %v1435_v10  ;;  %v1436_v0 = vsel %vm94_vm5, %v566_v21, %v4083_v14  ;;  %v2042_v55 = vrot.slane %v5542_v23, %v4149_v38 }
  0x96   :  { %9276 = vst [vmem:[#allocation75_spill] sm:$0xff] %v5672_v30  ;;  %3636 = vst [vmem:[%s9015_s1 + $0x360] sm:$0x7f] %v5672_v30  ;;  %v5687_v62 = vsel %vm93_vm4, %v2038_v2, %v1436_v0  ;;  %v574_v15 = vrot.slane %v5528_v44, %v4152_v39  ;;  %v2046_v21 = vrot.slane %v5542_v23, %v4152_v39 }
  0x97   :  { %9277 = vst [vmem:[#allocation76_spill] sm:$0xff] %v5687_v62  ;;  %v578_v10 = vrot.slane %v5643_v25, %v4065_v4  ;;  %3637 = vst [vmem:[%s9015_s1 + $0x368] sm:$0x7f] %v5687_v62  ;;  %v1437_v30 = vsel %vm94_vm5, %v570_v34, %v4083_v14  ;;  %v2050_v2 = vrot.slane %v36_v29, %v4065_v4 }
  0x98   :  { %v582_v44 = vrot.slane %v5643_v25, %v4069_v6  ;;  %v2054_v0 = vrot.slane %v36_v29, %v4069_v6  ;;  %v5708_v23 = vsel %vm93_vm4, %v2042_v55, %v1437_v30  ;;  %v1438_v53 = vsel %vm94_vm5, %v574_v15, %v4083_v14 }
  0x99   :  { %9278 = vst [vmem:[#allocation77_spill] sm:$0xff] %v5708_v23  ;;  %v1439_v62 = vsel %vm94_vm5, %v578_v10, %v4083_v14  ;;  %v586_v34 = vrot.slane %v5643_v25, %v4072_v7  ;;  %3638 = vst [vmem:[%s9015_s1 + $0x370] sm:$0x7f] %v5708_v23  ;;  %v5724_v30 = vsel %vm93_vm4, %v2046_v21, %v1438_v53  ;;  %v68_v23 = vld [vmem:[#allocation2 + $0x168] sm:$0xff] }
  0x9a   :  { %9279 = vst [vmem:[#allocation78_spill] sm:$0xff] %v5724_v30  ;;  %v5728_v55 = vsel %vm93_vm4, %v2050_v2, %v1439_v62  ;;  %v1440_v15 = vsel %vm94_vm5, %v582_v44, %v4083_v14  ;;  %v2058_v10 = vrot.slane %v36_v29, %v4072_v7  ;;  %3639 = vst [vmem:[%s9015_s1 + $0x378] sm:$0x7f] %v5724_v30  ;;  %v37_v30 = vld [vmem:[#allocation2 + $0x78] sm:$0xff] }
  0x9b   :  { %9280 = vst [vmem:[#allocation79_spill] sm:$0xff] %v5728_v55  ;;  %3640 = vst [vmem:[%s9015_s1 + $0x380] sm:$0x7f] %v5728_v55  ;;  %v5744_v53 = vsel %vm93_vm4, %v2054_v0, %v1440_v15  ;;  %v1441_v62 = vsel %vm94_vm5, %v586_v34, %v4083_v14  ;;  %v590_v21 = vrot.slane %v5643_v25, %v4075_v11 }
  0x9c   :  { %9281 = vst [vmem:[#allocation80_spill] sm:$0xff] %v5744_v53  ;;  %v2062_v2 = vrot.slane %v36_v29, %v4075_v11  ;;  %3641 = vst [vmem:[%s9015_s1 + $0x388] sm:$0x7f] %v5744_v53  ;;  %v5758_v44 = vsel %vm93_vm4, %v2058_v10, %v1441_v62  ;;  %v594_v0 = vrot.slane %v5643_v25, %v4078_v12 }
  0x9d   :  { %9282 = vst [vmem:[#allocation81_spill] sm:$0xff] %v5758_v44  ;;  %v2066_v15 = vrot.slane %v36_v29, %v4078_v12  ;;  %v598_v34 = vrot.slane %v5643_v25, %v4081_v13  ;;  %3642 = vst [vmem:[%s9015_s1 + $0x390] sm:$0x7f] %v5758_v44  ;;  %v1442_v53 = vsel %vm94_vm5, %v590_v21, %v4083_v14 }
  0x9e   :  { %v2070_v10 = vrot.slane %v36_v29, %v4081_v13  ;;  %v602_v62 = vrot.slane %v5643_v25, %v4149_v38  ;;  %v2074_v55 = vrot.slane %v36_v29, %v4149_v38  ;;  %v5778_v37 = vsel %vm93_vm4, %v2062_v2, %v1442_v53 }
  0x9f   :  { %9283 = vst [vmem:[#allocation82_spill] sm:$0xff] %v5778_v37  ;;  %v1443_v44 = vsel %vm94_vm5, %v594_v0, %v4083_v14  ;;  %v1444_v21 = vsel %vm94_vm5, %v598_v34, %v4083_v14  ;;  %v606_v36 = vrot.slane %v5643_v25, %v4152_v39  ;;  %3643 = vst [vmem:[%s9015_s1 + $0x398] sm:$0x7f] %v5778_v37  ;;  %v5871_v37 = vld [vmem:[#allocation2 + $0x170] sm:$0xff] }
  0xa0   :  { %v5794_v53 = vsel %vm93_vm4, %v2066_v15, %v1443_v44  ;;  %v5798_v2 = vsel %vm93_vm4, %v2070_v10, %v1444_v21  ;;  %v1445_v0 = vsel %vm94_vm5, %v602_v62, %v4083_v14  ;;  %v2078_v34 = vrot.slane %v36_v29, %v4152_v39 }
  0xa1   :  { %9284 = vst [vmem:[#allocation83_spill] sm:$0xff] %v5794_v53  ;;  %9285 = vst [vmem:[#allocation84_spill] sm:$0xff] %v5798_v2  ;;  %v5814_v25 = vsel %vm93_vm4, %v2074_v55, %v1445_v0  ;;  %v1446_v44 = vsel %vm94_vm5, %v606_v36, %v4083_v14  ;;  %v610_v29 = vrot.slane %v68_v23, %v4065_v4 }
  0xa2   :  { %3644 = vst [vmem:[%s9015_s1 + $0x3a0] sm:$0x7f] %v5794_v53  ;;  %3645 = vst [vmem:[%s9015_s1 + $0x3a8] sm:$0x7f] %v5798_v2  ;;  %v2082_v15 = vrot.slane %v37_v30, %v4065_v4  ;;  %v5827_v10 = vsel %vm93_vm4, %v2078_v34, %v1446_v44  ;;  %v614_v55 = vrot.slane %v68_v23, %v4069_v6 }
  0xa3   :  { %9286 = vst [vmem:[#allocation85_spill] sm:$0xff] %v5814_v25  ;;  %3646 = vst [vmem:[%s9015_s1 + $0x3b0] sm:$0x7f] %v5814_v25  ;;  %v2086_v62 = vrot.slane %v37_v30, %v4069_v6  ;;  %v618_v21 = vrot.slane %v68_v23, %v4072_v7  ;;  %v1447_v36 = vsel %vm94_vm5, %v610_v29, %v4083_v14 }
  0xa4   :  { %9287 = vst [vmem:[#allocation86_spill] sm:$0xff] %v5827_v10  ;;  %3647 = vst [vmem:[%s9015_s1 + $0x3b8] sm:$0x7f] %v5827_v10  ;;  %v2090_v0 = vrot.slane %v37_v30, %v4072_v7  ;;  %v622_v34 = vrot.slane %v68_v23, %v4075_v11  ;;  %v2094_v44 = vrot.slane %v37_v30, %v4075_v11 }
  0xa5   :  { %v5844_v25 = vsel %vm93_vm4, %v2082_v15, %v1447_v36  ;;  %v1448_v2 = vsel %vm94_vm5, %v614_v55, %v4083_v14  ;;  %v1449_v10 = vsel %vm94_vm5, %v618_v21, %v4083_v14  ;;  %v626_v29 = vrot.slane %v68_v23, %v4078_v12  ;;  %v5869_v36 = vld [vmem:[#allocation2 + $0x80] sm:$0xff] }
  0xa6   :  { %9288 = vst [vmem:[#allocation87_spill] sm:$0xff] %v5844_v25  ;;  %3648 = vst [vmem:[%s9015_s1 + $0x3c0] sm:$0x7f] %v5844_v25  ;;  %v5859_v53 = vsel %vm93_vm4, %v2086_v62, %v1448_v2  ;;  %v5863_v15 = vsel %vm93_vm4, %v2090_v0, %v1449_v10  ;;  %v1450_v55 = vsel %vm94_vm5, %v622_v34, %v4083_v14  ;;  %v70_v25 = vld [vmem:[#allocation2 + $0x178] sm:$0xff] }
  0xa7   :  { %9289 = vst [vmem:[#allocation88_spill] sm:$0xff] %v5859_v53  ;;  %9290 = vst [vmem:[#allocation89_spill] sm:$0xff] %v5863_v15  ;;  %v2098_v21 = vrot.slane %v37_v30, %v4078_v12  ;;  %v5883_v2 = vsel %vm93_vm4, %v2094_v44, %v1450_v55  ;;  %v1451_v10 = vsel %vm94_vm5, %v626_v29, %v4083_v14 }
  0xa8   :  { %3649 = vst [vmem:[%s9015_s1 + $0x3c8] sm:$0x7f] %v5859_v53  ;;  %3650 = vst [vmem:[%s9015_s1 + $0x3d0] sm:$0x7f] %v5863_v15  ;;  %v630_v62 = vrot.slane %v68_v23, %v4081_v13  ;;  %v2102_v0 = vrot.slane %v37_v30, %v4081_v13  ;;  %v634_v44 = vrot.slane %v68_v23, %v4149_v38  ;;  %v6000_v53 = vld [vmem:[#allocation2 + $0x88] sm:$0xff] }
  0xa9   :  { %9291 = vst [vmem:[#allocation90_spill] sm:$0xff] %v5883_v2  ;;  %3651 = vst [vmem:[%s9015_s1 + $0x3d8] sm:$0x7f] %v5883_v2  ;;  %v5896_v34 = vsel %vm93_vm4, %v2098_v21, %v1451_v10  ;;  %v2106_v55 = vrot.slane %v37_v30, %v4149_v38  ;;  %v638_v15 = vrot.slane %v68_v23, %v4152_v39 }
  0xaa   :  { %9292 = vst [vmem:[#allocation91_spill] sm:$0xff] %v5896_v34  ;;  %3652 = vst [vmem:[%s9015_s1 + $0x3e0] sm:$0x7f] %v5896_v34  ;;  %v1452_v29 = vsel %vm94_vm5, %v630_v62, %v4083_v14  ;;  %v2110_v2 = vrot.slane %v37_v30, %v4152_v39  ;;  %v642_v21 = vrot.slane %v5871_v37, %v4065_v4 }
  0xab   :  { %v2114_v10 = vrot.slane %v5869_v36, %v4065_v4  ;;  %v5915_v23 = vsel %vm93_vm4, %v2102_v0, %v1452_v29  ;;  %v1453_v34 = vsel %vm94_vm5, %v634_v44, %v4083_v14  ;;  %v1454_v62 = vsel %vm94_vm5, %v638_v15, %v4083_v14 }
  0xac   :  { %9293 = vst [vmem:[#allocation92_spill] sm:$0xff] %v5915_v23  ;;  %v646_v30 = vrot.slane %v5871_v37, %v4069_v6  ;;  %3653 = vst [vmem:[%s9015_s1 + $0x3e8] sm:$0x7f] %v5915_v23  ;;  %v5931_v0 = vsel %vm93_vm4, %v2106_v55, %v1453_v34  ;;  %v5935_v29 = vsel %vm93_vm4, %v2110_v2, %v1454_v62 }
  0xad   :  { %9294 = vst [vmem:[#allocation93_spill] sm:$0xff] %v5931_v0  ;;  %9295 = vst [vmem:[#allocation94_spill] sm:$0xff] %v5935_v29  ;;  %v1455_v15 = vsel %vm94_vm5, %v642_v21, %v4083_v14  ;;  %v2118_v44 = vrot.slane %v5869_v36, %v4069_v6  ;;  %v650_v55 = vrot.slane %v5871_v37, %v4072_v7 }
  0xae   :  { %3654 = vst [vmem:[%s9015_s1 + $0x3f0] sm:$0x7f] %v5931_v0  ;;  %3655 = vst [vmem:[%s9015_s1 + $0x3f8] sm:$0x7f] %v5935_v29  ;;  %v5952_v2 = vsel %vm93_vm4, %v2114_v10, %v1455_v15  ;;  %v1456_v34 = vsel %vm94_vm5, %v646_v30, %v4083_v14  ;;  %v2122_v21 = vrot.slane %v5869_v36, %v4072_v7 }
  0xaf   :  { %9296 = vst [vmem:[#allocation95_spill] sm:$0xff] %v5952_v2  ;;  %3656 = vst [vmem:[%s9015_s1 + $0x400] sm:$0x7f] %v5952_v2  ;;  %v5967_v62 = vsel %vm93_vm4, %v2118_v44, %v1456_v34  ;;  %v654_v10 = vrot.slane %v5871_v37, %v4075_v11  ;;  %v2126_v30 = vrot.slane %v5869_v36, %v4075_v11 }
  0xb0   :  { %9297 = vst [vmem:[#allocation96_spill] sm:$0xff] %v5967_v62  ;;  %v658_v15 = vrot.slane %v5871_v37, %v4078_v12  ;;  %3657 = vst [vmem:[%s9015_s1 + $0x408] sm:$0x7f] %v5967_v62  ;;  %v1457_v2 = vsel %vm94_vm5, %v650_v55, %v4083_v14  ;;  %v2130_v44 = vrot.slane %v5869_v36, %v4078_v12 }
  0xb1   :  { %v662_v34 = vrot.slane %v5871_v37, %v4081_v13  ;;  %v2134_v29 = vrot.slane %v5869_v36, %v4081_v13  ;;  %v5990_v0 = vsel %vm93_vm4, %v2122_v21, %v1457_v2  ;;  %v1458_v62 = vsel %vm94_vm5, %v654_v10, %v4083_v14 }
  0xb2   :  { %9298 = vst [vmem:[#allocation97_spill] sm:$0xff] %v5990_v0  ;;  %v1459_v55 = vsel %vm94_vm5, %v658_v15, %v4083_v14  ;;  %v666_v23 = vrot.slane %v5871_v37, %v4149_v38  ;;  %3658 = vst [vmem:[%s9015_s1 + $0x410] sm:$0x7f] %v5990_v0  ;;  %v6008_v2 = vsel %vm93_vm4, %v2126_v30, %v1458_v62 }
  0xb3   :  { %9299 = vst [vmem:[#allocation98_spill] sm:$0xff] %v6008_v2  ;;  %v6012_v21 = vsel %vm93_vm4, %v2130_v44, %v1459_v55  ;;  %v1460_v10 = vsel %vm94_vm5, %v662_v34, %v4083_v14  ;;  %v2138_v15 = vrot.slane %v5869_v36, %v4149_v38  ;;  %3659 = vst [vmem:[%s9015_s1 + $0x418] sm:$0x7f] %v6008_v2 }
  0xb4   :  { %9300 = vst [vmem:[#allocation99_spill] sm:$0xff] %v6012_v21  ;;  %3660 = vst [vmem:[%s9015_s1 + $0x420] sm:$0x7f] %v6012_v21  ;;  %v6029_v62 = vsel %vm93_vm4, %v2134_v29, %v1460_v10  ;;  %v1461_v30 = vsel %vm94_vm5, %v666_v23, %v4083_v14  ;;  %v670_v44 = vrot.slane %v5871_v37, %v4152_v39 }
  0xb5   :  { %9301 = vst [vmem:[#allocation100_spill] sm:$0xff] %v6029_v62  ;;  %v2142_v34 = vrot.slane %v5869_v36, %v4152_v39  ;;  %3661 = vst [vmem:[%s9015_s1 + $0x428] sm:$0x7f] %v6029_v62  ;;  %v6044_v55 = vsel %vm93_vm4, %v2138_v15, %v1461_v30  ;;  %v674_v29 = vrot.slane %v70_v25, %v4065_v4 }
  0xb6   :  { %9302 = vst [vmem:[#allocation101_spill] sm:$0xff] %v6044_v55  ;;  %v2146_v23 = vrot.slane %v6000_v53, %v4065_v4  ;;  %v678_v10 = vrot.slane %v70_v25, %v4069_v6  ;;  %3662 = vst [vmem:[%s9015_s1 + $0x430] sm:$0x7f] %v6044_v55  ;;  %v1462_v37 = vsel %vm94_vm5, %v670_v44, %v4083_v14 }
  0xb7   :  { %v2150_v36 = vrot.slane %v6000_v53, %v4069_v6  ;;  %v682_v15 = vrot.slane %v70_v25, %v4072_v7  ;;  %v2154_v30 = vrot.slane %v6000_v53, %v4072_v7  ;;  %v6064_v62 = vsel %vm93_vm4, %v2142_v34, %v1462_v37 }
  0xb8   :  { %9303 = vst [vmem:[#allocation102_spill] sm:$0xff] %v6064_v62  ;;  %v1463_v55 = vsel %vm94_vm5, %v674_v29, %v4083_v14  ;;  %v1464_v44 = vsel %vm94_vm5, %v678_v10, %v4083_v14  ;;  %v686_v21 = vrot.slane %v70_v25, %v4075_v11  ;;  %3663 = vst [vmem:[%s9015_s1 + $0x438] sm:$0x7f] %v6064_v62 }
  0xb9   :  { %v6079_v2 = vsel %vm93_vm4, %v2146_v23, %v1463_v55  ;;  %v6083_v34 = vsel %vm93_vm4, %v2150_v36, %v1464_v44  ;;  %v1465_v29 = vsel %vm94_vm5, %v682_v15, %v4083_v14  ;;  %v2158_v10 = vrot.slane %v6000_v53, %v4075_v11  ;;  %v6108_v15 = vld [vmem:[#allocation2 + $0x180] sm:$0xff] }
  0xba   :  { %9304 = vst [vmem:[#allocation103_spill] sm:$0xff] %v6079_v2  ;;  %9305 = vst [vmem:[#allocation104_spill] sm:$0xff] %v6083_v34  ;;  %v6100_v55 = vsel %vm93_vm4, %v2154_v30, %v1465_v29  ;;  %v1466_v23 = vsel %vm94_vm5, %v686_v21, %v4083_v14  ;;  %v690_v37 = vrot.slane %v70_v25, %v4078_v12 }
  0xbb   :  { %3664 = vst [vmem:[%s9015_s1 + $0x440] sm:$0x7f] %v6079_v2  ;;  %3665 = vst [vmem:[%s9015_s1 + $0x448] sm:$0x7f] %v6083_v34  ;;  %v2162_v36 = vrot.slane %v6000_v53, %v4078_v12  ;;  %v6116_v30 = vsel %vm93_vm4, %v2158_v10, %v1466_v23  ;;  %v694_v44 = vrot.slane %v70_v25, %v4081_v13  ;;  %v6122_v34 = vld [vmem:[#allocation2 + $0x90] sm:$0xff] }
  0xbc   :  { %9306 = vst [vmem:[#allocation105_spill] sm:$0xff] %v6100_v55  ;;  %3666 = vst [vmem:[%s9015_s1 + $0x450] sm:$0x7f] %v6100_v55  ;;  %v2166_v21 = vrot.slane %v6000_v53, %v4081_v13  ;;  %v698_v29 = vrot.slane %v70_v25, %v4149_v38  ;;  %v1467_v55 = vsel %vm94_vm5, %v690_v37, %v4083_v14 }
  0xbd   :  { %9307 = vst [vmem:[#allocation106_spill] sm:$0xff] %v6116_v30  ;;  %3667 = vst [vmem:[%s9015_s1 + $0x458] sm:$0x7f] %v6116_v30  ;;  %v2170_v10 = vrot.slane %v6000_v53, %v4149_v38  ;;  %v702_v23 = vrot.slane %v70_v25, %v4152_v39  ;;  %v2174_v2 = vrot.slane %v6000_v53, %v4152_v39 }
  0xbe   :  { %v6138_v62 = vsel %vm93_vm4, %v2162_v36, %v1467_v55  ;;  %v1468_v30 = vsel %vm94_vm5, %v694_v44, %v4083_v14  ;;  %v1469_v37 = vsel %vm94_vm5, %v698_v29, %v4083_v14  ;;  %v706_v0 = vrot.slane %v6108_v15, %v4065_v4 }
  0xbf   :  { %9308 = vst [vmem:[#allocation107_spill] sm:$0xff] %v6138_v62  ;;  %3668 = vst [vmem:[%s9015_s1 + $0x460] sm:$0x7f] %v6138_v62  ;;  %v6154_v53 = vsel %vm93_vm4, %v2166_v21, %v1468_v30  ;;  %v6158_v25 = vsel %vm93_vm4, %v2170_v10, %v1469_v37  ;;  %v1470_v55 = vsel %vm94_vm5, %v702_v23, %v4083_v14  ;;  %v41_v62 = vld [vmem:[#allocation2 + $0x98] sm:$0xff] }
  0xc0   :  { %9309 = vst [vmem:[#allocation108_spill] sm:$0xff] %v6154_v53  ;;  %9310 = vst [vmem:[#allocation109_spill] sm:$0xff] %v6158_v25  ;;  %v2178_v36 = vrot.slane %v6122_v34, %v4065_v4  ;;  %v6175_v30 = vsel %vm93_vm4, %v2174_v2, %v1470_v55  ;;  %v1471_v44 = vsel %vm94_vm5, %v706_v0, %v4083_v14 }
  0xc1   :  { %3669 = vst [vmem:[%s9015_s1 + $0x468] sm:$0x7f] %v6154_v53  ;;  %3670 = vst [vmem:[%s9015_s1 + $0x470] sm:$0x7f] %v6158_v25  ;;  %v710_v21 = vrot.slane %v6108_v15, %v4069_v6  ;;  %v2182_v29 = vrot.slane %v6122_v34, %v4069_v6  ;;  %v714_v2 = vrot.slane %v6108_v15, %v4072_v7  ;;  %v6223_v53 = vld [vmem:[#allocation2 + $0x188] sm:$0xff] }
  0xc2   :  { %9311 = vst [vmem:[#allocation110_spill] sm:$0xff] %v6175_v30  ;;  %3671 = vst [vmem:[%s9015_s1 + $0x478] sm:$0x7f] %v6175_v30  ;;  %v6190_v10 = vsel %vm93_vm4, %v2178_v36, %v1471_v44  ;;  %v2186_v0 = vrot.slane %v6122_v34, %v4072_v7  ;;  %v718_v23 = vrot.slane %v6108_v15, %v4075_v11 }
  0xc3   :  { %9312 = vst [vmem:[#allocation111_spill] sm:$0xff] %v6190_v10  ;;  %3672 = vst [vmem:[%s9015_s1 + $0x480] sm:$0x7f] %v6190_v10  ;;  %v1472_v37 = vsel %vm94_vm5, %v710_v21, %v4083_v14  ;;  %v2190_v55 = vrot.slane %v6122_v34, %v4075_v11  ;;  %v722_v36 = vrot.slane %v6108_v15, %v4078_v12 }
  0xc4   :  { %v2194_v44 = vrot.slane %v6122_v34, %v4078_v12  ;;  %v6213_v30 = vsel %vm93_vm4, %v2182_v29, %v1472_v37  ;;  %v1473_v10 = vsel %vm94_vm5, %v714_v2, %v4083_v14  ;;  %v1474_v21 = vsel %vm94_vm5, %v718_v23, %v4083_v14 }
  0xc5   :  { %9313 = vst [vmem:[#allocation112_spill] sm:$0xff] %v6213_v30  ;;  %v726_v25 = vrot.slane %v6108_v15, %v4081_v13  ;;  %3673 = vst [vmem:[%s9015_s1 + $0x488] sm:$0x7f] %v6213_v30  ;;  %v6231_v29 = vsel %vm93_vm4, %v2186_v0, %v1473_v10  ;;  %v6235_v2 = vsel %vm93_vm4, %v2190_v55, %v1474_v21 }
  0xc6   :  { %9314 = vst [vmem:[#allocation113_spill] sm:$0xff] %v6231_v29  ;;  %9315 = vst [vmem:[#allocation114_spill] sm:$0xff] %v6235_v2  ;;  %v1475_v23 = vsel %vm94_vm5, %v722_v36, %v4083_v14  ;;  %v2198_v37 = vrot.slane %v6122_v34, %v4081_v13  ;;  %v730_v55 = vrot.slane %v6108_v15, %v4149_v38 }
  0xc7   :  { %3674 = vst [vmem:[%s9015_s1 + $0x490] sm:$0x7f] %v6231_v29  ;;  %3675 = vst [vmem:[%s9015_s1 + $0x498] sm:$0x7f] %v6235_v2  ;;  %v6252_v10 = vsel %vm93_vm4, %v2194_v44, %v1475_v23  ;;  %v1476_v0 = vsel %vm94_vm5, %v726_v25, %v4083_v14  ;;  %v2202_v36 = vrot.slane %v6122_v34, %v4149_v38 }
  0xc8   :  { %9316 = vst [vmem:[#allocation115_spill] sm:$0xff] %v6252_v10  ;;  %3676 = vst [vmem:[%s9015_s1 + $0x4a0] sm:$0x7f] %v6252_v10  ;;  %v6267_v21 = vsel %vm93_vm4, %v2198_v37, %v1476_v0  ;;  %v734_v44 = vrot.slane %v6108_v15, %v4152_v39  ;;  %v2206_v25 = vrot.slane %v6122_v34, %v4152_v39 }
  0xc9   :  { %9317 = vst [vmem:[#allocation116_spill] sm:$0xff] %v6267_v21  ;;  %v738_v23 = vrot.slane %v6223_v53, %v4065_v4  ;;  %3677 = vst [vmem:[%s9015_s1 + $0x4a8] sm:$0x7f] %v6267_v21  ;;  %v1477_v10 = vsel %vm94_vm5, %v730_v55, %v4083_v14  ;;  %v2210_v37 = vrot.slane %v41_v62, %v4065_v4 }
  0xca   :  { %v742_v15 = vrot.slane %v6223_v53, %v4069_v6  ;;  %v2214_v0 = vrot.slane %v41_v62, %v4069_v6  ;;  %v6288_v34 = vsel %vm93_vm4, %v2202_v36, %v1477_v10  ;;  %v1478_v2 = vsel %vm94_vm5, %v734_v44, %v4083_v14 }
  0xcb   :  { %9318 = vst [vmem:[#allocation117_spill] sm:$0xff] %v6288_v34  ;;  %v1479_v21 = vsel %vm94_vm5, %v738_v23, %v4083_v14  ;;  %v746_v55 = vrot.slane %v6223_v53, %v4072_v7  ;;  %3678 = vst [vmem:[%s9015_s1 + $0x4b0] sm:$0x7f] %v6288_v34  ;;  %v6304_v10 = vsel %vm93_vm4, %v2206_v25, %v1478_v2  ;;  %v73_v34 = vld [vmem:[#allocation2 + $0x190] sm:$0xff] }
  0xcc   :  { %9319 = vst [vmem:[#allocation118_spill] sm:$0xff] %v6304_v10  ;;  %v6308_v36 = vsel %vm93_vm4, %v2210_v37, %v1479_v21  ;;  %v1480_v44 = vsel %vm94_vm5, %v742_v15, %v4083_v14  ;;  %v2218_v23 = vrot.slane %v41_v62, %v4072_v7  ;;  %3679 = vst [vmem:[%s9015_s1 + $0x4b8] sm:$0x7f] %v6304_v10  ;;  %v42_v10 = vld [vmem:[#allocation2 + $0xa0] sm:$0xff] }
  0xcd   :  { %9320 = vst [vmem:[#allocation119_spill] sm:$0xff] %v6308_v36  ;;  %3680 = vst [vmem:[%s9015_s1 + $0x4c0] sm:$0x7f] %v6308_v36  ;;  %v6324_v2 = vsel %vm93_vm4, %v2214_v0, %v1480_v44  ;;  %v1481_v21 = vsel %vm94_vm5, %v746_v55, %v4083_v14  ;;  %v750_v25 = vrot.slane %v6223_v53, %v4075_v11 }
  0xce   :  { %9321 = vst [vmem:[#allocation120_spill] sm:$0xff] %v6324_v2  ;;  %v2222_v37 = vrot.slane %v41_v62, %v4075_v11  ;;  %3681 = vst [vmem:[%s9015_s1 + $0x4c8] sm:$0x7f] %v6324_v2  ;;  %v6338_v15 = vsel %vm93_vm4, %v2218_v23, %v1481_v21  ;;  %v754_v0 = vrot.slane %v6223_v53, %v4078_v12 }
  0xcf   :  { %9322 = vst [vmem:[#allocation121_spill] sm:$0xff] %v6338_v15  ;;  %v2226_v44 = vrot.slane %v41_v62, %v4078_v12  ;;  %v758_v55 = vrot.slane %v6223_v53, %v4081_v13  ;;  %3682 = vst [vmem:[%s9015_s1 + $0x4d0] sm:$0x7f] %v6338_v15  ;;  %v1482_v2 = vsel %vm94_vm5, %v750_v25, %v4083_v14 }
  0xd0   :  { %v2230_v23 = vrot.slane %v41_v62, %v4081_v13  ;;  %v762_v21 = vrot.slane %v6223_v53, %v4149_v38  ;;  %v2234_v36 = vrot.slane %v41_v62, %v4149_v38  ;;  %v6358_v29 = vsel %vm93_vm4, %v2222_v37, %v1482_v2 }
  0xd1   :  { %9323 = vst [vmem:[#allocation122_spill] sm:$0xff] %v6358_v29  ;;  %v1483_v15 = vsel %vm94_vm5, %v754_v0, %v4083_v14  ;;  %v1484_v25 = vsel %vm94_vm5, %v758_v55, %v4083_v14  ;;  %v766_v30 = vrot.slane %v6223_v53, %v4152_v39  ;;  %3683 = vst [vmem:[%s9015_s1 + $0x4d8] sm:$0x7f] %v6358_v29  ;;  %v6451_v29 = vld [vmem:[#allocation2 + $0x198] sm:$0xff] }
  0xd2   :  { %v6374_v2 = vsel %vm93_vm4, %v2226_v44, %v1483_v15  ;;  %v6378_v37 = vsel %vm93_vm4, %v2230_v23, %v1484_v25  ;;  %v1485_v0 = vsel %vm94_vm5, %v762_v21, %v4083_v14  ;;  %v2238_v55 = vrot.slane %v41_v62, %v4152_v39 }
  0xd3   :  { %9324 = vst [vmem:[#allocation123_spill] sm:$0xff] %v6374_v2  ;;  %9325 = vst [vmem:[#allocation124_spill] sm:$0xff] %v6378_v37  ;;  %v6394_v53 = vsel %vm93_vm4, %v2234_v36, %v1485_v0  ;;  %v1486_v15 = vsel %vm94_vm5, %v766_v30, %v4083_v14  ;;  %v770_v62 = vrot.slane %v73_v34, %v4065_v4 }
  0xd4   :  { %3684 = vst [vmem:[%s9015_s1 + $0x4e0] sm:$0x7f] %v6374_v2  ;;  %3685 = vst [vmem:[%s9015_s1 + $0x4e8] sm:$0x7f] %v6378_v37  ;;  %v2242_v44 = vrot.slane %v42_v10, %v4065_v4  ;;  %v6407_v23 = vsel %vm93_vm4, %v2238_v55, %v1486_v15  ;;  %v774_v36 = vrot.slane %v73_v34, %v4069_v6 }
  0xd5   :  { %9326 = vst [vmem:[#allocation125_spill] sm:$0xff] %v6394_v53  ;;  %3686 = vst [vmem:[%s9015_s1 + $0x4f0] sm:$0x7f] %v6394_v53  ;;  %v2246_v21 = vrot.slane %v42_v10, %v4069_v6  ;;  %v778_v25 = vrot.slane %v73_v34, %v4072_v7  ;;  %v1487_v30 = vsel %vm94_vm5, %v770_v62, %v4083_v14 }
  0xd6   :  { %9327 = vst [vmem:[#allocation126_spill] sm:$0xff] %v6407_v23  ;;  %3687 = vst [vmem:[%s9015_s1 + $0x4f8] sm:$0x7f] %v6407_v23  ;;  %v2250_v0 = vrot.slane %v42_v10, %v4072_v7  ;;  %v782_v55 = vrot.slane %v73_v34, %v4075_v11  ;;  %v2254_v15 = vrot.slane %v42_v10, %v4075_v11 }
  0xd7   :  { %v6424_v53 = vsel %vm93_vm4, %v2242_v44, %v1487_v30  ;;  %v1488_v37 = vsel %vm94_vm5, %v774_v36, %v4083_v14  ;;  %v1489_v23 = vsel %vm94_vm5, %v778_v25, %v4083_v14  ;;  %v786_v62 = vrot.slane %v73_v34, %v4078_v12  ;;  %v6449_v30 = vld [vmem:[#allocation2 + $0xa8] sm:$0xff] }
  0xd8   :  { %9328 = vst [vmem:[#allocation127_spill] sm:$0xff] %v6424_v53  ;;  %3688 = vst [vmem:[%s9015_s1 + $0x500] sm:$0x7f] %v6424_v53  ;;  %v6439_v2 = vsel %vm93_vm4, %v2246_v21, %v1488_v37  ;;  %v6443_v44 = vsel %vm93_vm4, %v2250_v0, %v1489_v23  ;;  %v1490_v36 = vsel %vm94_vm5, %v782_v55, %v4083_v14  ;;  %v75_v53 = vld [vmem:[#allocation2 + $0x1a0] sm:$0xff] }
  0xd9   :  { %9329 = vst [vmem:[#allocation128_spill] sm:$0xff] %v6439_v2  ;;  %9330 = vst [vmem:[#allocation129_spill] sm:$0xff] %v6443_v44  ;;  %v2258_v25 = vrot.slane %v42_v10, %v4078_v12  ;;  %v6463_v37 = vsel %vm93_vm4, %v2254_v15, %v1490_v36  ;;  %v1491_v23 = vsel %vm94_vm5, %v786_v62, %v4083_v14 }
  0xda   :  { %3689 = vst [vmem:[%s9015_s1 + $0x508] sm:$0x7f] %v6439_v2  ;;  %3690 = vst [vmem:[%s9015_s1 + $0x510] sm:$0x7f] %v6443_v44  ;;  %v790_v21 = vrot.slane %v73_v34, %v4081_v13  ;;  %v2262_v0 = vrot.slane %v42_v10, %v4081_v13  ;;  %v794_v15 = vrot.slane %v73_v34, %v4149_v38  ;;  %v6580_v2 = vld [vmem:[#allocation2 + $0xb0] sm:$0xff] }
  0xdb   :  { %9331 = vst [vmem:[#allocation130_spill] sm:$0xff] %v6463_v37  ;;  %3691 = vst [vmem:[%s9015_s1 + $0x518] sm:$0x7f] %v6463_v37  ;;  %v6476_v55 = vsel %vm93_vm4, %v2258_v25, %v1491_v23  ;;  %v2266_v36 = vrot.slane %v42_v10, %v4149_v38  ;;  %v798_v44 = vrot.slane %v73_v34, %v4152_v39 }
  0xdc   :  { %9332 = vst [vmem:[#allocation131_spill] sm:$0xff] %v6476_v55  ;;  %3692 = vst [vmem:[%s9015_s1 + $0x520] sm:$0x7f] %v6476_v55  ;;  %v1492_v62 = vsel %vm94_vm5, %v790_v21, %v4083_v14  ;;  %v2270_v37 = vrot.slane %v42_v10, %v4152_v39  ;;  %v802_v25 = vrot.slane %v6451_v29, %v4065_v4 }
  0xdd   :  { %v2274_v23 = vrot.slane %v6449_v30, %v4065_v4  ;;  %v6495_v34 = vsel %vm93_vm4, %v2262_v0, %v1492_v62  ;;  %v1493_v55 = vsel %vm94_vm5, %v794_v15, %v4083_v14  ;;  %v1494_v21 = vsel %vm94_vm5, %v798_v44, %v4083_v14 }
  0xde   :  { %9333 = vst [vmem:[#allocation132_spill] sm:$0xff] %v6495_v34  ;;  %v806_v10 = vrot.slane %v6451_v29, %v4069_v6  ;;  %3693 = vst [vmem:[%s9015_s1 + $0x528] sm:$0x7f] %v6495_v34  ;;  %v6511_v0 = vsel %vm93_vm4, %v2266_v36, %v1493_v55  ;;  %v6515_v62 = vsel %vm93_vm4, %v2270_v37, %v1494_v21 }
  0xdf   :  { %9334 = vst [vmem:[#allocation133_spill] sm:$0xff] %v6511_v0  ;;  %9335 = vst [vmem:[#allocation134_spill] sm:$0xff] %v6515_v62  ;;  %v1495_v44 = vsel %vm94_vm5, %v802_v25, %v4083_v14  ;;  %v2278_v15 = vrot.slane %v6449_v30, %v4069_v6  ;;  %v810_v36 = vrot.slane %v6451_v29, %v4072_v7 }
  0xe0   :  { %3694 = vst [vmem:[%s9015_s1 + $0x530] sm:$0x7f] %v6511_v0  ;;  %3695 = vst [vmem:[%s9015_s1 + $0x538] sm:$0x7f] %v6515_v62  ;;  %v6532_v37 = vsel %vm93_vm4, %v2274_v23, %v1495_v44  ;;  %v1496_v55 = vsel %vm94_vm5, %v806_v10, %v4083_v14  ;;  %v2282_v25 = vrot.slane %v6449_v30, %v4072_v7 }
  0xe1   :  { %9336 = vst [vmem:[#allocation135_spill] sm:$0xff] %v6532_v37  ;;  %3696 = vst [vmem:[%s9015_s1 + $0x540] sm:$0x7f] %v6532_v37  ;;  %v6547_v21 = vsel %vm93_vm4, %v2278_v15, %v1496_v55  ;;  %v814_v23 = vrot.slane %v6451_v29, %v4075_v11  ;;  %v2286_v10 = vrot.slane %v6449_v30, %v4075_v11 }
  0xe2   :  { %9337 = vst [vmem:[#allocation136_spill] sm:$0xff] %v6547_v21  ;;  %v818_v44 = vrot.slane %v6451_v29, %v4078_v12  ;;  %3697 = vst [vmem:[%s9015_s1 + $0x548] sm:$0x7f] %v6547_v21  ;;  %v1497_v37 = vsel %vm94_vm5, %v810_v36, %v4083_v14  ;;  %v2290_v15 = vrot.slane %v6449_v30, %v4078_v12 }
  0xe3   :  { %v822_v55 = vrot.slane %v6451_v29, %v4081_v13  ;;  %v2294_v62 = vrot.slane %v6449_v30, %v4081_v13  ;;  %v6570_v0 = vsel %vm93_vm4, %v2282_v25, %v1497_v37  ;;  %v1498_v21 = vsel %vm94_vm5, %v814_v23, %v4083_v14 }
  0xe4   :  { %9338 = vst [vmem:[#allocation137_spill] sm:$0xff] %v6570_v0  ;;  %v1499_v36 = vsel %vm94_vm5, %v818_v44, %v4083_v14  ;;  %v826_v34 = vrot.slane %v6451_v29, %v4149_v38  ;;  %3698 = vst [vmem:[%s9015_s1 + $0x550] sm:$0x7f] %v6570_v0  ;;  %v6588_v37 = vsel %vm93_vm4, %v2286_v10, %v1498_v21 }
  0xe5   :  { %9339 = vst [vmem:[#allocation138_spill] sm:$0xff] %v6588_v37  ;;  %v6592_v25 = vsel %vm93_vm4, %v2290_v15, %v1499_v36  ;;  %v1500_v23 = vsel %vm94_vm5, %v822_v55, %v4083_v14  ;;  %v2298_v44 = vrot.slane %v6449_v30, %v4149_v38  ;;  %3699 = vst [vmem:[%s9015_s1 + $0x558] sm:$0x7f] %v6588_v37 }
  0xe6   :  { %9340 = vst [vmem:[#allocation139_spill] sm:$0xff] %v6592_v25  ;;  %3700 = vst [vmem:[%s9015_s1 + $0x560] sm:$0x7f] %v6592_v25  ;;  %v6609_v21 = vsel %vm93_vm4, %v2294_v62, %v1500_v23  ;;  %v1501_v10 = vsel %vm94_vm5, %v826_v34, %v4083_v14  ;;  %v830_v15 = vrot.slane %v6451_v29, %v4152_v39 }
  0xe7   :  { %9341 = vst [vmem:[#allocation140_spill] sm:$0xff] %v6609_v21  ;;  %v2302_v55 = vrot.slane %v6449_v30, %v4152_v39  ;;  %3701 = vst [vmem:[%s9015_s1 + $0x568] sm:$0x7f] %v6609_v21  ;;  %v6624_v36 = vsel %vm93_vm4, %v2298_v44, %v1501_v10  ;;  %v834_v62 = vrot.slane %v75_v53, %v4065_v4 }
  0xe8   :  { %9342 = vst [vmem:[#allocation141_spill] sm:$0xff] %v6624_v36  ;;  %v2306_v34 = vrot.slane %v6580_v2, %v4065_v4  ;;  %v838_v23 = vrot.slane %v75_v53, %v4069_v6  ;;  %3702 = vst [vmem:[%s9015_s1 + $0x570] sm:$0x7f] %v6624_v36  ;;  %v1502_v29 = vsel %vm94_vm5, %v830_v15, %v4083_v14 }
  0xe9   :  { %v2310_v30 = vrot.slane %v6580_v2, %v4069_v6  ;;  %v842_v44 = vrot.slane %v75_v53, %v4072_v7  ;;  %v2314_v10 = vrot.slane %v6580_v2, %v4072_v7  ;;  %v6644_v21 = vsel %vm93_vm4, %v2302_v55, %v1502_v29 }
  0xea   :  { %9343 = vst [vmem:[#allocation142_spill] sm:$0xff] %v6644_v21  ;;  %v1503_v36 = vsel %vm94_vm5, %v834_v62, %v4083_v14  ;;  %v1504_v15 = vsel %vm94_vm5, %v838_v23, %v4083_v14  ;;  %v846_v25 = vrot.slane %v75_v53, %v4075_v11  ;;  %3703 = vst [vmem:[%s9015_s1 + $0x578] sm:$0x7f] %v6644_v21 }
  0xeb   :  { %v6659_v37 = vsel %vm93_vm4, %v2306_v34, %v1503_v36  ;;  %v6663_v55 = vsel %vm93_vm4, %v2310_v30, %v1504_v15  ;;  %v1505_v62 = vsel %vm94_vm5, %v842_v44, %v4083_v14  ;;  %v2318_v23 = vrot.slane %v6580_v2, %v4075_v11  ;;  %v6688_v44 = vld [vmem:[#allocation2 + $0x1a8] sm:$0xff] }
  0xec   :  { %9344 = vst [vmem:[#allocation143_spill] sm:$0xff] %v6659_v37  ;;  %9345 = vst [vmem:[#allocation144_spill] sm:$0xff] %v6663_v55  ;;  %v6680_v36 = vsel %vm93_vm4, %v2314_v10, %v1505_v62  ;;  %v1506_v34 = vsel %vm94_vm5, %v846_v25, %v4083_v14  ;;  %v850_v29 = vrot.slane %v75_v53, %v4078_v12 }
  0xed   :  { %3704 = vst [vmem:[%s9015_s1 + $0x580] sm:$0x7f] %v6659_v37  ;;  %3705 = vst [vmem:[%s9015_s1 + $0x588] sm:$0x7f] %v6663_v55  ;;  %v2322_v30 = vrot.slane %v6580_v2, %v4078_v12  ;;  %v6696_v10 = vsel %vm93_vm4, %v2318_v23, %v1506_v34  ;;  %v854_v15 = vrot.slane %v75_v53, %v4081_v13  ;;  %v6702_v55 = vld [vmem:[#allocation2 + $0xb8] sm:$0xff] }
  0xee   :  { %9346 = vst [vmem:[#allocation145_spill] sm:$0xff] %v6680_v36  ;;  %3706 = vst [vmem:[%s9015_s1 + $0x590] sm:$0x7f] %v6680_v36  ;;  %v2326_v25 = vrot.slane %v6580_v2, %v4081_v13  ;;  %v858_v62 = vrot.slane %v75_v53, %v4149_v38  ;;  %v1507_v36 = vsel %vm94_vm5, %v850_v29, %v4083_v14 }
  0xef   :  { %9347 = vst [vmem:[#allocation146_spill] sm:$0xff] %v6696_v10  ;;  %3707 = vst [vmem:[%s9015_s1 + $0x598] sm:$0x7f] %v6696_v10  ;;  %v2330_v23 = vrot.slane %v6580_v2, %v4149_v38  ;;  %v862_v34 = vrot.slane %v75_v53, %v4152_v39  ;;  %v2334_v37 = vrot.slane %v6580_v2, %v4152_v39 }
  0xf0   :  { %v6718_v21 = vsel %vm93_vm4, %v2322_v30, %v1507_v36  ;;  %v1508_v10 = vsel %vm94_vm5, %v854_v15, %v4083_v14  ;;  %v1509_v29 = vsel %vm94_vm5, %v858_v62, %v4083_v14  ;;  %v866_v0 = vrot.slane %v6688_v44, %v4065_v4 }
  0xf1   :  { %9348 = vst [vmem:[#allocation147_spill] sm:$0xff] %v6718_v21  ;;  %3708 = vst [vmem:[%s9015_s1 + $0x5a0] sm:$0x7f] %v6718_v21  ;;  %v6734_v2 = vsel %vm93_vm4, %v2326_v25, %v1508_v10  ;;  %v6738_v53 = vsel %vm93_vm4, %v2330_v23, %v1509_v29  ;;  %v1510_v36 = vsel %vm94_vm5, %v862_v34, %v4083_v14  ;;  %v46_v21 = vld [vmem:[#allocation2 + $0xc0] sm:$0xff] }
  0xf2   :  { %9349 = vst [vmem:[#allocation148_spill] sm:$0xff] %v6734_v2  ;;  %9350 = vst [vmem:[#allocation149_spill] sm:$0xff] %v6738_v53  ;;  %v2338_v30 = vrot.slane %v6702_v55, %v4065_v4  ;;  %v6755_v10 = vsel %vm93_vm4, %v2334_v37, %v1510_v36  ;;  %v1511_v15 = vsel %vm94_vm5, %v866_v0, %v4083_v14 }
  0xf3   :  { %3709 = vst [vmem:[%s9015_s1 + $0x5a8] sm:$0x7f] %v6734_v2  ;;  %3710 = vst [vmem:[%s9015_s1 + $0x5b0] sm:$0x7f] %v6738_v53  ;;  %v870_v25 = vrot.slane %v6688_v44, %v4069_v6  ;;  %v2342_v62 = vrot.slane %v6702_v55, %v4069_v6  ;;  %v874_v37 = vrot.slane %v6688_v44, %v4072_v7  ;;  %v6803_v2 = vld [vmem:[#allocation2 + $0x1b0] sm:$0xff] }
  0xf4   :  { %9351 = vst [vmem:[#allocation150_spill] sm:$0xff] %v6755_v10  ;;  %3711 = vst [vmem:[%s9015_s1 + $0x5b8] sm:$0x7f] %v6755_v10  ;;  %v6770_v23 = vsel %vm93_vm4, %v2338_v30, %v1511_v15  ;;  %v2346_v0 = vrot.slane %v6702_v55, %v4072_v7  ;;  %v878_v34 = vrot.slane %v6688_v44, %v4075_v11 }
  0xf5   :  { %9352 = vst [vmem:[#allocation151_spill] sm:$0xff] %v6770_v23  ;;  %3712 = vst [vmem:[%s9015_s1 + $0x5c0] sm:$0x7f] %v6770_v23  ;;  %v1512_v29 = vsel %vm94_vm5, %v870_v25, %v4083_v14  ;;  %v2350_v36 = vrot.slane %v6702_v55, %v4075_v11  ;;  %v882_v30 = vrot.slane %v6688_v44, %v4078_v12 }
  0xf6   :  { %v2354_v15 = vrot.slane %v6702_v55, %v4078_v12  ;;  %v6793_v10 = vsel %vm93_vm4, %v2342_v62, %v1512_v29  ;;  %v1513_v23 = vsel %vm94_vm5, %v874_v37, %v4083_v14  ;;  %v1514_v25 = vsel %vm94_vm5, %v878_v34, %v4083_v14 }
  0xf7   :  { %9353 = vst [vmem:[#allocation152_spill] sm:$0xff] %v6793_v10  ;;  %v886_v53 = vrot.slane %v6688_v44, %v4081_v13  ;;  %3713 = vst [vmem:[%s9015_s1 + $0x5c8] sm:$0x7f] %v6793_v10  ;;  %v6811_v62 = vsel %vm93_vm4, %v2346_v0, %v1513_v23  ;;  %v6815_v37 = vsel %vm93_vm4, %v2350_v36, %v1514_v25 }
  0xf8   :  { %9354 = vst [vmem:[#allocation153_spill] sm:$0xff] %v6811_v62  ;;  %9355 = vst [vmem:[#allocation154_spill] sm:$0xff] %v6815_v37  ;;  %v1515_v34 = vsel %vm94_vm5, %v882_v30, %v4083_v14  ;;  %v2358_v29 = vrot.slane %v6702_v55, %v4081_v13  ;;  %v890_v36 = vrot.slane %v6688_v44, %v4149_v38 }
  0xf9   :  { %3714 = vst [vmem:[%s9015_s1 + $0x5d0] sm:$0x7f] %v6811_v62  ;;  %3715 = vst [vmem:[%s9015_s1 + $0x5d8] sm:$0x7f] %v6815_v37  ;;  %v6832_v23 = vsel %vm93_vm4, %v2354_v15, %v1515_v34  ;;  %v1516_v0 = vsel %vm94_vm5, %v886_v53, %v4083_v14  ;;  %v2362_v30 = vrot.slane %v6702_v55, %v4149_v38 }
  0xfa   :  { %9356 = vst [vmem:[#allocation155_spill] sm:$0xff] %v6832_v23  ;;  %3716 = vst [vmem:[%s9015_s1 + $0x5e0] sm:$0x7f] %v6832_v23  ;;  %v6847_v25 = vsel %vm93_vm4, %v2358_v29, %v1516_v0  ;;  %v894_v15 = vrot.slane %v6688_v44, %v4152_v39  ;;  %v2366_v53 = vrot.slane %v6702_v55, %v4152_v39 }
  0xfb   :  { %9357 = vst [vmem:[#allocation156_spill] sm:$0xff] %v6847_v25  ;;  %v898_v34 = vrot.slane %v6803_v2, %v4065_v4  ;;  %3717 = vst [vmem:[%s9015_s1 + $0x5e8] sm:$0x7f] %v6847_v25  ;;  %v1517_v23 = vsel %vm94_vm5, %v890_v36, %v4083_v14  ;;  %v2370_v29 = vrot.slane %v46_v21, %v4065_v4 }
  0xfc   :  { %v902_v44 = vrot.slane %v6803_v2, %v4069_v6  ;;  %v2374_v0 = vrot.slane %v46_v21, %v4069_v6  ;;  %v6868_v55 = vsel %vm93_vm4, %v2362_v30, %v1517_v23  ;;  %v1518_v37 = vsel %vm94_vm5, %v894_v15, %v4083_v14 }
  0xfd   :  { %9358 = vst [vmem:[#allocation157_spill] sm:$0xff] %v6868_v55  ;;  %v1519_v25 = vsel %vm94_vm5, %v898_v34, %v4083_v14  ;;  %v906_v36 = vrot.slane %v6803_v2, %v4072_v7  ;;  %3718 = vst [vmem:[%s9015_s1 + $0x5f0] sm:$0x7f] %v6868_v55  ;;  %v6884_v23 = vsel %vm93_vm4, %v2366_v53, %v1518_v37  ;;  %v78_v55 = vld [vmem:[#allocation2 + $0x1b8] sm:$0xff] }
  0xfe   :  { %9359 = vst [vmem:[#allocation158_spill] sm:$0xff] %v6884_v23  ;;  %v6888_v30 = vsel %vm93_vm4, %v2370_v29, %v1519_v25  ;;  %v1520_v15 = vsel %vm94_vm5, %v902_v44, %v4083_v14  ;;  %v2378_v34 = vrot.slane %v46_v21, %v4072_v7  ;;  %3719 = vst [vmem:[%s9015_s1 + $0x5f8] sm:$0x7f] %v6884_v23  ;;  %v47_v23 = vld [vmem:[#allocation2 + $0xc8] sm:$0xff] }
  0xff   :  { %9360 = vst [vmem:[#allocation159_spill] sm:$0xff] %v6888_v30  ;;  %3720 = vst [vmem:[%s9015_s1 + $0x600] sm:$0x7f] %v6888_v30  ;;  %v6904_v37 = vsel %vm93_vm4, %v2374_v0, %v1520_v15  ;;  %v1521_v25 = vsel %vm94_vm5, %v906_v36, %v4083_v14  ;;  %v910_v53 = vrot.slane %v6803_v2, %v4075_v11 }
 0x100   :  { %9361 = vst [vmem:[#allocation160_spill] sm:$0xff] %v6904_v37  ;;  %v2382_v29 = vrot.slane %v46_v21, %v4075_v11  ;;  %3721 = vst [vmem:[%s9015_s1 + $0x608] sm:$0x7f] %v6904_v37  ;;  %v6918_v44 = vsel %vm93_vm4, %v2378_v34, %v1521_v25  ;;  %v914_v0 = vrot.slane %v6803_v2, %v4078_v12 }
 0x101   :  { %9362 = vst [vmem:[#allocation161_spill] sm:$0xff] %v6918_v44  ;;  %v2386_v15 = vrot.slane %v46_v21, %v4078_v12  ;;  %v918_v36 = vrot.slane %v6803_v2, %v4081_v13  ;;  %3722 = vst [vmem:[%s9015_s1 + $0x610] sm:$0x7f] %v6918_v44  ;;  %v1522_v37 = vsel %vm94_vm5, %v910_v53, %v4083_v14 }
 0x102   :  { %v2390_v34 = vrot.slane %v46_v21, %v4081_v13  ;;  %v922_v25 = vrot.slane %v6803_v2, %v4149_v38  ;;  %v2394_v30 = vrot.slane %v46_v21, %v4149_v38  ;;  %v6938_v62 = vsel %vm93_vm4, %v2382_v29, %v1522_v37 }
 0x103   :  { %9363 = vst [vmem:[#allocation162_spill] sm:$0xff] %v6938_v62  ;;  %v1523_v44 = vsel %vm94_vm5, %v914_v0, %v4083_v14  ;;  %v1524_v53 = vsel %vm94_vm5, %v918_v36, %v4083_v14  ;;  %v926_v10 = vrot.slane %v6803_v2, %v4152_v39  ;;  %3723 = vst [vmem:[%s9015_s1 + $0x618] sm:$0x7f] %v6938_v62  ;;  %v7031_v62 = vld [vmem:[#allocation2 + $0x1c0] sm:$0xff] }
 0x104   :  { %v6954_v37 = vsel %vm93_vm4, %v2386_v15, %v1523_v44  ;;  %v6958_v29 = vsel %vm93_vm4, %v2390_v34, %v1524_v53  ;;  %v1525_v0 = vsel %vm94_vm5, %v922_v25, %v4083_v14  ;;  %v2398_v36 = vrot.slane %v46_v21, %v4152_v39 }
 0x105   :  { %9364 = vst [vmem:[#allocation163_spill] sm:$0xff] %v6954_v37  ;;  %9365 = vst [vmem:[#allocation164_spill] sm:$0xff] %v6958_v29  ;;  %v6974_v2 = vsel %vm93_vm4, %v2394_v30, %v1525_v0  ;;  %v1526_v44 = vsel %vm94_vm5, %v926_v10, %v4083_v14  ;;  %v930_v21 = vrot.slane %v78_v55, %v4065_v4 }
 0x106   :  { %3724 = vst [vmem:[%s9015_s1 + $0x620] sm:$0x7f] %v6954_v37  ;;  %3725 = vst [vmem:[%s9015_s1 + $0x628] sm:$0x7f] %v6958_v29  ;;  %v2402_v15 = vrot.slane %v47_v23, %v4065_v4  ;;  %v6987_v34 = vsel %vm93_vm4, %v2398_v36, %v1526_v44  ;;  %v934_v30 = vrot.slane %v78_v55, %v4069_v6 }
 0x107   :  { %9366 = vst [vmem:[#allocation165_spill] sm:$0xff] %v6974_v2  ;;  %3726 = vst [vmem:[%s9015_s1 + $0x630] sm:$0x7f] %v6974_v2  ;;  %v2406_v25 = vrot.slane %v47_v23, %v4069_v6  ;;  %v938_v53 = vrot.slane %v78_v55, %v4072_v7  ;;  %v1527_v10 = vsel %vm94_vm5, %v930_v21, %v4083_v14 }
 0x108   :  { %9367 = vst [vmem:[#allocation166_spill] sm:$0xff] %v6987_v34  ;;  %3727 = vst [vmem:[%s9015_s1 + $0x638] sm:$0x7f] %v6987_v34  ;;  %v2410_v0 = vrot.slane %v47_v23, %v4072_v7  ;;  %v942_v36 = vrot.slane %v78_v55, %v4075_v11  ;;  %v2414_v44 = vrot.slane %v47_v23, %v4075_v11 }
 0x109   :  { %v7004_v2 = vsel %vm93_vm4, %v2402_v15, %v1527_v10  ;;  %v1528_v29 = vsel %vm94_vm5, %v934_v30, %v4083_v14  ;;  %v1529_v34 = vsel %vm94_vm5, %v938_v53, %v4083_v14  ;;  %v946_v21 = vrot.slane %v78_v55, %v4078_v12  ;;  %v7029_v10 = vld [vmem:[#allocation2 + $0xd0] sm:$0xff] }
 0x10a   :  { %9368 = vst [vmem:[#allocation167_spill] sm:$0xff] %v7004_v2  ;;  %3728 = vst [vmem:[%s9015_s1 + $0x640] sm:$0x7f] %v7004_v2  ;;  %v7019_v37 = vsel %vm93_vm4, %v2406_v25, %v1528_v29  ;;  %v7023_v15 = vsel %vm93_vm4, %v2410_v0, %v1529_v34  ;;  %v1530_v30 = vsel %vm94_vm5, %v942_v36, %v4083_v14  ;;  %v80_v2 = vld [vmem:[#allocation2 + $0x1c8] sm:$0xff] }
 0x10b   :  { %9369 = vst [vmem:[#allocation168_spill] sm:$0xff] %v7019_v37  ;;  %9370 = vst [vmem:[#allocation169_spill] sm:$0xff] %v7023_v15  ;;  %v2418_v53 = vrot.slane %v47_v23, %v4078_v12  ;;  %v7043_v29 = vsel %vm93_vm4, %v2414_v44, %v1530_v30  ;;  %v1531_v34 = vsel %vm94_vm5, %v946_v21, %v4083_v14 }
 0x10c   :  { %3729 = vst [vmem:[%s9015_s1 + $0x648] sm:$0x7f] %v7019_v37  ;;  %3730 = vst [vmem:[%s9015_s1 + $0x650] sm:$0x7f] %v7023_v15  ;;  %v950_v25 = vrot.slane %v78_v55, %v4081_v13  ;;  %v2422_v0 = vrot.slane %v47_v23, %v4081_v13  ;;  %v954_v44 = vrot.slane %v78_v55, %v4149_v38  ;;  %v7160_v37 = vld [vmem:[#allocation2 + $0xd8] sm:$0xff] }
 0x10d   :  { %9371 = vst [vmem:[#allocation170_spill] sm:$0xff] %v7043_v29  ;;  %3731 = vst [vmem:[%s9015_s1 + $0x658] sm:$0x7f] %v7043_v29  ;;  %v7056_v36 = vsel %vm93_vm4, %v2418_v53, %v1531_v34  ;;  %v2426_v30 = vrot.slane %v47_v23, %v4149_v38  ;;  %v958_v15 = vrot.slane %v78_v55, %v4152_v39 }
 0x10e   :  { %9372 = vst [vmem:[#allocation171_spill] sm:$0xff] %v7056_v36  ;;  %3732 = vst [vmem:[%s9015_s1 + $0x660] sm:$0x7f] %v7056_v36  ;;  %v1532_v21 = vsel %vm94_vm5, %v950_v25, %v4083_v14  ;;  %v2430_v29 = vrot.slane %v47_v23, %v4152_v39  ;;  %v962_v53 = vrot.slane %v7031_v62, %v4065_v4 }
 0x10f   :  { %v2434_v34 = vrot.slane %v7029_v10, %v4065_v4  ;;  %v7075_v55 = vsel %vm93_vm4, %v2422_v0, %v1532_v21  ;;  %v1533_v36 = vsel %vm94_vm5, %v954_v44, %v4083_v14  ;;  %v1534_v25 = vsel %vm94_vm5, %v958_v15, %v4083_v14 }
 0x110   :  { %9373 = vst [vmem:[#allocation172_spill] sm:$0xff] %v7075_v55  ;;  %v966_v23 = vrot.slane %v7031_v62, %v4069_v6  ;;  %3733 = vst [vmem:[%s9015_s1 + $0x668] sm:$0x7f] %v7075_v55  ;;  %v7091_v0 = vsel %vm93_vm4, %v2426_v30, %v1533_v36  ;;  %v7095_v21 = vsel %vm93_vm4, %v2430_v29, %v1534_v25 }
 0x111   :  { %9374 = vst [vmem:[#allocation173_spill] sm:$0xff] %v7091_v0  ;;  %9375 = vst [vmem:[#allocation174_spill] sm:$0xff] %v7095_v21  ;;  %v1535_v15 = vsel %vm94_vm5, %v962_v53, %v4083_v14  ;;  %v2438_v44 = vrot.slane %v7029_v10, %v4069_v6  ;;  %v970_v30 = vrot.slane %v7031_v62, %v4072_v7 }
 0x112   :  { %3734 = vst [vmem:[%s9015_s1 + $0x670] sm:$0x7f] %v7091_v0  ;;  %3735 = vst [vmem:[%s9015_s1 + $0x678] sm:$0x7f] %v7095_v21  ;;  %v7112_v29 = vsel %vm93_vm4, %v2434_v34, %v1535_v15  ;;  %v1536_v36 = vsel %vm94_vm5, %v966_v23, %v4083_v14  ;;  %v2442_v53 = vrot.slane %v7029_v10, %v4072_v7 }
 0x113   :  { %9376 = vst [vmem:[#allocation175_spill] sm:$0xff] %v7112_v29  ;;  %3736 = vst [vmem:[%s9015_s1 + $0x680] sm:$0x7f] %v7112_v29  ;;  %v7127_v25 = vsel %vm93_vm4, %v2438_v44, %v1536_v36  ;;  %v974_v34 = vrot.slane %v7031_v62, %v4075_v11  ;;  %v2446_v23 = vrot.slane %v7029_v10, %v4075_v11 }
 0x114   :  { %9377 = vst [vmem:[#allocation176_spill] sm:$0xff] %v7127_v25  ;;  %v978_v15 = vrot.slane %v7031_v62, %v4078_v12  ;;  %3737 = vst [vmem:[%s9015_s1 + $0x688] sm:$0x7f] %v7127_v25  ;;  %v1537_v29 = vsel %vm94_vm5, %v970_v30, %v4083_v14  ;;  %v2450_v44 = vrot.slane %v7029_v10, %v4078_v12 }
 0x115   :  { %v982_v36 = vrot.slane %v7031_v62, %v4081_v13  ;;  %v2454_v21 = vrot.slane %v7029_v10, %v4081_v13  ;;  %v7150_v0 = vsel %vm93_vm4, %v2442_v53, %v1537_v29  ;;  %v1538_v25 = vsel %vm94_vm5, %v974_v34, %v4083_v14 }
 0x116   :  { %9378 = vst [vmem:[#allocation177_spill] sm:$0xff] %v7150_v0  ;;  %v1539_v30 = vsel %vm94_vm5, %v978_v15, %v4083_v14  ;;  %v986_v55 = vrot.slane %v7031_v62, %v4149_v38  ;;  %3738 = vst [vmem:[%s9015_s1 + $0x690] sm:$0x7f] %v7150_v0  ;;  %v7168_v29 = vsel %vm93_vm4, %v2446_v23, %v1538_v25 }
 0x117   :  { %9379 = vst [vmem:[#allocation178_spill] sm:$0xff] %v7168_v29  ;;  %v7172_v53 = vsel %vm93_vm4, %v2450_v44, %v1539_v30  ;;  %v1540_v34 = vsel %vm94_vm5, %v982_v36, %v4083_v14  ;;  %v2458_v15 = vrot.slane %v7029_v10, %v4149_v38  ;;  %3739 = vst [vmem:[%s9015_s1 + $0x698] sm:$0x7f] %v7168_v29 }
 0x118   :  { %9380 = vst [vmem:[#allocation179_spill] sm:$0xff] %v7172_v53  ;;  %3740 = vst [vmem:[%s9015_s1 + $0x6a0] sm:$0x7f] %v7172_v53  ;;  %v7189_v25 = vsel %vm93_vm4, %v2454_v21, %v1540_v34  ;;  %v1541_v23 = vsel %vm94_vm5, %v986_v55, %v4083_v14  ;;  %v990_v44 = vrot.slane %v7031_v62, %v4152_v39 }
 0x119   :  { %9381 = vst [vmem:[#allocation180_spill] sm:$0xff] %v7189_v25  ;;  %v2462_v36 = vrot.slane %v7029_v10, %v4152_v39  ;;  %3741 = vst [vmem:[%s9015_s1 + $0x6a8] sm:$0x7f] %v7189_v25  ;;  %v7204_v30 = vsel %vm93_vm4, %v2458_v15, %v1541_v23  ;;  %v994_v21 = vrot.slane %v80_v2, %v4065_v4 }
 0x11a   :  { %9382 = vst [vmem:[#allocation181_spill] sm:$0xff] %v7204_v30  ;;  %v2466_v55 = vrot.slane %v7160_v37, %v4065_v4  ;;  %v998_v34 = vrot.slane %v80_v2, %v4069_v6  ;;  %3742 = vst [vmem:[%s9015_s1 + $0x6b0] sm:$0x7f] %v7204_v30  ;;  %v1542_v62 = vsel %vm94_vm5, %v990_v44, %v4083_v14 }
 0x11b   :  { %v2470_v10 = vrot.slane %v7160_v37, %v4069_v6  ;;  %v1002_v15 = vrot.slane %v80_v2, %v4072_v7  ;;  %v2474_v23 = vrot.slane %v7160_v37, %v4072_v7  ;;  %v7224_v25 = vsel %vm93_vm4, %v2462_v36, %v1542_v62 }
 0x11c   :  { %9383 = vst [vmem:[#allocation182_spill] sm:$0xff] %v7224_v25  ;;  %v1543_v30 = vsel %vm94_vm5, %v994_v21, %v4083_v14  ;;  %v1544_v44 = vsel %vm94_vm5, %v998_v34, %v4083_v14  ;;  %v1006_v53 = vrot.slane %v80_v2, %v4075_v11  ;;  %3743 = vst [vmem:[%s9015_s1 + $0x6b8] sm:$0x7f] %v7224_v25 }
 0x11d   :  { %v7239_v29 = vsel %vm93_vm4, %v2466_v55, %v1543_v30  ;;  %v7243_v36 = vsel %vm93_vm4, %v2470_v10, %v1544_v44  ;;  %v1545_v21 = vsel %vm94_vm5, %v1002_v15, %v4083_v14  ;;  %v2478_v34 = vrot.slane %v7160_v37, %v4075_v11  ;;  %v7268_v15 = vld [vmem:[#allocation2 + $0x1d0] sm:$0xff] }
 0x11e   :  { %9384 = vst [vmem:[#allocation183_spill] sm:$0xff] %v7239_v29  ;;  %9385 = vst [vmem:[#allocation184_spill] sm:$0xff] %v7243_v36  ;;  %v7260_v30 = vsel %vm93_vm4, %v2474_v23, %v1545_v21  ;;  %v1546_v55 = vsel %vm94_vm5, %v1006_v53, %v4083_v14  ;;  %v1010_v62 = vrot.slane %v80_v2, %v4078_v12 }
 0x11f   :  { %3744 = vst [vmem:[%s9015_s1 + $0x6c0] sm:$0x7f] %v7239_v29  ;;  %3745 = vst [vmem:[%s9015_s1 + $0x6c8] sm:$0x7f] %v7243_v36  ;;  %v2482_v10 = vrot.slane %v7160_v37, %v4078_v12  ;;  %v7276_v23 = vsel %vm93_vm4, %v2478_v34, %v1546_v55  ;;  %v1014_v44 = vrot.slane %v80_v2, %v4081_v13  ;;  %v7282_v36 = vld [vmem:[#allocation2 + $0xe0] sm:$0xff] }
 0x120   :  { %9386 = vst [vmem:[#allocation185_spill] sm:$0xff] %v7260_v30  ;;  %3746 = vst [vmem:[%s9015_s1 + $0x6d0] sm:$0x7f] %v7260_v30  ;;  %v2486_v53 = vrot.slane %v7160_v37, %v4081_v13  ;;  %v1018_v21 = vrot.slane %v80_v2, %v4149_v38  ;;  %v1547_v30 = vsel %vm94_vm5, %v1010_v62, %v4083_v14 }
 0x121   :  { %9387 = vst [vmem:[#allocation186_spill] sm:$0xff] %v7276_v23  ;;  %3747 = vst [vmem:[%s9015_s1 + $0x6d8] sm:$0x7f] %v7276_v23  ;;  %v2490_v34 = vrot.slane %v7160_v37, %v4149_v38  ;;  %v1022_v55 = vrot.slane %v80_v2, %v4152_v39  ;;  %v2494_v29 = vrot.slane %v7160_v37, %v4152_v39 }
 0x122   :  { %v7298_v25 = vsel %vm93_vm4, %v2482_v10, %v1547_v30  ;;  %v1548_v23 = vsel %vm94_vm5, %v1014_v44, %v4083_v14  ;;  %v1549_v62 = vsel %vm94_vm5, %v1018_v21, %v4083_v14  ;;  %v1026_v0 = vrot.slane %v7268_v15, %v4065_v4 }
 0x123   :  { %9388 = vst [vmem:[#allocation187_spill] sm:$0xff] %v7298_v25  ;;  %3748 = vst [vmem:[%s9015_s1 + $0x6e0] sm:$0x7f] %v7298_v25  ;;  %v7314_v37 = vsel %vm93_vm4, %v2486_v53, %v1548_v23  ;;  %v7318_v2 = vsel %vm93_vm4, %v2490_v34, %v1549_v62  ;;  %v1550_v30 = vsel %vm94_vm5, %v1022_v55, %v4083_v14  ;;  %v51_v25 = vld [vmem:[#allocation2 + $0xe8] sm:$0xff] }
 0x124   :  { %9389 = vst [vmem:[#allocation188_spill] sm:$0xff] %v7314_v37  ;;  %9390 = vst [vmem:[#allocation189_spill] sm:$0xff] %v7318_v2  ;;  %v2498_v10 = vrot.slane %v7282_v36, %v4065_v4  ;;  %v7335_v23 = vsel %vm93_vm4, %v2494_v29, %v1550_v30  ;;  %v1551_v44 = vsel %vm94_vm5, %v1026_v0, %v4083_v14 }
 0x125   :  { %3749 = vst [vmem:[%s9015_s1 + $0x6e8] sm:$0x7f] %v7314_v37  ;;  %3750 = vst [vmem:[%s9015_s1 + $0x6f0] sm:$0x7f] %v7318_v2  ;;  %v1030_v53 = vrot.slane %v7268_v15, %v4069_v6  ;;  %v2502_v21 = vrot.slane %v7282_v36, %v4069_v6  ;;  %v1034_v29 = vrot.slane %v7268_v15, %v4072_v7  ;;  %v7383_v37 = vld [vmem:[#allocation2 + $0x1d8] sm:$0xff] }
 0x126   :  { %9391 = vst [vmem:[#allocation190_spill] sm:$0xff] %v7335_v23  ;;  %3751 = vst [vmem:[%s9015_s1 + $0x6f8] sm:$0x7f] %v7335_v23  ;;  %v7350_v34 = vsel %vm93_vm4, %v2498_v10, %v1551_v44  ;;  %v2506_v0 = vrot.slane %v7282_v36, %v4072_v7  ;;  %v1038_v55 = vrot.slane %v7268_v15, %v4075_v11 }
 0x127   :  { %9392 = vst [vmem:[#allocation191_spill] sm:$0xff] %v7350_v34  ;;  %3752 = vst [vmem:[%s9015_s1 + $0x700] sm:$0x7f] %v7350_v34  ;;  %v1552_v62 = vsel %vm94_vm5, %v1030_v53, %v4083_v14  ;;  %v2510_v30 = vrot.slane %v7282_v36, %v4075_v11  ;;  %v1042_v10 = vrot.slane %v7268_v15, %v4078_v12 }
 0x128   :  { %v2514_v44 = vrot.slane %v7282_v36, %v4078_v12  ;;  %v7373_v23 = vsel %vm93_vm4, %v2502_v21, %v1552_v62  ;;  %v1553_v34 = vsel %vm94_vm5, %v1034_v29, %v4083_v14  ;;  %v1554_v53 = vsel %vm94_vm5, %v1038_v55, %v4083_v14 }
 0x129   :  { %v1046_v2 = vrot.slane %v7268_v15, %v4081_v13  ;;  %3753 = vst [vmem:[%s9015_s1 + $0x708] sm:$0x7f] %v7373_v23  ;;  %v7392_v21 = vsel %vm93_vm4, %v2506_v0, %v1553_v34  ;;  %v7396_v29 = vsel %vm93_vm4, %v2510_v30, %v1554_v53  ;;  %v1555_v55 = vsel %vm94_vm5, %v1042_v10, %v4083_v14 }
 0x12a   :  { %9393 = vst [vmem:[#allocation192_spill] sm:$0xff] %v7396_v29  ;;  %v2518_v62 = vrot.slane %v7282_v36, %v4081_v13  ;;  %3754 = vst [vmem:[%s9015_s1 + $0x710] sm:$0x7f] %v7392_v21  ;;  %v7413_v34 = vsel %vm93_vm4, %v2514_v44, %v1555_v55  ;;  %v1050_v30 = vrot.slane %v7268_v15, %v4149_v38 }
 0x12b   :  { %3755 = vst [vmem:[%s9015_s1 + $0x718] sm:$0x7f] %v7396_v29  ;;  %9394 = vst [vmem:[#allocation193_spill] sm:$0xff] %v7413_v34  ;;  %v1556_v0 = vsel %vm94_vm5, %v1046_v2, %v4083_v14  ;;  %v2522_v10 = vrot.slane %v7282_v36, %v4149_v38  ;;  %v1054_v44 = vrot.slane %v7268_v15, %v4152_v39 }
 0x12c   :  { %3756 = vst [vmem:[%s9015_s1 + $0x720] sm:$0x7f] %v7413_v34  ;;  %v7428_v53 = vsel %vm93_vm4, %v2518_v62, %v1556_v0  ;;  %v2526_v2 = vrot.slane %v7282_v36, %v4152_v39  ;;  %v1058_v55 = vrot.slane %v7383_v37, %v4065_v4  ;;  %v1557_v34 = vsel %vm94_vm5, %v1050_v30, %v4083_v14 }
 0x12d   :  { %9395 = vst [vmem:[#allocation194_spill] sm:$0xff] %v7428_v53  ;;  %3757 = vst [vmem:[%s9015_s1 + $0x728] sm:$0x7f] %v7428_v53  ;;  %v2530_v62 = vrot.slane %v51_v25, %v4065_v4  ;;  %v1062_v15 = vrot.slane %v7383_v37, %v4069_v6  ;;  %v2534_v0 = vrot.slane %v51_v25, %v4069_v6 }
 0x12e   :  { %v7449_v36 = vsel %vm93_vm4, %v2522_v10, %v1557_v34  ;;  %v1558_v29 = vsel %vm94_vm5, %v1054_v44, %v4083_v14  ;;  %v1559_v53 = vsel %vm94_vm5, %v1058_v55, %v4083_v14  ;;  %v1066_v4 = vrot.slane %v7383_v37, %v4072_v7 }
 0x12f   :  { %3758 = vst [vmem:[%s9015_s1 + $0x730] sm:$0x7f] %v7449_v36  ;;  %v7465_v6 = vsel %vm93_vm4, %v2526_v2, %v1558_v29  ;;  %v7469_v34 = vsel %vm93_vm4, %v2530_v62, %v1559_v53  ;;  %v1560_v30 = vsel %vm94_vm5, %v1062_v15, %v4083_v14  ;;  %v2538_v10 = vrot.slane %v51_v25, %v4072_v7 }
 0x130   :  { %3759 = vst [vmem:[%s9015_s1 + $0x738] sm:$0x7f] %v7465_v6  ;;  %3760 = vst [vmem:[%s9015_s1 + $0x740] sm:$0x7f] %v7469_v34  ;;  %v7485_v29 = vsel %vm93_vm4, %v2534_v0, %v1560_v30  ;;  %v1561_v53 = vsel %vm94_vm5, %v1066_v4, %v4083_v14  ;;  %v1070_v7 = vrot.slane %v7383_v37, %v4075_v11 }
 0x131   :  { %v2542_v44 = vrot.slane %v51_v25, %v4075_v11  ;;  %3761 = vst [vmem:[%s9015_s1 + $0x748] sm:$0x7f] %v7485_v29  ;;  %v7499_v2 = vsel %vm93_vm4, %v2538_v10, %v1561_v53  ;;  %v1074_v55 = vrot.slane %v7383_v37, %v4078_v12  ;;  %v2546_v62 = vrot.slane %v51_v25, %v4078_v12 }
 0x132   :  { %v1078_v15 = vrot.slane %v7383_v37, %v4081_v13  ;;  %3762 = vst [vmem:[%s9015_s1 + $0x750] sm:$0x7f] %v7499_v2  ;;  %v1562_v11 = vsel %vm94_vm5, %v1070_v7, %v4083_v14  ;;  %v2550_v0 = vrot.slane %v51_v25, %v4081_v13  ;;  %v1082_v4 = vrot.slane %v7383_v37, %v4149_v38 }
 0x133   :  { %v2554_v30 = vrot.slane %v51_v25, %v4149_v38  ;;  %v7519_v12 = vsel %vm93_vm4, %v2542_v44, %v1562_v11  ;;  %v1563_v10 = vsel %vm94_vm5, %v1074_v55, %v4083_v14  ;;  %v1086_v13 = vrot.slane %v7383_v37, %v4152_v39  ;;  %v9397_v11 = vld [vmem:[#allocation6_spill] sm:$0xff] }
 0x134   :  { %v1564_v53 = vsel %vm94_vm5, %v1078_v15, %v4083_v14  ;;  %3763 = vst [vmem:[%s9015_s1 + $0x758] sm:$0x7f] %v7519_v12  ;;  %v7535_v38 = vsel %vm93_vm4, %v2546_v62, %v1563_v10  ;;  %v1565_v44 = vsel %vm94_vm5, %v1082_v4, %v4083_v14  ;;  %v2558_v55 = vrot.slane %v51_v25, %v4152_v39 }
 0x135   :  { %v7539_v7 = vsel %vm93_vm4, %v2550_v0, %v1564_v53  ;;  %3764 = vst [vmem:[%s9015_s1 + $0x760] sm:$0x7f] %v7535_v38  ;;  %v7555_v37 = vsel %vm93_vm4, %v2554_v30, %v1565_v44  ;;  %v1566_v62 = vsel %vm94_vm5, %v1086_v13, %v4083_v14  ;;  %v3288_v39 = vsel %vm3039_vm6, 1.5707963, %v4102_v26  ;;  %v9399_v30 = vld [vmem:[#allocation8_spill] sm:$0xff]  ;;  %v9400_v53 = vld [vmem:[#allocation9_spill] sm:$0xff] }
 0x136   :  { %3765 = vst [vmem:[%s9015_s1 + $0x768] sm:$0x7f] %v7539_v7  ;;  %3766 = vst [vmem:[%s9015_s1 + $0x770] sm:$0x7f] %v7555_v37  ;;  %v7569_v25 = vsel %vm93_vm4, %v2558_v55, %v1566_v62  ;;  %v3289_v14 = vsel %vm3039_vm6, 1.5707963, %v4106_v27 }
 0x137   :  { %3769 = vst [vmem:[%s9015_s1 + $0x780] sm:$0x7f] %v3288_v39  ;;  %v3290_v26 = vsel %vm3039_vm6, 1.5707963, %v4128_v32  ;;  %v3291_v15 = vsel %vm3039_vm6, 1.5707963, %v4132_v33 }
 0x138   :  { %3768 = vst.msk [vmem:[%s9015_s1 + $0x778] sm:$0x7f] %vm3767_vm7, %v7569_v25  ;;  %3770 = vst [vmem:[%s9015_s1 + $0x788] sm:$0x7f] %v3289_v14  ;;  %v3292_v27 = vsel %vm3039_vm6, 1.5707963, %v4156_v40 }
 0x139   :  { %3771 = vst [vmem:[%s9015_s1 + $0x790] sm:$0x7f] %v3290_v26  ;;  %3772 = vst [vmem:[%s9015_s1 + $0x798] sm:$0x7f] %v3291_v15  ;;  %v3293_v32 = vsel %vm3039_vm6, 1.5707963, %v4176_v48 }
 0x13a   :  { %v3294_v33 = vsel %vm3039_vm6, 1.5707963, %v4203_v56  ;;  %3773 = vst [vmem:[%s9015_s1 + $0x7a0] sm:$0x7f] %v3292_v27  ;;  %3774 = vst [vmem:[%s9015_s1 + $0x7a8] sm:$0x7f] %v3293_v32 }
 0x13b   :  { %3775 = vst [vmem:[%s9015_s1 + $0x7b0] sm:$0x7f] %v3294_v33  ;;  %v3295_v40 = vsel %vm3039_vm6, 1.5707963, %v4207_v57  ;;  %v3296_v48 = vsel %vm3039_vm6, 1.5707963, %v4197_v54 }
 0x13c   :  { %v3297_v56 = vsel %vm3039_vm6, 1.5707963, %v4227_v60  ;;  %3776 = vst [vmem:[%s9015_s1 + $0x7b8] sm:$0x7f] %v3295_v40  ;;  %3777 = vst [vmem:[%s9015_s1 + $0x7c0] sm:$0x7f] %v3296_v48 }
 0x13d   :  { %3778 = vst [vmem:[%s9015_s1 + $0x7c8] sm:$0x7f] %v3297_v56  ;;  %v3298_v54 = vsel %vm3039_vm6, 1.5707963, %v4250_v8  ;;  %v3299_v57 = vsel %vm3039_vm6, 1.5707963, %v4268_v18 }
 0x13e   :  { %v3300_v60 = vsel %vm3039_vm6, 1.5707963, %v4272_v19  ;;  %3779 = vst [vmem:[%s9015_s1 + $0x7d0] sm:$0x7f] %v3298_v54  ;;  %3780 = vst [vmem:[%s9015_s1 + $0x7d8] sm:$0x7f] %v3299_v57 }
 0x13f   :  { %3781 = vst [vmem:[%s9015_s1 + $0x7e0] sm:$0x7f] %v3300_v60  ;;  %v3301_v8 = vsel %vm3039_vm6, 1.5707963, %v4289_v22  ;;  %v3302_v18 = vsel %vm3039_vm6, 1.5707963, %v4304_v28 }
 0x140   :  { %v3303_v19 = vsel %vm3039_vm6, 1.5707963, %v4324_v41  ;;  %3782 = vst [vmem:[%s9015_s1 + $0x7e8] sm:$0x7f] %v3301_v8  ;;  %3783 = vst [vmem:[%s9015_s1 + $0x7f0] sm:$0x7f] %v3302_v18 }
 0x141   :  { %3784 = vst [vmem:[%s9015_s1 + $0x7f8] sm:$0x7f] %v3303_v19  ;;  %v3304_v22 = vsel %vm3039_vm6, 1.5707963, %v4339_v45  ;;  %v3305_v28 = vsel %vm3039_vm6, 1.5707963, %v4343_v46 }
 0x142   :  { %v3306_v41 = vsel %vm3039_vm6, 1.5707963, %v4360_v50  ;;  %3785 = vst [vmem:[%s9015_s1 + $0x800] sm:$0x7f] %v3304_v22  ;;  %3786 = vst [vmem:[%s9015_s1 + $0x808] sm:$0x7f] %v3305_v28 }
 0x143   :  { %3787 = vst [vmem:[%s9015_s1 + $0x810] sm:$0x7f] %v3306_v41  ;;  %v3307_v45 = vsel %vm3039_vm6, 1.5707963, %v4376_v58  ;;  %v3308_v46 = vsel %vm3039_vm6, 1.5707963, %v4398_v9 }
 0x144   :  { %v3309_v50 = vsel %vm3039_vm6, 1.5707963, %v4414_v16  ;;  %3788 = vst [vmem:[%s9015_s1 + $0x818] sm:$0x7f] %v3307_v45  ;;  %3789 = vst [vmem:[%s9015_s1 + $0x820] sm:$0x7f] %v3308_v46 }
 0x145   :  { %3790 = vst [vmem:[%s9015_s1 + $0x828] sm:$0x7f] %v3309_v50  ;;  %v3310_v58 = vsel %vm3039_vm6, 1.5707963, %v4418_v17  ;;  %v3311_v9 = vsel %vm3039_vm6, 1.5707963, %v4435_v24 }
 0x146   :  { %v3312_v16 = vsel %vm3039_vm6, 1.5707963, %v4450_v35  ;;  %3791 = vst [vmem:[%s9015_s1 + $0x830] sm:$0x7f] %v3310_v58  ;;  %3792 = vst [vmem:[%s9015_s1 + $0x838] sm:$0x7f] %v3311_v9 }
 0x147   :  { %3793 = vst [vmem:[%s9015_s1 + $0x840] sm:$0x7f] %v3312_v16  ;;  %v3313_v17 = vsel %vm3039_vm6, 1.5707963, %v4473_v47  ;;  %v3314_v24 = vsel %vm3039_vm6, 1.5707963, %v4491_v59 }
 0x148   :  { %v3315_v35 = vsel %vm3039_vm6, 1.5707963, %v4495_v61  ;;  %3794 = vst [vmem:[%s9015_s1 + $0x848] sm:$0x7f] %v3313_v17  ;;  %3795 = vst [vmem:[%s9015_s1 + $0x850] sm:$0x7f] %v3314_v24 }
 0x149   :  { %3796 = vst [vmem:[%s9015_s1 + $0x858] sm:$0x7f] %v3315_v35  ;;  %v3316_v47 = vsel %vm3039_vm6, 1.5707963, %v4512_v3  ;;  %v3317_v59 = vsel %vm3039_vm6, 1.5707963, %v4527_v20 }
 0x14a   :  { %v3318_v61 = vsel %vm3039_vm6, 1.5707963, %v4548_v63  ;;  %3797 = vst [vmem:[%s9015_s1 + $0x860] sm:$0x7f] %v3316_v47  ;;  %3798 = vst [vmem:[%s9015_s1 + $0x868] sm:$0x7f] %v3317_v59 }
 0x14b   :  { %3799 = vst [vmem:[%s9015_s1 + $0x870] sm:$0x7f] %v3318_v61  ;;  %v3319_v3 = vsel %vm3039_vm6, 1.5707963, %v4564_v42  ;;  %v3320_v20 = vsel %vm3039_vm6, 1.5707963, %v4568_v43 }
 0x14c   :  { %v3321_v63 = vsel %vm3039_vm6, 1.5707963, %v4584_v51  ;;  %3800 = vst [vmem:[%s9015_s1 + $0x878] sm:$0x7f] %v3319_v3  ;;  %3801 = vst [vmem:[%s9015_s1 + $0x880] sm:$0x7f] %v3320_v20 }
 0x14d   :  { %3802 = vst [vmem:[%s9015_s1 + $0x888] sm:$0x7f] %v3321_v63  ;;  %v3322_v42 = vsel %vm3039_vm6, 1.5707963, %v4598_v5  ;;  %v3323_v43 = vsel %vm3039_vm6, 1.5707963, %v4618_v31 }
 0x14e   :  { %v3324_v51 = vsel %vm3039_vm6, 1.5707963, %v4634_v49  ;;  %3803 = vst [vmem:[%s9015_s1 + $0x890] sm:$0x7f] %v3322_v42  ;;  %3804 = vst [vmem:[%s9015_s1 + $0x898] sm:$0x7f] %v3323_v43 }
 0x14f   :  { %3805 = vst [vmem:[%s9015_s1 + $0x8a0] sm:$0x7f] %v3324_v51  ;;  %v3325_v5 = vsel %vm3039_vm6, 1.5707963, %v4638_v52  ;;  %v9396_v31 = vld [vmem:[#allocation5_spill] sm:$0xff]  ;;  %v9398_v52 = vld [vmem:[#allocation7_spill] sm:$0xff] }
 0x150   :  { %v3326_v49 = vsel %vm3039_vm6, 1.5707963, %v9396_v31  ;;  %v3327_v0 = vsel %vm3039_vm6, 1.5707963, %v9397_v11  ;;  %3806 = vst [vmem:[%s9015_s1 + $0x8a8] sm:$0x7f] %v3325_v5 }
 0x151   :  { %3807 = vst [vmem:[%s9015_s1 + $0x8b0] sm:$0x7f] %v3326_v49  ;;  %3808 = vst [vmem:[%s9015_s1 + $0x8b8] sm:$0x7f] %v3327_v0  ;;  %v3328_v4 = vsel %vm3039_vm6, 1.5707963, %v9398_v52 }
 0x152   :  { %v3329_v10 = vsel %vm3039_vm6, 1.5707963, %v9399_v30  ;;  %v3330_v13 = vsel %vm3039_vm6, 1.5707963, %v9400_v53  ;;  %3809 = vst [vmem:[%s9015_s1 + $0x8c0] sm:$0x7f] %v3328_v4 }
 0x153   :  { %3810 = vst [vmem:[%s9015_s1 + $0x8c8] sm:$0x7f] %v3329_v10  ;;  %3811 = vst [vmem:[%s9015_s1 + $0x8d0] sm:$0x7f] %v3330_v13  ;;  %v9401_v44 = vld [vmem:[#allocation10_spill] sm:$0xff]  ;;  %v9402_v62 = vld [vmem:[#allocation11_spill] sm:$0xff] }
 0x154   :  { %v3331_v55 = vsel %vm3039_vm6, 1.5707963, %v9401_v44  ;;  %v3332_v39 = vsel %vm3039_vm6, 1.5707963, %v9402_v62  ;;  %v9403_v14 = vld [vmem:[#allocation12_spill] sm:$0xff]  ;;  %v9404_v15 = vld [vmem:[#allocation13_spill] sm:$0xff] }
 0x155   :  { %v3333_v26 = vsel %vm3039_vm6, 1.5707963, %v9403_v14  ;;  %3812 = vst [vmem:[%s9015_s1 + $0x8d8] sm:$0x7f] %v3331_v55  ;;  %3813 = vst [vmem:[%s9015_s1 + $0x8e0] sm:$0x7f] %v3332_v39 }
 0x156   :  { %3814 = vst [vmem:[%s9015_s1 + $0x8e8] sm:$0x7f] %v3333_v26  ;;  %v3334_v27 = vsel %vm3039_vm6, 1.5707963, %v9404_v15  ;;  %v9405_v32 = vld [vmem:[#allocation14_spill] sm:$0xff]  ;;  %v9406_v40 = vld [vmem:[#allocation15_spill] sm:$0xff] }
 0x157   :  { %v3335_v33 = vsel %vm3039_vm6, 1.5707963, %v9405_v32  ;;  %v3336_v48 = vsel %vm3039_vm6, 1.5707963, %v9406_v40  ;;  %3815 = vst [vmem:[%s9015_s1 + $0x8f0] sm:$0x7f] %v3334_v27 }
 0x158   :  { %3816 = vst [vmem:[%s9015_s1 + $0x8f8] sm:$0x7f] %v3335_v33  ;;  %3817 = vst [vmem:[%s9015_s1 + $0x900] sm:$0x7f] %v3336_v48  ;;  %v9407_v56 = vld [vmem:[#allocation16_spill] sm:$0xff]  ;;  %v9408_v57 = vld [vmem:[#allocation17_spill] sm:$0xff] }
 0x159   :  { %v3337_v54 = vsel %vm3039_vm6, 1.5707963, %v9407_v56  ;;  %v3338_v60 = vsel %vm3039_vm6, 1.5707963, %v9408_v57  ;;  %v9409_v8 = vld [vmem:[#allocation18_spill] sm:$0xff]  ;;  %v9410_v19 = vld [vmem:[#allocation19_spill] sm:$0xff] }
 0x15a   :  { %v3339_v18 = vsel %vm3039_vm6, 1.5707963, %v9409_v8  ;;  %3818 = vst [vmem:[%s9015_s1 + $0x908] sm:$0x7f] %v3337_v54  ;;  %3819 = vst [vmem:[%s9015_s1 + $0x910] sm:$0x7f] %v3338_v60 }
 0x15b   :  { %3820 = vst [vmem:[%s9015_s1 + $0x918] sm:$0x7f] %v3339_v18  ;;  %v3340_v22 = vsel %vm3039_vm6, 1.5707963, %v9410_v19  ;;  %v9411_v28 = vld [vmem:[#allocation20_spill] sm:$0xff]  ;;  %v9412_v45 = vld [vmem:[#allocation21_spill] sm:$0xff] }
 0x15c   :  { %v3341_v41 = vsel %vm3039_vm6, 1.5707963, %v9411_v28  ;;  %v3342_v46 = vsel %vm3039_vm6, 1.5707963, %v9412_v45  ;;  %3821 = vst [vmem:[%s9015_s1 + $0x920] sm:$0x7f] %v3340_v22 }
 0x15d   :  { %3822 = vst [vmem:[%s9015_s1 + $0x928] sm:$0x7f] %v3341_v41  ;;  %3823 = vst [vmem:[%s9015_s1 + $0x930] sm:$0x7f] %v3342_v46  ;;  %v9413_v50 = vld [vmem:[#allocation22_spill] sm:$0xff]  ;;  %v9414_v9 = vld [vmem:[#allocation23_spill] sm:$0xff] }
 0x15e   :  { %v3343_v58 = vsel %vm3039_vm6, 1.5707963, %v9413_v50  ;;  %v3344_v16 = vsel %vm3039_vm6, 1.5707963, %v9414_v9  ;;  %v9415_v17 = vld [vmem:[#allocation24_spill] sm:$0xff]  ;;  %v9416_v35 = vld [vmem:[#allocation25_spill] sm:$0xff] }
 0x15f   :  { %v3345_v24 = vsel %vm3039_vm6, 1.5707963, %v9415_v17  ;;  %3824 = vst [vmem:[%s9015_s1 + $0x938] sm:$0x7f] %v3343_v58  ;;  %3825 = vst [vmem:[%s9015_s1 + $0x940] sm:$0x7f] %v3344_v16 }
 0x160   :  { %3826 = vst [vmem:[%s9015_s1 + $0x948] sm:$0x7f] %v3345_v24  ;;  %v3346_v47 = vsel %vm3039_vm6, 1.5707963, %v9416_v35  ;;  %v9417_v59 = vld [vmem:[#allocation26_spill] sm:$0xff]  ;;  %v9418_v3 = vld [vmem:[#allocation27_spill] sm:$0xff] }
 0x161   :  { %v3347_v61 = vsel %vm3039_vm6, 1.5707963, %v9417_v59  ;;  %v3348_v20 = vsel %vm3039_vm6, 1.5707963, %v9418_v3  ;;  %3827 = vst [vmem:[%s9015_s1 + $0x950] sm:$0x7f] %v3346_v47 }
 0x162   :  { %3828 = vst [vmem:[%s9015_s1 + $0x958] sm:$0x7f] %v3347_v61  ;;  %3829 = vst [vmem:[%s9015_s1 + $0x960] sm:$0x7f] %v3348_v20  ;;  %v9419_v63 = vld [vmem:[#allocation28_spill] sm:$0xff]  ;;  %v9420_v43 = vld [vmem:[#allocation29_spill] sm:$0xff] }
 0x163   :  { %v3349_v42 = vsel %vm3039_vm6, 1.5707963, %v9419_v63  ;;  %v3350_v51 = vsel %vm3039_vm6, 1.5707963, %v9420_v43  ;;  %v9421_v5 = vld [vmem:[#allocation30_spill] sm:$0xff]  ;;  %v9422_v49 = vld [vmem:[#allocation31_spill] sm:$0xff] }
 0x164   :  { %v3351_v31 = vsel %vm3039_vm6, 1.5707963, %v9421_v5  ;;  %3830 = vst [vmem:[%s9015_s1 + $0x968] sm:$0x7f] %v3349_v42  ;;  %3831 = vst [vmem:[%s9015_s1 + $0x970] sm:$0x7f] %v3350_v51 }
 0x165   :  { %3832 = vst [vmem:[%s9015_s1 + $0x978] sm:$0x7f] %v3351_v31  ;;  %v3352_v11 = vsel %vm3039_vm6, 1.5707963, %v9422_v49  ;;  %v9423_v0 = vld [vmem:[#allocation32_spill] sm:$0xff]  ;;  %v9424_v4 = vld [vmem:[#allocation33_spill] sm:$0xff] }
 0x166   :  { %v3353_v52 = vsel %vm3039_vm6, 1.5707963, %v9423_v0  ;;  %v3354_v30 = vsel %vm3039_vm6, 1.5707963, %v9424_v4  ;;  %3833 = vst [vmem:[%s9015_s1 + $0x980] sm:$0x7f] %v3352_v11 }
 0x167   :  { %3834 = vst [vmem:[%s9015_s1 + $0x988] sm:$0x7f] %v3353_v52  ;;  %3835 = vst [vmem:[%s9015_s1 + $0x990] sm:$0x7f] %v3354_v30  ;;  %v9425_v10 = vld [vmem:[#allocation34_spill] sm:$0xff]  ;;  %v9426_v13 = vld [vmem:[#allocation35_spill] sm:$0xff] }
 0x168   :  { %v3355_v53 = vsel %vm3039_vm6, 1.5707963, %v9425_v10  ;;  %v3356_v44 = vsel %vm3039_vm6, 1.5707963, %v9426_v13  ;;  %v9427_v55 = vld [vmem:[#allocation36_spill] sm:$0xff]  ;;  %v9428_v39 = vld [vmem:[#allocation37_spill] sm:$0xff] }
 0x169   :  { %v3357_v62 = vsel %vm3039_vm6, 1.5707963, %v9427_v55  ;;  %3836 = vst [vmem:[%s9015_s1 + $0x998] sm:$0x7f] %v3355_v53  ;;  %3837 = vst [vmem:[%s9015_s1 + $0x9a0] sm:$0x7f] %v3356_v44 }
 0x16a   :  { %3838 = vst [vmem:[%s9015_s1 + $0x9a8] sm:$0x7f] %v3357_v62  ;;  %v3358_v14 = vsel %vm3039_vm6, 1.5707963, %v9428_v39  ;;  %v9429_v26 = vld [vmem:[#allocation38_spill] sm:$0xff]  ;;  %v9430_v27 = vld [vmem:[#allocation39_spill] sm:$0xff] }
 0x16b   :  { %v3359_v15 = vsel %vm3039_vm6, 1.5707963, %v9429_v26  ;;  %v3360_v32 = vsel %vm3039_vm6, 1.5707963, %v9430_v27  ;;  %3839 = vst [vmem:[%s9015_s1 + $0x9b0] sm:$0x7f] %v3358_v14 }
 0x16c   :  { %3840 = vst [vmem:[%s9015_s1 + $0x9b8] sm:$0x7f] %v3359_v15  ;;  %3841 = vst [vmem:[%s9015_s1 + $0x9c0] sm:$0x7f] %v3360_v32  ;;  %v9431_v33 = vld [vmem:[#allocation40_spill] sm:$0xff]  ;;  %v9432_v48 = vld [vmem:[#allocation41_spill] sm:$0xff] }
 0x16d   :  { %v3361_v40 = vsel %vm3039_vm6, 1.5707963, %v9431_v33  ;;  %v3362_v56 = vsel %vm3039_vm6, 1.5707963, %v9432_v48  ;;  %v9433_v54 = vld [vmem:[#allocation42_spill] sm:$0xff]  ;;  %v9434_v60 = vld [vmem:[#allocation43_spill] sm:$0xff] }
 0x16e   :  { %v3363_v57 = vsel %vm3039_vm6, 1.5707963, %v9433_v54  ;;  %3842 = vst [vmem:[%s9015_s1 + $0x9c8] sm:$0x7f] %v3361_v40  ;;  %3843 = vst [vmem:[%s9015_s1 + $0x9d0] sm:$0x7f] %v3362_v56 }
 0x16f   :  { %3844 = vst [vmem:[%s9015_s1 + $0x9d8] sm:$0x7f] %v3363_v57  ;;  %v3364_v8 = vsel %vm3039_vm6, 1.5707963, %v9434_v60  ;;  %v9435_v18 = vld [vmem:[#allocation44_spill] sm:$0xff]  ;;  %v9436_v22 = vld [vmem:[#allocation45_spill] sm:$0xff] }
 0x170   :  { %v3365_v19 = vsel %vm3039_vm6, 1.5707963, %v9435_v18  ;;  %v3366_v28 = vsel %vm3039_vm6, 1.5707963, %v9436_v22  ;;  %3845 = vst [vmem:[%s9015_s1 + $0x9e0] sm:$0x7f] %v3364_v8 }
 0x171   :  { %3846 = vst [vmem:[%s9015_s1 + $0x9e8] sm:$0x7f] %v3365_v19  ;;  %3847 = vst [vmem:[%s9015_s1 + $0x9f0] sm:$0x7f] %v3366_v28  ;;  %v9437_v41 = vld [vmem:[#allocation46_spill] sm:$0xff]  ;;  %v9438_v46 = vld [vmem:[#allocation47_spill] sm:$0xff] }
 0x172   :  { %v3367_v45 = vsel %vm3039_vm6, 1.5707963, %v9437_v41  ;;  %v3368_v50 = vsel %vm3039_vm6, 1.5707963, %v9438_v46  ;;  %v9439_v58 = vld [vmem:[#allocation48_spill] sm:$0xff]  ;;  %v9440_v16 = vld [vmem:[#allocation49_spill] sm:$0xff] }
 0x173   :  { %v3369_v9 = vsel %vm3039_vm6, 1.5707963, %v9439_v58  ;;  %3848 = vst [vmem:[%s9015_s1 + $0x9f8] sm:$0x7f] %v3367_v45  ;;  %3849 = vst [vmem:[%s9015_s1 + $0xa00] sm:$0x7f] %v3368_v50 }
 0x174   :  { %3850 = vst [vmem:[%s9015_s1 + $0xa08] sm:$0x7f] %v3369_v9  ;;  %v3370_v17 = vsel %vm3039_vm6, 1.5707963, %v9440_v16  ;;  %v9441_v24 = vld [vmem:[#allocation50_spill] sm:$0xff]  ;;  %v9442_v47 = vld [vmem:[#allocation51_spill] sm:$0xff] }
 0x175   :  { %v3371_v35 = vsel %vm3039_vm6, 1.5707963, %v9441_v24  ;;  %v3372_v59 = vsel %vm3039_vm6, 1.5707963, %v9442_v47  ;;  %3851 = vst [vmem:[%s9015_s1 + $0xa10] sm:$0x7f] %v3370_v17 }
 0x176   :  { %3852 = vst [vmem:[%s9015_s1 + $0xa18] sm:$0x7f] %v3371_v35  ;;  %3853 = vst [vmem:[%s9015_s1 + $0xa20] sm:$0x7f] %v3372_v59  ;;  %v9443_v61 = vld [vmem:[#allocation52_spill] sm:$0xff]  ;;  %v9444_v20 = vld [vmem:[#allocation53_spill] sm:$0xff] }
 0x177   :  { %v3373_v3 = vsel %vm3039_vm6, 1.5707963, %v9443_v61  ;;  %v3374_v63 = vsel %vm3039_vm6, 1.5707963, %v9444_v20  ;;  %v9445_v42 = vld [vmem:[#allocation54_spill] sm:$0xff]  ;;  %v9446_v51 = vld [vmem:[#allocation55_spill] sm:$0xff] }
 0x178   :  { %v3375_v43 = vsel %vm3039_vm6, 1.5707963, %v9445_v42  ;;  %3854 = vst [vmem:[%s9015_s1 + $0xa28] sm:$0x7f] %v3373_v3  ;;  %3855 = vst [vmem:[%s9015_s1 + $0xa30] sm:$0x7f] %v3374_v63 }
 0x179   :  { %3856 = vst [vmem:[%s9015_s1 + $0xa38] sm:$0x7f] %v3375_v43  ;;  %v3376_v5 = vsel %vm3039_vm6, 1.5707963, %v9446_v51  ;;  %v9447_v31 = vld [vmem:[#allocation56_spill] sm:$0xff]  ;;  %v9448_v11 = vld [vmem:[#allocation57_spill] sm:$0xff] }
 0x17a   :  { %v3377_v49 = vsel %vm3039_vm6, 1.5707963, %v9447_v31  ;;  %v3378_v0 = vsel %vm3039_vm6, 1.5707963, %v9448_v11  ;;  %3857 = vst [vmem:[%s9015_s1 + $0xa40] sm:$0x7f] %v3376_v5 }
 0x17b   :  { %3858 = vst [vmem:[%s9015_s1 + $0xa48] sm:$0x7f] %v3377_v49  ;;  %3859 = vst [vmem:[%s9015_s1 + $0xa50] sm:$0x7f] %v3378_v0  ;;  %v9449_v52 = vld [vmem:[#allocation58_spill] sm:$0xff]  ;;  %v9450_v30 = vld [vmem:[#allocation59_spill] sm:$0xff] }
 0x17c   :  { %v3379_v4 = vsel %vm3039_vm6, 1.5707963, %v9449_v52  ;;  %v3380_v10 = vsel %vm3039_vm6, 1.5707963, %v9450_v30  ;;  %v9451_v53 = vld [vmem:[#allocation60_spill] sm:$0xff]  ;;  %v9452_v44 = vld [vmem:[#allocation61_spill] sm:$0xff] }
 0x17d   :  { %v3381_v13 = vsel %vm3039_vm6, 1.5707963, %v9451_v53  ;;  %3860 = vst [vmem:[%s9015_s1 + $0xa58] sm:$0x7f] %v3379_v4  ;;  %3861 = vst [vmem:[%s9015_s1 + $0xa60] sm:$0x7f] %v3380_v10 }
 0x17e   :  { %3862 = vst [vmem:[%s9015_s1 + $0xa68] sm:$0x7f] %v3381_v13  ;;  %v3382_v55 = vsel %vm3039_vm6, 1.5707963, %v9452_v44  ;;  %v9453_v62 = vld [vmem:[#allocation62_spill] sm:$0xff]  ;;  %v9454_v14 = vld [vmem:[#allocation63_spill] sm:$0xff] }
 0x17f   :  { %v3383_v39 = vsel %vm3039_vm6, 1.5707963, %v9453_v62  ;;  %v3384_v26 = vsel %vm3039_vm6, 1.5707963, %v9454_v14  ;;  %3863 = vst [vmem:[%s9015_s1 + $0xa70] sm:$0x7f] %v3382_v55 }
 0x180   :  { %3864 = vst [vmem:[%s9015_s1 + $0xa78] sm:$0x7f] %v3383_v39  ;;  %3865 = vst [vmem:[%s9015_s1 + $0xa80] sm:$0x7f] %v3384_v26  ;;  %v9455_v15 = vld [vmem:[#allocation64_spill] sm:$0xff]  ;;  %v9456_v32 = vld [vmem:[#allocation65_spill] sm:$0xff] }
 0x181   :  { %v3385_v27 = vsel %vm3039_vm6, 1.5707963, %v9455_v15  ;;  %v3386_v33 = vsel %vm3039_vm6, 1.5707963, %v9456_v32  ;;  %v9457_v40 = vld [vmem:[#allocation66_spill] sm:$0xff]  ;;  %v9458_v56 = vld [vmem:[#allocation67_spill] sm:$0xff] }
 0x182   :  { %v3387_v48 = vsel %vm3039_vm6, 1.5707963, %v9457_v40  ;;  %3866 = vst [vmem:[%s9015_s1 + $0xa88] sm:$0x7f] %v3385_v27  ;;  %3867 = vst [vmem:[%s9015_s1 + $0xa90] sm:$0x7f] %v3386_v33 }
 0x183   :  { %3868 = vst [vmem:[%s9015_s1 + $0xa98] sm:$0x7f] %v3387_v48  ;;  %v3388_v54 = vsel %vm3039_vm6, 1.5707963, %v9458_v56  ;;  %v9459_v57 = vld [vmem:[#allocation68_spill] sm:$0xff]  ;;  %v9460_v8 = vld [vmem:[#allocation69_spill] sm:$0xff] }
 0x184   :  { %v3389_v60 = vsel %vm3039_vm6, 1.5707963, %v9459_v57  ;;  %v3390_v18 = vsel %vm3039_vm6, 1.5707963, %v9460_v8  ;;  %3869 = vst [vmem:[%s9015_s1 + $0xaa0] sm:$0x7f] %v3388_v54 }
 0x185   :  { %3870 = vst [vmem:[%s9015_s1 + $0xaa8] sm:$0x7f] %v3389_v60  ;;  %3871 = vst [vmem:[%s9015_s1 + $0xab0] sm:$0x7f] %v3390_v18  ;;  %v9461_v19 = vld [vmem:[#allocation70_spill] sm:$0xff]  ;;  %v9462_v28 = vld [vmem:[#allocation71_spill] sm:$0xff] }
 0x186   :  { %v3391_v22 = vsel %vm3039_vm6, 1.5707963, %v9461_v19  ;;  %v3392_v41 = vsel %vm3039_vm6, 1.5707963, %v9462_v28  ;;  %v9463_v45 = vld [vmem:[#allocation72_spill] sm:$0xff]  ;;  %v9464_v50 = vld [vmem:[#allocation73_spill] sm:$0xff] }
 0x187   :  { %v3393_v46 = vsel %vm3039_vm6, 1.5707963, %v9463_v45  ;;  %3872 = vst [vmem:[%s9015_s1 + $0xab8] sm:$0x7f] %v3391_v22  ;;  %3873 = vst [vmem:[%s9015_s1 + $0xac0] sm:$0x7f] %v3392_v41 }
 0x188   :  { %3874 = vst [vmem:[%s9015_s1 + $0xac8] sm:$0x7f] %v3393_v46  ;;  %v3394_v58 = vsel %vm3039_vm6, 1.5707963, %v9464_v50  ;;  %v9465_v9 = vld [vmem:[#allocation74_spill] sm:$0xff]  ;;  %v9466_v17 = vld [vmem:[#allocation75_spill] sm:$0xff] }
 0x189   :  { %v3395_v16 = vsel %vm3039_vm6, 1.5707963, %v9465_v9  ;;  %v3396_v24 = vsel %vm3039_vm6, 1.5707963, %v9466_v17  ;;  %3875 = vst [vmem:[%s9015_s1 + $0xad0] sm:$0x7f] %v3394_v58 }
 0x18a   :  { %3876 = vst [vmem:[%s9015_s1 + $0xad8] sm:$0x7f] %v3395_v16  ;;  %3877 = vst [vmem:[%s9015_s1 + $0xae0] sm:$0x7f] %v3396_v24  ;;  %v9467_v35 = vld [vmem:[#allocation76_spill] sm:$0xff]  ;;  %v9468_v59 = vld [vmem:[#allocation77_spill] sm:$0xff] }
 0x18b   :  { %v3397_v47 = vsel %vm3039_vm6, 1.5707963, %v9467_v35  ;;  %v3398_v61 = vsel %vm3039_vm6, 1.5707963, %v9468_v59  ;;  %v9469_v3 = vld [vmem:[#allocation78_spill] sm:$0xff]  ;;  %v9470_v63 = vld [vmem:[#allocation79_spill] sm:$0xff] }
 0x18c   :  { %v3399_v20 = vsel %vm3039_vm6, 1.5707963, %v9469_v3  ;;  %3878 = vst [vmem:[%s9015_s1 + $0xae8] sm:$0x7f] %v3397_v47  ;;  %3879 = vst [vmem:[%s9015_s1 + $0xaf0] sm:$0x7f] %v3398_v61 }
 0x18d   :  { %3880 = vst [vmem:[%s9015_s1 + $0xaf8] sm:$0x7f] %v3399_v20  ;;  %v3400_v42 = vsel %vm3039_vm6, 1.5707963, %v9470_v63  ;;  %v9471_v43 = vld [vmem:[#allocation80_spill] sm:$0xff]  ;;  %v9472_v5 = vld [vmem:[#allocation81_spill] sm:$0xff] }
 0x18e   :  { %v3401_v51 = vsel %vm3039_vm6, 1.5707963, %v9471_v43  ;;  %v3402_v31 = vsel %vm3039_vm6, 1.5707963, %v9472_v5  ;;  %3881 = vst [vmem:[%s9015_s1 + $0xb00] sm:$0x7f] %v3400_v42 }
 0x18f   :  { %3882 = vst [vmem:[%s9015_s1 + $0xb08] sm:$0x7f] %v3401_v51  ;;  %3883 = vst [vmem:[%s9015_s1 + $0xb10] sm:$0x7f] %v3402_v31  ;;  %v9473_v49 = vld [vmem:[#allocation82_spill] sm:$0xff]  ;;  %v9474_v0 = vld [vmem:[#allocation83_spill] sm:$0xff] }
 0x190   :  { %v3403_v11 = vsel %vm3039_vm6, 1.5707963, %v9473_v49  ;;  %v3404_v52 = vsel %vm3039_vm6, 1.5707963, %v9474_v0  ;;  %v9475_v4 = vld [vmem:[#allocation84_spill] sm:$0xff]  ;;  %v9476_v10 = vld [vmem:[#allocation85_spill] sm:$0xff] }
 0x191   :  { %v3405_v30 = vsel %vm3039_vm6, 1.5707963, %v9475_v4  ;;  %3884 = vst [vmem:[%s9015_s1 + $0xb18] sm:$0x7f] %v3403_v11  ;;  %3885 = vst [vmem:[%s9015_s1 + $0xb20] sm:$0x7f] %v3404_v52 }
 0x192   :  { %3886 = vst [vmem:[%s9015_s1 + $0xb28] sm:$0x7f] %v3405_v30  ;;  %v3406_v53 = vsel %vm3039_vm6, 1.5707963, %v9476_v10  ;;  %v9477_v13 = vld [vmem:[#allocation86_spill] sm:$0xff]  ;;  %v9478_v55 = vld [vmem:[#allocation87_spill] sm:$0xff] }
 0x193   :  { %v3407_v44 = vsel %vm3039_vm6, 1.5707963, %v9477_v13  ;;  %v3408_v62 = vsel %vm3039_vm6, 1.5707963, %v9478_v55  ;;  %3887 = vst [vmem:[%s9015_s1 + $0xb30] sm:$0x7f] %v3406_v53 }
 0x194   :  { %3888 = vst [vmem:[%s9015_s1 + $0xb38] sm:$0x7f] %v3407_v44  ;;  %3889 = vst [vmem:[%s9015_s1 + $0xb40] sm:$0x7f] %v3408_v62  ;;  %v9479_v39 = vld [vmem:[#allocation88_spill] sm:$0xff]  ;;  %v9480_v26 = vld [vmem:[#allocation89_spill] sm:$0xff] }
 0x195   :  { %v3409_v14 = vsel %vm3039_vm6, 1.5707963, %v9479_v39  ;;  %v3410_v15 = vsel %vm3039_vm6, 1.5707963, %v9480_v26  ;;  %v9481_v27 = vld [vmem:[#allocation90_spill] sm:$0xff]  ;;  %v9482_v33 = vld [vmem:[#allocation91_spill] sm:$0xff] }
 0x196   :  { %v3411_v32 = vsel %vm3039_vm6, 1.5707963, %v9481_v27  ;;  %3890 = vst [vmem:[%s9015_s1 + $0xb48] sm:$0x7f] %v3409_v14  ;;  %3891 = vst [vmem:[%s9015_s1 + $0xb50] sm:$0x7f] %v3410_v15 }
 0x197   :  { %3892 = vst [vmem:[%s9015_s1 + $0xb58] sm:$0x7f] %v3411_v32  ;;  %v3412_v40 = vsel %vm3039_vm6, 1.5707963, %v9482_v33  ;;  %v9483_v48 = vld [vmem:[#allocation92_spill] sm:$0xff]  ;;  %v9484_v54 = vld [vmem:[#allocation93_spill] sm:$0xff] }
 0x198   :  { %v3413_v56 = vsel %vm3039_vm6, 1.5707963, %v9483_v48  ;;  %v3414_v57 = vsel %vm3039_vm6, 1.5707963, %v9484_v54  ;;  %3893 = vst [vmem:[%s9015_s1 + $0xb60] sm:$0x7f] %v3412_v40 }
 0x199   :  { %3894 = vst [vmem:[%s9015_s1 + $0xb68] sm:$0x7f] %v3413_v56  ;;  %3895 = vst [vmem:[%s9015_s1 + $0xb70] sm:$0x7f] %v3414_v57  ;;  %v9485_v60 = vld [vmem:[#allocation94_spill] sm:$0xff]  ;;  %v9486_v18 = vld [vmem:[#allocation95_spill] sm:$0xff] }
 0x19a   :  { %v3415_v8 = vsel %vm3039_vm6, 1.5707963, %v9485_v60  ;;  %v3416_v19 = vsel %vm3039_vm6, 1.5707963, %v9486_v18  ;;  %v9487_v22 = vld [vmem:[#allocation96_spill] sm:$0xff]  ;;  %v9488_v41 = vld [vmem:[#allocation97_spill] sm:$0xff] }
 0x19b   :  { %v3417_v28 = vsel %vm3039_vm6, 1.5707963, %v9487_v22  ;;  %3896 = vst [vmem:[%s9015_s1 + $0xb78] sm:$0x7f] %v3415_v8  ;;  %3897 = vst [vmem:[%s9015_s1 + $0xb80] sm:$0x7f] %v3416_v19 }
 0x19c   :  { %3898 = vst [vmem:[%s9015_s1 + $0xb88] sm:$0x7f] %v3417_v28  ;;  %v3418_v45 = vsel %vm3039_vm6, 1.5707963, %v9488_v41  ;;  %v9489_v46 = vld [vmem:[#allocation98_spill] sm:$0xff]  ;;  %v9490_v58 = vld [vmem:[#allocation99_spill] sm:$0xff] }
 0x19d   :  { %v3419_v50 = vsel %vm3039_vm6, 1.5707963, %v9489_v46  ;;  %v3420_v9 = vsel %vm3039_vm6, 1.5707963, %v9490_v58  ;;  %3899 = vst [vmem:[%s9015_s1 + $0xb90] sm:$0x7f] %v3418_v45 }
 0x19e   :  { %3900 = vst [vmem:[%s9015_s1 + $0xb98] sm:$0x7f] %v3419_v50  ;;  %3901 = vst [vmem:[%s9015_s1 + $0xba0] sm:$0x7f] %v3420_v9  ;;  %v9491_v16 = vld [vmem:[#allocation100_spill] sm:$0xff]  ;;  %v9492_v24 = vld [vmem:[#allocation101_spill] sm:$0xff] }
 0x19f   :  { %v3421_v17 = vsel %vm3039_vm6, 1.5707963, %v9491_v16  ;;  %v3422_v35 = vsel %vm3039_vm6, 1.5707963, %v9492_v24  ;;  %v9493_v47 = vld [vmem:[#allocation102_spill] sm:$0xff]  ;;  %v9494_v61 = vld [vmem:[#allocation103_spill] sm:$0xff] }
 0x1a0   :  { %v3423_v59 = vsel %vm3039_vm6, 1.5707963, %v9493_v47  ;;  %3902 = vst [vmem:[%s9015_s1 + $0xba8] sm:$0x7f] %v3421_v17  ;;  %3903 = vst [vmem:[%s9015_s1 + $0xbb0] sm:$0x7f] %v3422_v35 }
 0x1a1   :  { %3904 = vst [vmem:[%s9015_s1 + $0xbb8] sm:$0x7f] %v3423_v59  ;;  %v3424_v3 = vsel %vm3039_vm6, 1.5707963, %v9494_v61  ;;  %v9495_v20 = vld [vmem:[#allocation104_spill] sm:$0xff]  ;;  %v9496_v42 = vld [vmem:[#allocation105_spill] sm:$0xff] }
 0x1a2   :  { %v3425_v63 = vsel %vm3039_vm6, 1.5707963, %v9495_v20  ;;  %v3426_v43 = vsel %vm3039_vm6, 1.5707963, %v9496_v42  ;;  %3905 = vst [vmem:[%s9015_s1 + $0xbc0] sm:$0x7f] %v3424_v3 }
 0x1a3   :  { %3906 = vst [vmem:[%s9015_s1 + $0xbc8] sm:$0x7f] %v3425_v63  ;;  %3907 = vst [vmem:[%s9015_s1 + $0xbd0] sm:$0x7f] %v3426_v43  ;;  %v9497_v51 = vld [vmem:[#allocation106_spill] sm:$0xff]  ;;  %v9498_v31 = vld [vmem:[#allocation107_spill] sm:$0xff] }
 0x1a4   :  { %v3427_v5 = vsel %vm3039_vm6, 1.5707963, %v9497_v51  ;;  %v3428_v49 = vsel %vm3039_vm6, 1.5707963, %v9498_v31  ;;  %v9499_v11 = vld [vmem:[#allocation108_spill] sm:$0xff]  ;;  %v9500_v52 = vld [vmem:[#allocation109_spill] sm:$0xff] }
 0x1a5   :  { %v3429_v0 = vsel %vm3039_vm6, 1.5707963, %v9499_v11  ;;  %3908 = vst [vmem:[%s9015_s1 + $0xbd8] sm:$0x7f] %v3427_v5  ;;  %3909 = vst [vmem:[%s9015_s1 + $0xbe0] sm:$0x7f] %v3428_v49 }
 0x1a6   :  { %3910 = vst [vmem:[%s9015_s1 + $0xbe8] sm:$0x7f] %v3429_v0  ;;  %v3430_v4 = vsel %vm3039_vm6, 1.5707963, %v9500_v52  ;;  %v9501_v30 = vld [vmem:[#allocation110_spill] sm:$0xff]  ;;  %v9502_v53 = vld [vmem:[#allocation111_spill] sm:$0xff] }
 0x1a7   :  { %v3431_v10 = vsel %vm3039_vm6, 1.5707963, %v9501_v30  ;;  %v3432_v13 = vsel %vm3039_vm6, 1.5707963, %v9502_v53  ;;  %3911 = vst [vmem:[%s9015_s1 + $0xbf0] sm:$0x7f] %v3430_v4 }
 0x1a8   :  { %3912 = vst [vmem:[%s9015_s1 + $0xbf8] sm:$0x7f] %v3431_v10  ;;  %3913 = vst [vmem:[%s9015_s1 + $0xc00] sm:$0x7f] %v3432_v13  ;;  %v9503_v44 = vld [vmem:[#allocation112_spill] sm:$0xff]  ;;  %v9504_v62 = vld [vmem:[#allocation113_spill] sm:$0xff] }
 0x1a9   :  { %v3433_v55 = vsel %vm3039_vm6, 1.5707963, %v9503_v44  ;;  %v3434_v39 = vsel %vm3039_vm6, 1.5707963, %v9504_v62  ;;  %v9505_v14 = vld [vmem:[#allocation114_spill] sm:$0xff]  ;;  %v9506_v15 = vld [vmem:[#allocation115_spill] sm:$0xff] }
 0x1aa   :  { %v3435_v26 = vsel %vm3039_vm6, 1.5707963, %v9505_v14  ;;  %3914 = vst [vmem:[%s9015_s1 + $0xc08] sm:$0x7f] %v3433_v55  ;;  %3915 = vst [vmem:[%s9015_s1 + $0xc10] sm:$0x7f] %v3434_v39 }
 0x1ab   :  { %3916 = vst [vmem:[%s9015_s1 + $0xc18] sm:$0x7f] %v3435_v26  ;;  %v3436_v27 = vsel %vm3039_vm6, 1.5707963, %v9506_v15  ;;  %v9507_v32 = vld [vmem:[#allocation116_spill] sm:$0xff]  ;;  %v9508_v40 = vld [vmem:[#allocation117_spill] sm:$0xff] }
 0x1ac   :  { %v3437_v33 = vsel %vm3039_vm6, 1.5707963, %v9507_v32  ;;  %v3438_v48 = vsel %vm3039_vm6, 1.5707963, %v9508_v40  ;;  %3917 = vst [vmem:[%s9015_s1 + $0xc20] sm:$0x7f] %v3436_v27 }
 0x1ad   :  { %3918 = vst [vmem:[%s9015_s1 + $0xc28] sm:$0x7f] %v3437_v33  ;;  %3919 = vst [vmem:[%s9015_s1 + $0xc30] sm:$0x7f] %v3438_v48  ;;  %v9509_v56 = vld [vmem:[#allocation118_spill] sm:$0xff]  ;;  %v9510_v57 = vld [vmem:[#allocation119_spill] sm:$0xff] }
 0x1ae   :  { %v3439_v54 = vsel %vm3039_vm6, 1.5707963, %v9509_v56  ;;  %v3440_v60 = vsel %vm3039_vm6, 1.5707963, %v9510_v57  ;;  %v9511_v8 = vld [vmem:[#allocation120_spill] sm:$0xff]  ;;  %v9512_v19 = vld [vmem:[#allocation121_spill] sm:$0xff] }
 0x1af   :  { %v3441_v18 = vsel %vm3039_vm6, 1.5707963, %v9511_v8  ;;  %3920 = vst [vmem:[%s9015_s1 + $0xc38] sm:$0x7f] %v3439_v54  ;;  %3921 = vst [vmem:[%s9015_s1 + $0xc40] sm:$0x7f] %v3440_v60 }
 0x1b0   :  { %3922 = vst [vmem:[%s9015_s1 + $0xc48] sm:$0x7f] %v3441_v18  ;;  %v3442_v22 = vsel %vm3039_vm6, 1.5707963, %v9512_v19  ;;  %v9513_v28 = vld [vmem:[#allocation122_spill] sm:$0xff]  ;;  %v9514_v45 = vld [vmem:[#allocation123_spill] sm:$0xff] }
 0x1b1   :  { %v3443_v41 = vsel %vm3039_vm6, 1.5707963, %v9513_v28  ;;  %v3444_v46 = vsel %vm3039_vm6, 1.5707963, %v9514_v45  ;;  %3923 = vst [vmem:[%s9015_s1 + $0xc50] sm:$0x7f] %v3442_v22 }
 0x1b2   :  { %3924 = vst [vmem:[%s9015_s1 + $0xc58] sm:$0x7f] %v3443_v41  ;;  %3925 = vst [vmem:[%s9015_s1 + $0xc60] sm:$0x7f] %v3444_v46  ;;  %v9515_v50 = vld [vmem:[#allocation124_spill] sm:$0xff]  ;;  %v9516_v9 = vld [vmem:[#allocation125_spill] sm:$0xff] }
 0x1b3   :  { %v3445_v58 = vsel %vm3039_vm6, 1.5707963, %v9515_v50  ;;  %v3446_v16 = vsel %vm3039_vm6, 1.5707963, %v9516_v9  ;;  %v9517_v17 = vld [vmem:[#allocation126_spill] sm:$0xff]  ;;  %v9518_v35 = vld [vmem:[#allocation127_spill] sm:$0xff] }
 0x1b4   :  { %v3447_v24 = vsel %vm3039_vm6, 1.5707963, %v9517_v17  ;;  %3926 = vst [vmem:[%s9015_s1 + $0xc68] sm:$0x7f] %v3445_v58  ;;  %3927 = vst [vmem:[%s9015_s1 + $0xc70] sm:$0x7f] %v3446_v16 }
 0x1b5   :  { %3928 = vst [vmem:[%s9015_s1 + $0xc78] sm:$0x7f] %v3447_v24  ;;  %v3448_v47 = vsel %vm3039_vm6, 1.5707963, %v9518_v35  ;;  %v9519_v59 = vld [vmem:[#allocation128_spill] sm:$0xff]  ;;  %v9520_v3 = vld [vmem:[#allocation129_spill] sm:$0xff] }
 0x1b6   :  { %v3449_v61 = vsel %vm3039_vm6, 1.5707963, %v9519_v59  ;;  %v3450_v20 = vsel %vm3039_vm6, 1.5707963, %v9520_v3  ;;  %3929 = vst [vmem:[%s9015_s1 + $0xc80] sm:$0x7f] %v3448_v47 }
 0x1b7   :  { %3930 = vst [vmem:[%s9015_s1 + $0xc88] sm:$0x7f] %v3449_v61  ;;  %3931 = vst [vmem:[%s9015_s1 + $0xc90] sm:$0x7f] %v3450_v20  ;;  %v9521_v63 = vld [vmem:[#allocation130_spill] sm:$0xff]  ;;  %v9522_v43 = vld [vmem:[#allocation131_spill] sm:$0xff] }
 0x1b8   :  { %v3451_v42 = vsel %vm3039_vm6, 1.5707963, %v9521_v63  ;;  %v3452_v51 = vsel %vm3039_vm6, 1.5707963, %v9522_v43  ;;  %v9523_v5 = vld [vmem:[#allocation132_spill] sm:$0xff]  ;;  %v9524_v49 = vld [vmem:[#allocation133_spill] sm:$0xff] }
 0x1b9   :  { %v3453_v31 = vsel %vm3039_vm6, 1.5707963, %v9523_v5  ;;  %3932 = vst [vmem:[%s9015_s1 + $0xc98] sm:$0x7f] %v3451_v42  ;;  %3933 = vst [vmem:[%s9015_s1 + $0xca0] sm:$0x7f] %v3452_v51 }
 0x1ba   :  { %3934 = vst [vmem:[%s9015_s1 + $0xca8] sm:$0x7f] %v3453_v31  ;;  %v3454_v11 = vsel %vm3039_vm6, 1.5707963, %v9524_v49  ;;  %v9525_v0 = vld [vmem:[#allocation134_spill] sm:$0xff]  ;;  %v9526_v4 = vld [vmem:[#allocation135_spill] sm:$0xff] }
 0x1bb   :  { %v3455_v52 = vsel %vm3039_vm6, 1.5707963, %v9525_v0  ;;  %v3456_v30 = vsel %vm3039_vm6, 1.5707963, %v9526_v4  ;;  %3935 = vst [vmem:[%s9015_s1 + $0xcb0] sm:$0x7f] %v3454_v11 }
 0x1bc   :  { %3936 = vst [vmem:[%s9015_s1 + $0xcb8] sm:$0x7f] %v3455_v52  ;;  %3937 = vst [vmem:[%s9015_s1 + $0xcc0] sm:$0x7f] %v3456_v30  ;;  %v9527_v10 = vld [vmem:[#allocation136_spill] sm:$0xff]  ;;  %v9528_v13 = vld [vmem:[#allocation137_spill] sm:$0xff] }
 0x1bd   :  { %v3457_v53 = vsel %vm3039_vm6, 1.5707963, %v9527_v10  ;;  %v3458_v44 = vsel %vm3039_vm6, 1.5707963, %v9528_v13  ;;  %v9529_v55 = vld [vmem:[#allocation138_spill] sm:$0xff]  ;;  %v9530_v39 = vld [vmem:[#allocation139_spill] sm:$0xff] }
 0x1be   :  { %v3459_v62 = vsel %vm3039_vm6, 1.5707963, %v9529_v55  ;;  %3938 = vst [vmem:[%s9015_s1 + $0xcc8] sm:$0x7f] %v3457_v53  ;;  %3939 = vst [vmem:[%s9015_s1 + $0xcd0] sm:$0x7f] %v3458_v44 }
 0x1bf   :  { %3940 = vst [vmem:[%s9015_s1 + $0xcd8] sm:$0x7f] %v3459_v62  ;;  %v3460_v14 = vsel %vm3039_vm6, 1.5707963, %v9530_v39  ;;  %v9531_v26 = vld [vmem:[#allocation140_spill] sm:$0xff]  ;;  %v9532_v27 = vld [vmem:[#allocation141_spill] sm:$0xff] }
 0x1c0   :  { %v3461_v15 = vsel %vm3039_vm6, 1.5707963, %v9531_v26  ;;  %v3462_v32 = vsel %vm3039_vm6, 1.5707963, %v9532_v27  ;;  %3941 = vst [vmem:[%s9015_s1 + $0xce0] sm:$0x7f] %v3460_v14 }
 0x1c1   :  { %3942 = vst [vmem:[%s9015_s1 + $0xce8] sm:$0x7f] %v3461_v15  ;;  %3943 = vst [vmem:[%s9015_s1 + $0xcf0] sm:$0x7f] %v3462_v32  ;;  %v9533_v33 = vld [vmem:[#allocation142_spill] sm:$0xff]  ;;  %v9534_v48 = vld [vmem:[#allocation143_spill] sm:$0xff] }
 0x1c2   :  { %v3463_v40 = vsel %vm3039_vm6, 1.5707963, %v9533_v33  ;;  %v3464_v56 = vsel %vm3039_vm6, 1.5707963, %v9534_v48  ;;  %v9535_v54 = vld [vmem:[#allocation144_spill] sm:$0xff]  ;;  %v9536_v60 = vld [vmem:[#allocation145_spill] sm:$0xff] }
 0x1c3   :  { %v3465_v57 = vsel %vm3039_vm6, 1.5707963, %v9535_v54  ;;  %3944 = vst [vmem:[%s9015_s1 + $0xcf8] sm:$0x7f] %v3463_v40  ;;  %3945 = vst [vmem:[%s9015_s1 + $0xd00] sm:$0x7f] %v3464_v56 }
 0x1c4   :  { %3946 = vst [vmem:[%s9015_s1 + $0xd08] sm:$0x7f] %v3465_v57  ;;  %v3466_v8 = vsel %vm3039_vm6, 1.5707963, %v9536_v60  ;;  %v9537_v18 = vld [vmem:[#allocation146_spill] sm:$0xff]  ;;  %v9538_v22 = vld [vmem:[#allocation147_spill] sm:$0xff] }
 0x1c5   :  { %v3467_v19 = vsel %vm3039_vm6, 1.5707963, %v9537_v18  ;;  %v3468_v28 = vsel %vm3039_vm6, 1.5707963, %v9538_v22  ;;  %3947 = vst [vmem:[%s9015_s1 + $0xd10] sm:$0x7f] %v3466_v8 }
 0x1c6   :  { %3948 = vst [vmem:[%s9015_s1 + $0xd18] sm:$0x7f] %v3467_v19  ;;  %3949 = vst [vmem:[%s9015_s1 + $0xd20] sm:$0x7f] %v3468_v28  ;;  %v9539_v41 = vld [vmem:[#allocation148_spill] sm:$0xff]  ;;  %v9540_v46 = vld [vmem:[#allocation149_spill] sm:$0xff] }
 0x1c7   :  { %v3469_v45 = vsel %vm3039_vm6, 1.5707963, %v9539_v41  ;;  %v3470_v50 = vsel %vm3039_vm6, 1.5707963, %v9540_v46  ;;  %v9541_v58 = vld [vmem:[#allocation150_spill] sm:$0xff]  ;;  %v9542_v16 = vld [vmem:[#allocation151_spill] sm:$0xff] }
 0x1c8   :  { %v3471_v9 = vsel %vm3039_vm6, 1.5707963, %v9541_v58  ;;  %3950 = vst [vmem:[%s9015_s1 + $0xd28] sm:$0x7f] %v3469_v45  ;;  %3951 = vst [vmem:[%s9015_s1 + $0xd30] sm:$0x7f] %v3470_v50 }
 0x1c9   :  { %3952 = vst [vmem:[%s9015_s1 + $0xd38] sm:$0x7f] %v3471_v9  ;;  %v3472_v17 = vsel %vm3039_vm6, 1.5707963, %v9542_v16  ;;  %v9543_v24 = vld [vmem:[#allocation152_spill] sm:$0xff]  ;;  %v9544_v47 = vld [vmem:[#allocation153_spill] sm:$0xff] }
 0x1ca   :  { %v3473_v35 = vsel %vm3039_vm6, 1.5707963, %v9543_v24  ;;  %v3474_v59 = vsel %vm3039_vm6, 1.5707963, %v9544_v47  ;;  %3953 = vst [vmem:[%s9015_s1 + $0xd40] sm:$0x7f] %v3472_v17 }
 0x1cb   :  { %3954 = vst [vmem:[%s9015_s1 + $0xd48] sm:$0x7f] %v3473_v35  ;;  %3955 = vst [vmem:[%s9015_s1 + $0xd50] sm:$0x7f] %v3474_v59  ;;  %v9545_v61 = vld [vmem:[#allocation154_spill] sm:$0xff]  ;;  %v9546_v20 = vld [vmem:[#allocation155_spill] sm:$0xff] }
 0x1cc   :  { %v3475_v3 = vsel %vm3039_vm6, 1.5707963, %v9545_v61  ;;  %v3476_v63 = vsel %vm3039_vm6, 1.5707963, %v9546_v20  ;;  %v9547_v42 = vld [vmem:[#allocation156_spill] sm:$0xff]  ;;  %v9548_v51 = vld [vmem:[#allocation157_spill] sm:$0xff] }
 0x1cd   :  { %v3477_v43 = vsel %vm3039_vm6, 1.5707963, %v9547_v42  ;;  %3956 = vst [vmem:[%s9015_s1 + $0xd58] sm:$0x7f] %v3475_v3  ;;  %3957 = vst [vmem:[%s9015_s1 + $0xd60] sm:$0x7f] %v3476_v63 }
 0x1ce   :  { %3958 = vst [vmem:[%s9015_s1 + $0xd68] sm:$0x7f] %v3477_v43  ;;  %v3478_v5 = vsel %vm3039_vm6, 1.5707963, %v9548_v51  ;;  %v9549_v31 = vld [vmem:[#allocation158_spill] sm:$0xff]  ;;  %v9550_v11 = vld [vmem:[#allocation159_spill] sm:$0xff] }
 0x1cf   :  { %v3479_v49 = vsel %vm3039_vm6, 1.5707963, %v9549_v31  ;;  %v3480_v0 = vsel %vm3039_vm6, 1.5707963, %v9550_v11  ;;  %3959 = vst [vmem:[%s9015_s1 + $0xd70] sm:$0x7f] %v3478_v5 }
 0x1d0   :  { %3960 = vst [vmem:[%s9015_s1 + $0xd78] sm:$0x7f] %v3479_v49  ;;  %3961 = vst [vmem:[%s9015_s1 + $0xd80] sm:$0x7f] %v3480_v0  ;;  %v9551_v52 = vld [vmem:[#allocation160_spill] sm:$0xff]  ;;  %v9552_v30 = vld [vmem:[#allocation161_spill] sm:$0xff] }
 0x1d1   :  { %v3481_v4 = vsel %vm3039_vm6, 1.5707963, %v9551_v52  ;;  %v3482_v10 = vsel %vm3039_vm6, 1.5707963, %v9552_v30  ;;  %v9553_v53 = vld [vmem:[#allocation162_spill] sm:$0xff]  ;;  %v9554_v44 = vld [vmem:[#allocation163_spill] sm:$0xff] }
 0x1d2   :  { %v3483_v13 = vsel %vm3039_vm6, 1.5707963, %v9553_v53  ;;  %3962 = vst [vmem:[%s9015_s1 + $0xd88] sm:$0x7f] %v3481_v4  ;;  %3963 = vst [vmem:[%s9015_s1 + $0xd90] sm:$0x7f] %v3482_v10 }
 0x1d3   :  { %3964 = vst [vmem:[%s9015_s1 + $0xd98] sm:$0x7f] %v3483_v13  ;;  %v3484_v55 = vsel %vm3039_vm6, 1.5707963, %v9554_v44  ;;  %v9555_v62 = vld [vmem:[#allocation164_spill] sm:$0xff]  ;;  %v9556_v14 = vld [vmem:[#allocation165_spill] sm:$0xff] }
 0x1d4   :  { %v3485_v39 = vsel %vm3039_vm6, 1.5707963, %v9555_v62  ;;  %v3486_v26 = vsel %vm3039_vm6, 1.5707963, %v9556_v14  ;;  %3965 = vst [vmem:[%s9015_s1 + $0xda0] sm:$0x7f] %v3484_v55 }
 0x1d5   :  { %3966 = vst [vmem:[%s9015_s1 + $0xda8] sm:$0x7f] %v3485_v39  ;;  %3967 = vst [vmem:[%s9015_s1 + $0xdb0] sm:$0x7f] %v3486_v26  ;;  %v9557_v15 = vld [vmem:[#allocation166_spill] sm:$0xff]  ;;  %v9558_v32 = vld [vmem:[#allocation167_spill] sm:$0xff] }
 0x1d6   :  { %v3487_v27 = vsel %vm3039_vm6, 1.5707963, %v9557_v15  ;;  %v3488_v33 = vsel %vm3039_vm6, 1.5707963, %v9558_v32  ;;  %v9559_v40 = vld [vmem:[#allocation168_spill] sm:$0xff]  ;;  %v9560_v56 = vld [vmem:[#allocation169_spill] sm:$0xff] }
 0x1d7   :  { %v3489_v48 = vsel %vm3039_vm6, 1.5707963, %v9559_v40  ;;  %3968 = vst [vmem:[%s9015_s1 + $0xdb8] sm:$0x7f] %v3487_v27  ;;  %3969 = vst [vmem:[%s9015_s1 + $0xdc0] sm:$0x7f] %v3488_v33 }
 0x1d8   :  { %3970 = vst [vmem:[%s9015_s1 + $0xdc8] sm:$0x7f] %v3489_v48  ;;  %v3490_v54 = vsel %vm3039_vm6, 1.5707963, %v9560_v56  ;;  %v9561_v57 = vld [vmem:[#allocation170_spill] sm:$0xff]  ;;  %v9562_v8 = vld [vmem:[#allocation171_spill] sm:$0xff] }
 0x1d9   :  { %v3491_v60 = vsel %vm3039_vm6, 1.5707963, %v9561_v57  ;;  %v3492_v18 = vsel %vm3039_vm6, 1.5707963, %v9562_v8  ;;  %3971 = vst [vmem:[%s9015_s1 + $0xdd0] sm:$0x7f] %v3490_v54 }
 0x1da   :  { %3972 = vst [vmem:[%s9015_s1 + $0xdd8] sm:$0x7f] %v3491_v60  ;;  %3973 = vst [vmem:[%s9015_s1 + $0xde0] sm:$0x7f] %v3492_v18  ;;  %v9563_v19 = vld [vmem:[#allocation172_spill] sm:$0xff]  ;;  %v9564_v28 = vld [vmem:[#allocation173_spill] sm:$0xff] }
 0x1db   :  { %v3493_v22 = vsel %vm3039_vm6, 1.5707963, %v9563_v19  ;;  %v3494_v41 = vsel %vm3039_vm6, 1.5707963, %v9564_v28  ;;  %v9565_v45 = vld [vmem:[#allocation174_spill] sm:$0xff]  ;;  %v9566_v50 = vld [vmem:[#allocation175_spill] sm:$0xff] }
 0x1dc   :  { %v3495_v46 = vsel %vm3039_vm6, 1.5707963, %v9565_v45  ;;  %3974 = vst [vmem:[%s9015_s1 + $0xde8] sm:$0x7f] %v3493_v22  ;;  %3975 = vst [vmem:[%s9015_s1 + $0xdf0] sm:$0x7f] %v3494_v41 }
 0x1dd   :  { %3976 = vst [vmem:[%s9015_s1 + $0xdf8] sm:$0x7f] %v3495_v46  ;;  %v3496_v58 = vsel %vm3039_vm6, 1.5707963, %v9566_v50  ;;  %v9567_v9 = vld [vmem:[#allocation176_spill] sm:$0xff]  ;;  %v9568_v17 = vld [vmem:[#allocation177_spill] sm:$0xff] }
 0x1de   :  { %v3497_v16 = vsel %vm3039_vm6, 1.5707963, %v9567_v9  ;;  %v3498_v24 = vsel %vm3039_vm6, 1.5707963, %v9568_v17  ;;  %3977 = vst [vmem:[%s9015_s1 + $0xe00] sm:$0x7f] %v3496_v58 }
 0x1df   :  { %3978 = vst [vmem:[%s9015_s1 + $0xe08] sm:$0x7f] %v3497_v16  ;;  %3979 = vst [vmem:[%s9015_s1 + $0xe10] sm:$0x7f] %v3498_v24  ;;  %v9569_v35 = vld [vmem:[#allocation178_spill] sm:$0xff]  ;;  %v9570_v59 = vld [vmem:[#allocation179_spill] sm:$0xff] }
 0x1e0   :  { %v3499_v47 = vsel %vm3039_vm6, 1.5707963, %v9569_v35  ;;  %v3500_v61 = vsel %vm3039_vm6, 1.5707963, %v9570_v59  ;;  %v9571_v3 = vld [vmem:[#allocation180_spill] sm:$0xff]  ;;  %v9572_v63 = vld [vmem:[#allocation181_spill] sm:$0xff] }
 0x1e1   :  { %v3501_v20 = vsel %vm3039_vm6, 1.5707963, %v9571_v3  ;;  %3980 = vst [vmem:[%s9015_s1 + $0xe18] sm:$0x7f] %v3499_v47  ;;  %3981 = vst [vmem:[%s9015_s1 + $0xe20] sm:$0x7f] %v3500_v61 }
 0x1e2   :  { %3982 = vst [vmem:[%s9015_s1 + $0xe28] sm:$0x7f] %v3501_v20  ;;  %v3502_v42 = vsel %vm3039_vm6, 1.5707963, %v9572_v63  ;;  %v9573_v43 = vld [vmem:[#allocation182_spill] sm:$0xff]  ;;  %v9574_v5 = vld [vmem:[#allocation183_spill] sm:$0xff] }
 0x1e3   :  { %v3503_v51 = vsel %vm3039_vm6, 1.5707963, %v9573_v43  ;;  %v3504_v31 = vsel %vm3039_vm6, 1.5707963, %v9574_v5  ;;  %3983 = vst [vmem:[%s9015_s1 + $0xe30] sm:$0x7f] %v3502_v42 }
 0x1e4   :  { %3984 = vst [vmem:[%s9015_s1 + $0xe38] sm:$0x7f] %v3503_v51  ;;  %3985 = vst [vmem:[%s9015_s1 + $0xe40] sm:$0x7f] %v3504_v31  ;;  %v9575_v49 = vld [vmem:[#allocation184_spill] sm:$0xff]  ;;  %v9576_v0 = vld [vmem:[#allocation185_spill] sm:$0xff] }
 0x1e5   :  { %v3505_v11 = vsel %vm3039_vm6, 1.5707963, %v9575_v49  ;;  %v3506_v52 = vsel %vm3039_vm6, 1.5707963, %v9576_v0  ;;  %v9577_v4 = vld [vmem:[#allocation186_spill] sm:$0xff]  ;;  %v9578_v10 = vld [vmem:[#allocation187_spill] sm:$0xff] }
 0x1e6   :  { %v3507_v30 = vsel %vm3039_vm6, 1.5707963, %v9577_v4  ;;  %3986 = vst [vmem:[%s9015_s1 + $0xe48] sm:$0x7f] %v3505_v11  ;;  %3987 = vst [vmem:[%s9015_s1 + $0xe50] sm:$0x7f] %v3506_v52 }
 0x1e7   :  { %3988 = vst [vmem:[%s9015_s1 + $0xe58] sm:$0x7f] %v3507_v30  ;;  %v3508_v53 = vsel %vm3039_vm6, 1.5707963, %v9578_v10  ;;  %v9579_v13 = vld [vmem:[#allocation188_spill] sm:$0xff]  ;;  %v9580_v55 = vld [vmem:[#allocation189_spill] sm:$0xff] }
 0x1e8   :  { %v3509_v44 = vsel %vm3039_vm6, 1.5707963, %v9579_v13  ;;  %v3510_v62 = vsel %vm3039_vm6, 1.5707963, %v9580_v55  ;;  %3989 = vst [vmem:[%s9015_s1 + $0xe60] sm:$0x7f] %v3508_v53 }
 0x1e9   :  { %3990 = vst [vmem:[%s9015_s1 + $0xe68] sm:$0x7f] %v3509_v44  ;;  %3991 = vst [vmem:[%s9015_s1 + $0xe70] sm:$0x7f] %v3510_v62  ;;  %v9581_v39 = vld [vmem:[#allocation190_spill] sm:$0xff]  ;;  %v9582_v26 = vld [vmem:[#allocation191_spill] sm:$0xff] }
 0x1ea   :  { %v3511_v14 = vsel %vm3039_vm6, 1.5707963, %v9581_v39  ;;  %v3512_v15 = vsel %vm3039_vm6, 1.5707963, %v9582_v26  ;;  %v3513_v27 = vsel %vm3039_vm6, 1.5707963, %v7373_v23 }
 0x1eb   :  { %3992 = vst [vmem:[%s9015_s1 + $0xe78] sm:$0x7f] %v3511_v14  ;;  %3993 = vst [vmem:[%s9015_s1 + $0xe80] sm:$0x7f] %v3512_v15  ;;  %v3514_v32 = vsel %vm3039_vm6, 1.5707963, %v7392_v21 }
 0x1ec   :  { %3994 = vst [vmem:[%s9015_s1 + $0xe88] sm:$0x7f] %v3513_v27  ;;  %v9583_v33 = vld [vmem:[#allocation192_spill] sm:$0xff]  ;;  %v9584_v40 = vld [vmem:[#allocation193_spill] sm:$0xff]  ;;  %3995 = vst [vmem:[%s9015_s1 + $0xe90] sm:$0x7f] %v3514_v32 }
 0x1ed   :  { %v3515_v23 = vsel %vm3039_vm6, 1.5707963, %v9583_v33  ;;  %v3516_v48 = vsel %vm3039_vm6, 1.5707963, %v9584_v40  ;;  %v9585_v21 = vld [vmem:[#allocation194_spill] sm:$0xff] }
 0x1ee   :  { %3996 = vst [vmem:[%s9015_s1 + $0xe98] sm:$0x7f] %v3515_v23  ;;  %3997 = vst [vmem:[%s9015_s1 + $0xea0] sm:$0x7f] %v3516_v48  ;;  %v3517_v56 = vsel %vm3039_vm6, 1.5707963, %v9585_v21 }
 0x1ef   :  { %v3518_v54 = vsel %vm3039_vm6, 1.5707963, %v7449_v36  ;;  %v3519_v57 = vsel %vm3039_vm6, 1.5707963, %v7465_v6  ;;  %3998 = vst [vmem:[%s9015_s1 + $0xea8] sm:$0x7f] %v3517_v56 }
 0x1f0   :  { %3999 = vst [vmem:[%s9015_s1 + $0xeb0] sm:$0x7f] %v3518_v54  ;;  %4000 = vst [vmem:[%s9015_s1 + $0xeb8] sm:$0x7f] %v3519_v57  ;;  %v3520_v36 = vsel %vm3039_vm6, 1.5707963, %v7469_v34 }
 0x1f1   :  { %v3521_v6 = vsel %vm3039_vm6, 1.5707963, %v7485_v29  ;;  %v3522_v60 = vsel %vm3039_vm6, 1.5707963, %v7499_v2  ;;  %4001 = vst [vmem:[%s9015_s1 + $0xec0] sm:$0x7f] %v3520_v36 }
 0x1f2   :  { %4002 = vst [vmem:[%s9015_s1 + $0xec8] sm:$0x7f] %v3521_v6  ;;  %4003 = vst [vmem:[%s9015_s1 + $0xed0] sm:$0x7f] %v3522_v60  ;;  %v3523_v34 = vsel %vm3039_vm6, 1.5707963, %v7519_v12 }
 0x1f3   :  { %v3524_v29 = vsel %vm3039_vm6, 1.5707963, %v7535_v38  ;;  %v3525_v2 = vsel %vm3039_vm6, 1.5707963, %v7539_v7  ;;  %4004 = vst [vmem:[%s9015_s1 + $0xed8] sm:$0x7f] %v3523_v34 }
 0x1f4   :  { %4005 = vst [vmem:[%s9015_s1 + $0xee0] sm:$0x7f] %v3524_v29  ;;  %4006 = vst [vmem:[%s9015_s1 + $0xee8] sm:$0x7f] %v3525_v2  ;;  %v3526_v12 = vsel %vm3039_vm6, 1.5707963, %v7555_v37 }
 0x1f5   :  { %v3527_v38 = vsel %vm3039_vm6, 1.5707963, %v7569_v25  ;;  %4007 = vst [vmem:[%s9015_s1 + $0xef0] sm:$0x7f] %v3526_v12 }
 0x1f6   :  { %4008 = vst.msk [vmem:[%s9015_s1 + $0xef8] sm:$0x7f] %vm3767_vm7, %v3527_v38 }
 0x1f7   :  { %4013 = vsyncpa [#allocation3], 1 }

</bundles_post_ra>
